<compile_context>
chip_gen: v5e
topology: v5e:2x2
jax: 0.10.0
libtpu: 0.0.40
codegen_flags: <defaults>
</compile_context>

<pallas_src>
import functools

import numpy as np

import jax
import jax.numpy as jnp
from jax import lax
from jax.experimental import pallas as pl
from jax.experimental.pallas import tpu as pltpu

_VMEM_LIMIT = 32 * 1024 * 1024


# ---------------------------------------------------------------------------
# Kernel 1: pairwise L1 distances between the mean-of-modality hyperedges.
# he = (t + a + v)/3 is a kernel-local value (dead output removed); the reduce
# runs over the leading E axis (VPU adds) instead of the lane axis (XLU).
# The j axis is grid-tiled to bound the (E, B, tj) broadcast intermediate.
# ---------------------------------------------------------------------------
def _pairwise_l1_kernel(t_ref, a_ref, v_ref, dist_ref, *, tj):
    j = pl.program_id(0)
    # hyperedges_list = B0^{-1} H0^T nodes_list = mean over the 3 modalities.
    he = (t_ref[...] + a_ref[...] + v_ref[...]) * (1.0 / 3.0)          # (B, E)
    he_t = he.T                                                        # (E, B)
    start = pl.multiple_of(j * tj, tj)
    he_j = ((t_ref[pl.ds(start, tj), :]
             + a_ref[pl.ds(start, tj), :]
             + v_ref[pl.ds(start, tj), :]) * (1.0 / 3.0)).T            # (E, tj)
    # |he[i] - he[jj]| accumulated over E: leading-axis reduce -> plain VPU adds.
    diff = jnp.abs(he_t[:, :, None] - he_j[:, None, :])                # (E, B, tj)
    dist_ref[...] = jnp.sum(diff, axis=0)                              # (B, tj)


def _pairwise_l1(nodes_t, nodes_a, nodes_v):
    B, E = nodes_t.shape
    tj = 128 if B % 128 == 0 else B          # lane-dense j tile when B allows
    grid = (B // tj,)
    # Node inputs are grid-invariant -> single pipeline buffer.
    node_spec = pl.BlockSpec((B, E), lambda j: (0, 0),
                             pipeline_mode=pl.Buffered(1))
    kernel = functools.partial(_pairwise_l1_kernel, tj=tj)
    return pl.pallas_call(
        kernel,
        out_shape=jax.ShapeDtypeStruct((B, B), jnp.float32),
        grid=grid,
        in_specs=[node_spec, node_spec, node_spec],
        out_specs=pl.BlockSpec((B, tj), lambda j: (0, j)),
        compiler_params=pltpu.CompilerParams(
            dimension_semantics=("parallel",),
            vmem_limit_bytes=_VMEM_LIMIT),
    )(nodes_t, nodes_a, nodes_v)


# ---------------------------------------------------------------------------
# Kernel 2: adjacency = D^{-1} H B^{-1} H^T.  Degrees and both diagonal
# scalings are computed/fused in-kernel; DH / BH_T / degree vectors never hit
# HBM.  Row-tiled MXU matmul with f32 accumulation.
# ---------------------------------------------------------------------------
def _adjacency_kernel(h_row_ref, h_all_ref, adj_ref):
    h_all = h_all_ref[...]                                  # (N, Eh)
    h_row = h_row_ref[...]                                  # (tm, Eh)
    edge_deg = jnp.sum(h_all, axis=0, keepdims=True)        # (1, Eh)
    node_deg = jnp.sum(h_row, axis=1, keepdims=True)        # (tm, 1)
    scaled = h_row / edge_deg                               # fold B^{-1} into LHS
    prod = lax.dot_general(                                 # (tm, N), MXU f32 acc
        scaled, h_all,
        dimension_numbers=(((1,), (1,)), ((), ())),
        preferred_element_type=jnp.float32)
    adj_ref[...] = prod / node_deg                          # fold D^{-1} into rows


def _adjacency(Hb):
    N, Eh = Hb.shape
    # 128-row tiles: native MXU granularity (v5e) and VMEM-safe on v7x;
    # full block when N is not a multiple of 128 (shipped N = 48).
    tm = 128 if N % 128 == 0 else N
    grid = (N // tm,)
    cost = pl.CostEstimate(
        flops=2 * N * N * Eh,
        transcendentals=0,
        bytes_accessed=4 * (N * Eh * 2 + N * N))
    return pl.pallas_call(
        _adjacency_kernel,
        out_shape=jax.ShapeDtypeStruct((N, N), jnp.float32),
        grid=grid,
        in_specs=[
            # H row tile (varies with the grid index -> default double buffer).
            pl.BlockSpec((tm, Eh), lambda i: (i, 0)),
            # Full H (RHS): grid-invariant -> single pipeline buffer.
            pl.BlockSpec((N, Eh), lambda i: (0, 0),
                         pipeline_mode=pl.Buffered(1)),
        ],
        out_specs=pl.BlockSpec((tm, N), lambda i: (i, 0)),
        compiler_params=pltpu.CompilerParams(
            dimension_semantics=("parallel",),
            vmem_limit_bytes=_VMEM_LIMIT),
        cost_estimate=cost,
    )(Hb, Hb)


# ---------------------------------------------------------------------------
# Forward pass (JAX equivalent of HyperedgeConstruction.forward).
# ---------------------------------------------------------------------------
@functools.partial(jax.jit, static_argnames=("k_2",))
def hyperedge_construction(nodes_t, nodes_a, nodes_v, *, k_2):
    B, E = nodes_t.shape
    N = 3 * B

    nodes_list = jnp.concatenate([nodes_t, nodes_a, nodes_v], axis=0)   # (N, E)

    # hyperedges_list = mean over modalities; pairwise L1 distances (fused kernel).
    list_dist = _pairwise_l1(nodes_t, nodes_a, nodes_v)                 # (B, B)

    k2 = min(k_2, B)   # mirrors `if k < self.k_2: self.k_2 = k`

    eye = jnp.eye(B, dtype=jnp.float32)
    H_orig = jnp.concatenate([eye, eye, eye], axis=0)                   # (N, B)

    if k2 > 0:
        # Descending sort -> the k_2 LARGEST distances per row (as in the spec).
        _, idx_max = lax.top_k(list_dist, k2)                           # (B, k2)
        sel = jax.nn.one_hot(idx_max, B, dtype=jnp.float32).sum(axis=1)  # (B, B)
        # New hyperedge i = hyperedge i union its k_2 selected hyperedges.
        # min(.,1) == binarization performed by building the COO with data=ones.
        S = jnp.minimum(eye + sel, 1.0)                                 # (B, B)
        H_new = jnp.concatenate([S.T, S.T, S.T], axis=0)                # (N, B)
        Hb = jnp.concatenate([H_orig, H_new], axis=1)                   # (N, 2B)
    else:
        Hb = H_orig                                                     # (N, B)

    adjacency = _adjacency(Hb)                                          # (N, N)
    return adjacency, nodes_list


# ---------------------------------------------------------------------------
# Pure numpy reference mirroring the PyTorch/scipy code path.
# ---------------------------------------------------------------------------
def _reference(nodes_t, nodes_a, nodes_v, batch_size, k_2):
    nodes_list = np.concatenate([nodes_t, nodes_a, nodes_v], axis=0)
    nodes_num = 3 * batch_size
    H = np.zeros((nodes_num, batch_size), dtype=np.float32)
    for i in range(batch_size):
        H[i, i] = 1.0
        H[i + batch_size, i] = 1.0
        H[i + 2 * batch_size, i] = 1.0
    B0 = np.diag(H.sum(axis=0))
    B_I = np.linalg.inv(B0)
    hyperedges = B_I @ H.T @ nodes_list
    list_dist = np.abs(hyperedges[:, None, :] - hyperedges[None, :, :]).sum(axis=2)
    k = list_dist.shape[0]
    k2 = min(k_2, k)
    idx_sort = np.argsort(-list_dist, axis=1, kind="stable")
    idx_max = idx_sort[:, :k2]
    H_orig = H.copy()
    new_cols = []
    for i in range(batch_size):
        h_new = H_orig[:, i].copy()
        for j in range(k2):
            h_new = h_new + H_orig[:, idx_max[i, j]]
        # torch.clamp_max(h_new, 1.0) discards its result in the original -> no-op.
        # hash(str(.)) dedup == exact equality against an original column.
        if not any(np.array_equal(h_new, H_orig[:, c]) for c in range(batch_size)):
            new_cols.append(h_new[:, None])
    H = np.concatenate([H_orig] + new_cols, axis=1) if new_cols else H_orig
    Hb = (H != 0).astype(np.float32)        # COO built with data = ones at nonzeros
    edge_deg = Hb.sum(axis=0)
    node_deg = Hb.sum(axis=1)
    BH_T = (Hb / edge_deg[None, :]).T       # B^{-1} H^T
    DH = Hb / node_deg[:, None]             # D^{-1} H
    adjacency = (DH @ BH_T).astype(np.float32)
    return adjacency, nodes_list


if __name__ == "__main__":
    # Small shapes implied by the module: batch of B samples, emb_size = 2*dim_capsule.
    batch_size = 16
    dim_capsule = 64
    emb_size = dim_capsule * 2      # 128 -> lane-dense feature axis
    k_2 = 4

    key = jax.random.PRNGKey(0)
    kt, ka, kv = jax.random.split(key, 3)
    nodes_t = jax.random.normal(kt, (batch_size, emb_size), dtype=jnp.float32)
    nodes_a = jax.random.normal(ka, (batch_size, emb_size), dtype=jnp.float32)
    nodes_v = jax.random.normal(kv, (batch_size, emb_size), dtype=jnp.float32)

    adjacency, nodes_list = hyperedge_construction(nodes_t, nodes_a, nodes_v, k_2=k_2)
    adjacency = jax.block_until_ready(adjacency)
    nodes_list = jax.block_until_ready(nodes_list)

    adj_ref, nodes_ref = _reference(
        np.asarray(nodes_t), np.asarray(nodes_a), np.asarray(nodes_v),
        batch_size, k_2)

    N = 3 * batch_size
    assert adjacency.shape == (N, N), adjacency.shape
    assert nodes_list.shape == (N, emb_size), nodes_list.shape
    assert np.allclose(np.asarray(nodes_list), nodes_ref, atol=1e-6), \
        "nodes_list mismatch vs reference"
    assert np.allclose(np.asarray(adjacency), adj_ref, atol=1e-5, rtol=1e-5), \
        "adjacency mismatch vs reference"

    print("KERNEL_OK")
</pallas_src>

<mosaic_0001>
module attributes {stable_mosaic.version = 11 : i64} {
  func.func @_pairwise_l1_kernel(%arg0: i32, %arg1: memref<16x128xf32, #tpu.memory_space<vmem>>, %arg2: memref<16x128xf32, #tpu.memory_space<vmem>>, %arg3: memref<16x128xf32, #tpu.memory_space<vmem>>, %arg4: memref<16x16xf32, #tpu.memory_space<vmem>>) attributes {dimension_semantics = [#tpu.dimension_semantics<parallel>], iteration_bounds = array<i64: 1>, scalar_prefetch = 0 : i64, scratch_operands = 0 : i64, tpu.core_type = #tpu.core_type<tc>, window_params = [{pipeline_mode = #tpu.pipeline_mode<synchronous>, transform_indices = @transform_0, window_bounds = array<i64: 16, 128>}, {pipeline_mode = #tpu.pipeline_mode<synchronous>, transform_indices = @transform_1, window_bounds = array<i64: 16, 128>}, {pipeline_mode = #tpu.pipeline_mode<synchronous>, transform_indices = @transform_2, window_bounds = array<i64: 16, 128>}, {transform_indices = @transform_3, window_bounds = array<i64: 16, 16>}]} {
    %c0 = arith.constant 0 : index
    %c0_0 = arith.constant 0 : index
    %0 = vector.load %arg1[%c0, %c0_0] : memref<16x128xf32, #tpu.memory_space<vmem>>, vector<16x128xf32>
    %c0_1 = arith.constant 0 : index
    %c0_2 = arith.constant 0 : index
    %1 = vector.load %arg2[%c0_1, %c0_2] : memref<16x128xf32, #tpu.memory_space<vmem>>, vector<16x128xf32>
    %2 = arith.addf %0, %1 : vector<16x128xf32>
    %c0_3 = arith.constant 0 : index
    %c0_4 = arith.constant 0 : index
    %3 = vector.load %arg3[%c0_3, %c0_4] : memref<16x128xf32, #tpu.memory_space<vmem>>, vector<16x128xf32>
    %4 = arith.addf %2, %3 : vector<16x128xf32>
    %cst = arith.constant 0.333333343 : f32
    %5 = vector.broadcast %cst : f32 to vector<16x128xf32>
    %6 = arith.mulf %4, %5 : vector<16x128xf32>
    %7 = tpu.transpose %6, [1, 0] : vector<16x128xf32> -> vector<128x16xf32>
    %c16_i32 = arith.constant 16 : i32
    %8 = arith.muli %arg0, %c16_i32 : i32
    %9 = tpu.assume_multiple %8, 16 : i32
    %10 = arith.index_cast %9 : i32 to index
    %c0_5 = arith.constant 0 : index
    %11 = vector.load %arg1[%10, %c0_5] : memref<16x128xf32, #tpu.memory_space<vmem>>, vector<16x128xf32>
    %12 = arith.index_cast %9 : i32 to index
    %c0_6 = arith.constant 0 : index
    %13 = vector.load %arg2[%12, %c0_6] : memref<16x128xf32, #tpu.memory_space<vmem>>, vector<16x128xf32>
    %14 = arith.addf %11, %13 : vector<16x128xf32>
    %15 = arith.index_cast %9 : i32 to index
    %c0_7 = arith.constant 0 : index
    %16 = vector.load %arg3[%15, %c0_7] : memref<16x128xf32, #tpu.memory_space<vmem>>, vector<16x128xf32>
    %17 = arith.addf %14, %16 : vector<16x128xf32>
    %cst_8 = arith.constant 0.333333343 : f32
    %18 = vector.broadcast %cst_8 : f32 to vector<16x128xf32>
    %19 = arith.mulf %17, %18 : vector<16x128xf32>
    %20 = tpu.transpose %19, [1, 0] : vector<16x128xf32> -> vector<128x16xf32>
    %21 = vector.shape_cast %7 : vector<128x16xf32> to vector<128x16x1xf32>
    %22 = vector.shape_cast %20 : vector<128x16xf32> to vector<128x1x16xf32>
    %23 = vector.broadcast %21 : vector<128x16x1xf32> to vector<128x16x16xf32>
    %24 = vector.broadcast %22 : vector<128x1x16xf32> to vector<128x16x16xf32>
    %25 = arith.subf %23, %24 : vector<128x16x16xf32>
    %26 = math.absf %25 : vector<128x16x16xf32>
    %cst_9 = arith.constant dense<0.000000e+00> : vector<16x16xf32>
    %27 = vector.multi_reduction <add>, %26, %cst_9 [0] : vector<128x16x16xf32> to vector<16x16xf32>
    %c0_10 = arith.constant 0 : index
    %c0_11 = arith.constant 0 : index
    %28 = vector.load %arg4[%c0_10, %c0_11] : memref<16x16xf32, #tpu.memory_space<vmem>>, vector<16x16xf32>
    tpu.vector_store %arg4[%c0_10, %c0_11], %27 {strides = array<i32>} : memref<16x16xf32, #tpu.memory_space<vmem>>, vector<16x16xf32>,
    return
  }
  func.func @transform_0(%arg0: i32) -> (i32, i32) {
    %c0_i32 = arith.constant 0 : i32
    %c0_i32_0 = arith.constant 0 : i32
    %c0_i32_1 = arith.constant 0 : i32
    return %c0_i32, %c0_i32_0 : i32, i32
  }
  func.func @transform_1(%arg0: i32) -> (i32, i32) {
    %c0_i32 = arith.constant 0 : i32
    %c0_i32_0 = arith.constant 0 : i32
    %c0_i32_1 = arith.constant 0 : i32
    return %c0_i32, %c0_i32_0 : i32, i32
  }
  func.func @transform_2(%arg0: i32) -> (i32, i32) {
    %c0_i32 = arith.constant 0 : i32
    %c0_i32_0 = arith.constant 0 : i32
    %c0_i32_1 = arith.constant 0 : i32
    return %c0_i32, %c0_i32_0 : i32, i32
  }
  func.func @transform_3(%arg0: i32) -> (i32, i32) {
    %c0_i32 = arith.constant 0 : i32
    %c0_i32_0 = arith.constant 0 : i32
    return %c0_i32, %arg0 : i32, i32
  }
}

module attributes {stable_mosaic.version = 11 : i64} {
  func.func @_adjacency_kernel(%arg0: i32, %arg1: memref<48x32xf32, #tpu.memory_space<vmem>>, %arg2: memref<48x32xf32, #tpu.memory_space<vmem>>, %arg3: memref<48x48xf32, #tpu.memory_space<vmem>>) attributes {dimension_semantics = [#tpu.dimension_semantics<parallel>], iteration_bounds = array<i64: 1>, scalar_prefetch = 0 : i64, scratch_operands = 0 : i64, tpu.core_type = #tpu.core_type<tc>, window_params = [{transform_indices = @transform_0, window_bounds = array<i64: 48, 32>}, {pipeline_mode = #tpu.pipeline_mode<synchronous>, transform_indices = @transform_1, window_bounds = array<i64: 48, 32>}, {transform_indices = @transform_2, window_bounds = array<i64: 48, 48>}]} {
    %c0 = arith.constant 0 : index
    %c0_0 = arith.constant 0 : index
    %0 = vector.load %arg2[%c0, %c0_0] : memref<48x32xf32, #tpu.memory_space<vmem>>, vector<48x32xf32>
    %c0_1 = arith.constant 0 : index
    %c0_2 = arith.constant 0 : index
    %1 = vector.load %arg1[%c0_1, %c0_2] : memref<48x32xf32, #tpu.memory_space<vmem>>, vector<48x32xf32>
    %cst = arith.constant dense<0.000000e+00> : vector<32xf32>
    %2 = vector.multi_reduction <add>, %0, %cst [0] : vector<48x32xf32> to vector<32xf32>
    %3 = vector.shape_cast %2 : vector<32xf32> to vector<1x32xf32>
    %cst_3 = arith.constant dense<0.000000e+00> : vector<48xf32>
    %4 = vector.multi_reduction <add>, %1, %cst_3 [1] : vector<48x32xf32> to vector<48xf32>
    %5 = vector.shape_cast %4 : vector<48xf32> to vector<48x1xf32>
    %6 = vector.broadcast %3 : vector<1x32xf32> to vector<48x32xf32>
    %7 = arith.divf %1, %6 : vector<48x32xf32>
    %cst_4 = arith.constant dense<0.000000e+00> : vector<48x48xf32>
    %8 = tpu.matmul %7, %0, %cst_4 {dimension_numbers = #tpu.dot_dimension_numbers<[1], [1], [0], [0], [0, 0, 1, 0], [], []>} : vector<48x32xf32>, vector<48x32xf32>, vector<48x48xf32> -> vector<48x48xf32>
    %9 = vector.broadcast %5 : vector<48x1xf32> to vector<48x48xf32>
    %10 = arith.divf %8, %9 : vector<48x48xf32>
    %c0_5 = arith.constant 0 : index
    %c0_6 = arith.constant 0 : index
    %11 = vector.load %arg3[%c0_5, %c0_6] : memref<48x48xf32, #tpu.memory_space<vmem>>, vector<48x48xf32>
    tpu.vector_store %arg3[%c0_5, %c0_6], %10 {strides = array<i32>} : memref<48x48xf32, #tpu.memory_space<vmem>>, vector<48x48xf32>,
    return
  }
  func.func @transform_0(%arg0: i32) -> (i32, i32) {
    %c0_i32 = arith.constant 0 : i32
    %c0_i32_0 = arith.constant 0 : i32
    return %arg0, %c0_i32 : i32, i32
  }
  func.func @transform_1(%arg0: i32) -> (i32, i32) {
    %c0_i32 = arith.constant 0 : i32
    %c0_i32_0 = arith.constant 0 : i32
    %c0_i32_1 = arith.constant 0 : i32
    return %c0_i32, %c0_i32_0 : i32, i32
  }
  func.func @transform_2(%arg0: i32) -> (i32, i32) {
    %c0_i32 = arith.constant 0 : i32
    %c0_i32_0 = arith.constant 0 : i32
    return %arg0, %c0_i32 : i32, i32
  }
}

</mosaic_0001>

<bundles_post_ra>
// kernel: hyperedge_construction.3
= control target key start
LH: loop header
LB: loop body
LE: loop exit
PB: predicated region body
PF: predicated region fallthrough
CT: control target
= control target key end

     0   :  { %vm24_vm0 = vcmask 261120   ;;  %s552_s0 = inlined_call_operand.vmem [shape: f32[48,32], index: 0, kind: input, shape index: {}, may-alias: {0,1}]   ;;  %s553_s1 = inlined_call_operand.vmem [shape: f32[48,32], index: 1, kind: input, shape index: {}, may-alias: {0,1}]   ;;  %s554_s2 = inlined_call_operand.hbm [shape: f32[48,48], index: 2, kind: output, shape index: {}]  }
   0x1   :  { %v17_v0 = vld [vmem:[%s553_s1 + $0x28] sm:$0xff]  ;;  %v15_v1 = vld [vmem:[%s553_s1 + $0x18] sm:$0xff]  ;;  %v368_v2 = vld [vmem:[%s552_s0 + $0x20] sm:$0xff] }
   0x2   :  { %266 = vmatpush.xpose.msk.msra.mxu0 %vm24_vm0, %v17_v0  ;;  %279 = vmatpush.xpose.msk.msra.mxu2 %vm24_vm0, %v17_v0  ;;  %v12_v3 = vld [vmem:[%s553_s1] sm:$0xff]  ;;  %v13_v4 = vld [vmem:[%s553_s1 + $0x8] sm:$0xff]  ;;  %v54_v5 = vsel %vm24_vm0, %v368_v2, 0.0  ;;  %v14_v6 = vld [vmem:[%s553_s1 + $0x10] sm:$0xff] }
   0x3   :  { %280 = vmatpush.xpose.msk.msra.mxu3 %vm24_vm0, %v17_v0  ;;  %278 = vmatpush.xpose.msk.msra.mxu1 %vm24_vm0, %v17_v0  ;;  %v25_v7 = vsel %vm24_vm0, %v12_v3, 0.0  ;;  %v26_v8 = vsel %vm24_vm0, %v13_v4, 0.0  ;;  %v388_v9 = vld [vmem:[%s552_s0 + $0x10] sm:$0xff]  ;;  %v393_v10 = vld [vmem:[%s552_s0] sm:$0xff]  ;;  %v28_v13 = vsel %vm24_vm0, %v14_v6, 0.0 }
   0x4   :  { %v16_v11 = vld [vmem:[%s553_s1 + $0x20] sm:$0xff]  ;;  %55 = vadd.xlane.f32.xlu2 %v54_v5  ;;  %v27_v12 = vadd.f32 %v26_v8, %v25_v7  ;;  %v48_v14 = vsel %vm24_vm0, %v388_v9, 0.0  ;;  %v42_v15 = vsel %vm24_vm0, %v393_v10, 0.0 }
   0x5   :  { %7 = vsyncpa [#allocation3], 0  ;;  %v30_v16 = vsel %vm24_vm0, %v15_v1, 0.0  ;;  %49 = vadd.xlane.f32.xlu1 %v48_v14  ;;  %43 = vadd.xlane.f32.xlu0 %v42_v15  ;;  %v23_v18 = vld [vmem:[%s552_s0 + $0x28] sm:$0xff]  ;;  %v32_v19 = vsel %vm24_vm0, %v16_v11, 0.0  ;;  %v21_v20 = vld [vmem:[%s552_s0 + $0x18] sm:$0xff] }
   0x6   :  { %267 = vmatpush.xpose.msk.msra.mxu0 %vm24_vm0, %v16_v11  ;;  %282 = vmatpush.xpose.msk.msra.mxu2 %vm24_vm0, %v16_v11  ;;  %v29_v17 = vadd.f32 %v28_v13, %v27_v12  ;;  %v19_v21 = vld [vmem:[%s552_s0 + $0x8] sm:$0xff]  ;;  %v34_v23 = vsel %vm24_vm0, %v17_v0, 0.0  ;;  %v57_v24 = vsel %vm24_vm0, %v23_v18, 0.0  ;;  %v51_v26 = vsel %vm24_vm0, %v21_v20, 0.0  ;;  %s339_s0 = smov [#allocation2]   ;;  %s254_s7 = sshll.u32 %s554_s2, 4  ;;  %s255_s7 = int_to_ptr.hbm [resolvable:$true] %s254_s7 }
   0x7   :  { %283 = vmatpush.xpose.msk.msra.mxu3 %vm24_vm0, %v16_v11  ;;  %281 = vmatpush.xpose.msk.msra.mxu1 %vm24_vm0, %v16_v11  ;;  %v45_v27 = vsel %vm24_vm0, %v19_v21, 0.0  ;;  %s252_s4 = sshll.u32 %s339_s0, 4  ;;  %s340_s8 = smov 128   ;;  %s253_s4 = int_to_ptr.vmem [resolvable:$true] %s252_s4 }
   0x8   :  { %v31_v22 = vadd.f32 %v30_v16, %v29_v17  ;;  %s341_s9 = smov 8  }
   0xa   :  { %268 = vmatpush.xpose.msk.msra.mxu0 %vm24_vm0, %v15_v1  ;;  %285 = vmatpush.xpose.msk.msra.mxu2 %vm24_vm0, %v15_v1  ;;  %v33_v25 = vadd.f32 %v32_v19, %v31_v22 }
   0xb   :  { %286 = vmatpush.xpose.msk.msra.mxu3 %vm24_vm0, %v15_v1  ;;  %284 = vmatpush.xpose.msk.msra.mxu1 %vm24_vm0, %v15_v1 }
   0xc   :  { %v35_v28 = vadd.f32 %v34_v23, %v33_v25  ;;  %58 = vadd.xlane.f32.xlu2 %v57_v24 }
   0xd   :  { %52 = vadd.xlane.f32.xlu1 %v51_v26  ;;  %46 = vadd.xlane.f32.xlu0 %v45_v27 }
   0xe   :  { %v36_v29 = vrot.slane %v35_v28, 4  ;;  %269 = vmatpush.xpose.msk.msra.mxu0 %vm24_vm0, %v14_v6  ;;  %288 = vmatpush.xpose.msk.msra.mxu2 %vm24_vm0, %v14_v6 }
   0xf   :  { %289 = vmatpush.xpose.msk.msra.mxu3 %vm24_vm0, %v14_v6  ;;  %287 = vmatpush.xpose.msk.msra.mxu1 %vm24_vm0, %v14_v6 }
  0x10   :  { %v37_v30 = vadd.f32 %v36_v29, %v35_v28 }
  0x12   :  { %v38_v31 = vrot.slane %v37_v30, 2  ;;  %270 = vmatpush.xpose.msk.msra.mxu0 %vm24_vm0, %v13_v4  ;;  %291 = vmatpush.xpose.msk.msra.mxu2 %vm24_vm0, %v13_v4 }
  0x13   :  { %292 = vmatpush.xpose.msk.msra.mxu3 %vm24_vm0, %v13_v4  ;;  %290 = vmatpush.xpose.msk.msra.mxu1 %vm24_vm0, %v13_v4 }
  0x14   :  { %v39_v32 = vadd.f32 %v38_v31, %v37_v30 }
  0x16   :  { %v40_v33 = vrot.slane %v39_v32, 1  ;;  %271 = vmatpush.xpose.msk.msra.mxu0 %vm24_vm0, %v12_v3  ;;  %294 = vmatpush.xpose.msk.msra.mxu2 %vm24_vm0, %v12_v3 }
  0x17   :  { %295 = vmatpush.xpose.msk.msra.mxu3 %vm24_vm0, %v12_v3  ;;  %293 = vmatpush.xpose.msk.msra.mxu1 %vm24_vm0, %v12_v3 }
  0x18   :  { %v41_v34 = vadd.f32 %v40_v33, %v39_v32 }
  0x1a   :  { %299 = vrcp.f32 %v41_v34  ;;  %v71_v37 = vand.u32 2147483648, %v41_v34  ;;  %vm65_vm1 = vweird.f32 %v41_v34  ;;  %v69_v39 = vand.u32 2147483647, %v41_v34 }
  0x1c   :  { %v72_v41 = vor.u32 1.1754944e-38, %v71_v37  ;;  %vm70_vm4 = vcmp.eq.f32.partialorder %v69_v39, 8.507059e+37 }
  0x20   :  { %v300_v35 = vpop.eup %299 }
  0x21   :  { %v61_v36 = vmul.f32 %v300_v35, %v41_v34  ;;  %vm66_vm2 = vweird.f32 %v300_v35 }
  0x22   :  { %vm67_vm3 = vmor %vm65_vm1, %vm66_vm2  ;;  %vm241_vm1 = vcmask 392192  }
  0x23   :  { %v62_v38 = vsub.f32 1.0, %v61_v36 }
  0x25   :  { %v63_v40 = vmul.f32 %v300_v35, %v62_v38 }
  0x27   :  { %v64_v42 = vadd.f32 %v300_v35, %v63_v40 }
  0x29   :  { %v68_v43 = vsel %vm67_vm3, %v300_v35, %v64_v42 }
  0x2a   :  { %v73_v44 = vsel %vm70_vm4, %v72_v41, %v68_v43 }
  0x2b   :  { %v78_v45 = vmul.f32 %v73_v44, %v368_v2  ;;  %v76_v46 = vmul.f32 %v73_v44, %v388_v9  ;;  %v74_v47 = vmul.f32 %v73_v44, %v393_v10  ;;  %v75_v48 = vmul.f32 %v73_v44, %v19_v21 }
  0x2c   :  { %v77_v49 = vmul.f32 %v73_v44, %v21_v20  ;;  %v79_v50 = vmul.f32 %v73_v44, %v23_v18 }
  0x2d   :  { %272 = vmatmul.msk.f32.vlgmr.msra.gmra.mxu0 %vm24_vm0, %v74_v47  ;;  %274 = vmatmul.msk.f32.vlgmr.msra.gmra.mxu2 %vm24_vm0, %v76_v46 }
  0x2e   :  { %276 = vmatmul.msk.f32.vlgmr.msra.gmra.mxu3 %vm24_vm0, %v78_v45  ;;  %273 = vmatmul.msk.f32.vlgmr.msra.gmra.mxu1 %vm24_vm0, %v75_v48 }
  0x35   :  { %275 = vmatmul.msk.f32.gmra.mxu2 %vm24_vm0, %v77_v49 }
  0x36   :  { %277 = vmatmul.msk.f32.gmra.mxu3 %vm24_vm0, %v79_v50 }
  0x77   :  { %v449_v54 = vpop.xlane.xlu2 %55 }
  0x78   :  { %v44_v51 = vpop.xlane.xlu0 %43  ;;  %v447_v53 = vpop.xlane.xlu1 %49  ;;  %vm216_vm15 = vweird.f32 %v449_v54  ;;  %v222_v31 = vand.u32 2147483648, %v449_v54  ;;  %v220_v36 = vand.u32 2147483647, %v449_v54 }
  0x79   :  { %vm156_vm7 = vweird.f32 %v44_v51  ;;  %v162_v9 = vand.u32 2147483648, %v44_v51  ;;  %v160_v14 = vand.u32 2147483647, %v44_v51  ;;  %vm186_vm11 = vweird.f32 %v447_v53 }
  0x7a   :  { %v190_v25 = vand.u32 2147483647, %v447_v53  ;;  %v192_v27 = vand.u32 2147483648, %v447_v53  ;;  %v223_v44 = vor.u32 1.1754944e-38, %v222_v31 }
  0x7b   :  { %v163_v22 = vor.u32 1.1754944e-38, %v162_v9  ;;  %vm161_vm13 = vcmp.eq.f32.partialorder %v160_v14, 8.507059e+37 }
  0x7c   :  { %v193_v41 = vor.u32 1.1754944e-38, %v192_v27  ;;  %vm191_vm4 = vcmp.eq.f32.partialorder %v190_v25, 8.507059e+37 }
  0x7f   :  { %v459_v62 = vpop.xlane.xlu2 %58 }
  0x80   :  { %v47_v52 = vpop.xlane.xlu0 %46  ;;  %v455_v60 = vpop.xlane.xlu1 %52  ;;  %v237_v47 = vand.u32 2147483648, %v459_v62 }
  0x81   :  { %301 = vrcp.f32 %v47_v52  ;;  %vm171_vm5 = vweird.f32 %v47_v52  ;;  %v177_v7 = vand.u32 2147483648, %v47_v52  ;;  %v175_v11 = vand.u32 2147483647, %v47_v52 }
  0x82   :  { %303 = vrcp.f32 %v44_v51  ;;  %v207_v48 = vand.u32 2147483648, %v455_v60 }
  0x83   :  { %305 = vrcp.f32 %v447_v53  ;;  %v178_v19 = vor.u32 1.1754944e-38, %v177_v7  ;;  %vm176_vm12 = vcmp.eq.f32.partialorder %v175_v11, 8.507059e+37 }
  0x84   :  { %307 = vrcp.f32 %v449_v54 }
  0x85   :  { %309 = vrcp.f32 %v455_v60 }
  0x86   :  { %311 = vrcp.f32 %v459_v62 }
  0x87   :  { %v302_v55 = vpop.eup %301 }
  0x88   :  { %v304_v56 = vpop.eup %303  ;;  %v167_v57 = vmul.f32 %v302_v55, %v47_v52  ;;  %vm172_vm6 = vweird.f32 %v302_v55 }
  0x89   :  { %v152_v58 = vmul.f32 %v304_v56, %v44_v51  ;;  %v453_v59 = vpop.eup %305  ;;  %vm157_vm8 = vweird.f32 %v304_v56  ;;  %vm471_vm9 = vmor %vm171_vm5, %vm172_vm6  ;;  %vm221_vm5 = vcmp.eq.f32.partialorder %v220_v36, 8.507059e+37  ;;  %vm231_vm6 = vweird.f32 %v459_v62 }
  0x8a   :  { %v457_v61 = vpop.eup %307  ;;  %v168_v63 = vsub.f32 1.0, %v167_v57  ;;  %v182_v1 = vmul.f32 %v453_v59, %v447_v53  ;;  %vm475_vm10 = vmor %vm156_vm7, %vm157_vm8  ;;  %vm187_vm14 = vweird.f32 %v453_v59  ;;  %vm201_vm7 = vweird.f32 %v455_v60 }
  0x8b   :  { %v153_v0 = vsub.f32 1.0, %v152_v58  ;;  %v212_v2 = vmul.f32 %v457_v61, %v449_v54  ;;  %v467_v8 = vpop.eup %309  ;;  %vm217_vm0 = vweird.f32 %v457_v61  ;;  %vm500_vm2 = vmor %vm186_vm11, %vm187_vm14 }
  0x8c   :  { %v169_v3 = vmul.f32 %v302_v55, %v168_v63  ;;  %v183_v5 = vsub.f32 1.0, %v182_v1  ;;  %v469_v12 = vpop.eup %311  ;;  %v197_v18 = vmul.f32 %v467_v8, %v455_v60  ;;  %vm505_vm3 = vmor %vm216_vm15, %vm217_vm0  ;;  %vm202_vm8 = vweird.f32 %v467_v8 }
  0x8d   :  { %v154_v4 = vmul.f32 %v304_v56, %v153_v0  ;;  %v213_v6 = vsub.f32 1.0, %v212_v2  ;;  %v227_v21 = vmul.f32 %v469_v12, %v459_v62  ;;  %v238_v0 = vor.u32 1.1754944e-38, %v237_v47 }
  0x8e   :  { %v170_v10 = vadd.f32 %v302_v55, %v169_v3  ;;  %v184_v17 = vmul.f32 %v453_v59, %v183_v5  ;;  %v198_v28 = vsub.f32 1.0, %v197_v18 }
  0x8f   :  { %v155_v13 = vadd.f32 %v304_v56, %v154_v4  ;;  %v214_v20 = vmul.f32 %v457_v61, %v213_v6  ;;  %v228_v32 = vsub.f32 1.0, %v227_v21 }
  0x90   :  { %v174_v23 = vsel %vm471_vm9, %v302_v55, %v170_v10  ;;  %v185_v26 = vadd.f32 %v453_v59, %v184_v17  ;;  %v199_v42 = vmul.f32 %v467_v8, %v198_v28  ;;  %vm232_vm9 = vweird.f32 %v469_v12 }
  0x91   :  { %v159_v24 = vsel %vm475_vm10, %v304_v56, %v155_v13  ;;  %v179_v29 = vsel %vm176_vm12, %v178_v19, %v174_v23  ;;  %v215_v30 = vadd.f32 %v457_v61, %v214_v20  ;;  %v229_v45 = vmul.f32 %v469_v12, %v228_v32  ;;  %vm527_vm10 = vmor %vm201_vm7, %vm202_vm8 }
  0x92   :  { %v164_v34 = vsel %vm161_vm13, %v163_v22, %v159_v24  ;;  %v189_v43 = vsel %vm500_vm2, %v453_v59, %v185_v26  ;;  %v200_v54 = vadd.f32 %v467_v8, %v199_v42  ;;  %v205_v55 = vand.u32 2147483647, %v455_v60  ;;  %vm536_vm11 = vmor %vm231_vm6, %vm232_vm9 }
  0x93   :  { %v219_v46 = vsel %vm505_vm3, %v457_v61, %v215_v30  ;;  %v194_v50 = vsel %vm191_vm4, %v193_v41, %v189_v43  ;;  %v230_v58 = vadd.f32 %v469_v12, %v229_v45  ;;  %v235_v59 = vand.u32 2147483647, %v459_v62 }
  0x94   :  { %v224_v53 = vsel %vm221_vm5, %v223_v44, %v219_v46  ;;  %v208_v60 = vor.u32 1.1754944e-38, %v207_v48  ;;  %v204_v63 = vsel %vm527_vm10, %v467_v8, %v200_v54  ;;  %vm206_vm12 = vcmp.eq.f32.partialorder %v205_v55, 8.507059e+37 }
  0x95   :  { %v234_v1 = vsel %vm536_vm11, %v469_v12, %v230_v58  ;;  %vm236_vm13 = vcmp.eq.f32.partialorder %v235_v59, 8.507059e+37 }
  0x96   :  { %v209_v2 = vsel %vm206_vm12, %v208_v60, %v204_v63  ;;  %v239_v5 = vsel %vm236_vm13, %v238_v0, %v234_v1 }
  0xaa   :  { %v133_v33 = vpop.f32.mrf.mxu0 }
  0xab   :  { %v165_v37 = vmul.f32 %v164_v34, %v133_v33  ;;  %v136_v38 = vpop.f32.mrf.mxu1 }
  0xac   :  { %v180_v40 = vmul.f32 %v179_v29, %v136_v38 }
  0xad   :  { %242 = vst.msk [vmem:[#allocation2] sm:$0xff] %vm241_vm1, %v165_v37 }
  0xae   :  { %243 = vst.msk [vmem:[#allocation2 + $0x8] sm:$0xff] %vm241_vm1, %v180_v40 }
  0xb0   :  { %v139_v49 = vpop.f32.mrf.mxu2 }
  0xb1   :  { %v195_v51 = vmul.f32 %v194_v50, %v139_v49  ;;  %v145_v52 = vpop.f32.mrf.mxu3 }
  0xb2   :  { %v225_v56 = vmul.f32 %v224_v53, %v145_v52 }
  0xb3   :  { %244 = vst.msk [vmem:[#allocation2 + $0x10] sm:$0xff] %vm241_vm1, %v195_v51 }
  0xb4   :  { %246 = vst.msk [vmem:[#allocation2 + $0x20] sm:$0xff] %vm241_vm1, %v225_v56 }
  0xb8   :  { %v142_v62 = vpop.f32.mrf.mxu2 }
  0xb9   :  { %v210_v3 = vmul.f32 %v209_v2, %v142_v62  ;;  %v148_v4 = vpop.f32.mrf.mxu3 }
  0xba   :  { %v240_v6 = vmul.f32 %v239_v5, %v148_v4 }
  0xbb   :  { %245 = vst.msk [vmem:[#allocation2 + $0x18] sm:$0xff] %vm241_vm1, %v210_v3 }
  0xbc   :  { %247 = vst.msk [vmem:[#allocation2 + $0x28] sm:$0xff] %vm241_vm1, %v240_v6 }
  0xbd   :  { %260 = dma.vmem_to_hbm [thread:$0]  %s253_s4, 768, %s255_s7, [#allocation3], %s340_s8, %s340_s8, %s341_s9  }
  0xbe   :  { %337 = dma.done.wait [#allocation3], 768  }
  0xbf   :  { %338 = vsyncadd [#allocation3], 4294966528 }
  0xc0   :  { %265 = vsyncpa [#allocation3], 1 }

// kernel: hyperedge_construction.2
= control target key start
LH: loop header
LB: loop body
LE: loop exit
PB: predicated region body
PF: predicated region fallthrough
CT: control target
= control target key end

     0   :  { %8 = vsyncpa [#allocation3], 0  ;;  %s5164_s0 = inlined_call_operand.vmem [shape: f32[16,128], index: 0, kind: input, shape index: {}]   ;;  %s5165_s1 = inlined_call_operand.hbm [shape: f32[16,128], index: 1, kind: input, shape index: {}]   ;;  %s5166_s2 = inlined_call_operand.hbm [shape: f32[16,128], index: 2, kind: input, shape index: {}]   ;;  %s5167_s3 = inlined_call_operand.vmem [shape: f32[16,16], index: 3, kind: output, shape index: {}]  }
   0x1   :  { %s16_s14 = sshll.u32 %s5165_s1, 4  ;;  %s17_s14 = int_to_ptr.hbm [resolvable:$true] %s16_s14 }
   0x2   :  { %9 = vsyncpa [#allocation5], 0  ;;  %s3396_s15 = smov [#allocation2]   ;;  %s29_s19 = sshll.u32 %s5166_s2, 4  ;;  %s30_s19 = int_to_ptr.hbm [resolvable:$true] %s29_s19 }
   0x3   :  { %s18_s16 = sshll.u32 %s3396_s15, 4  ;;  %s3397_s20 = smov 128   ;;  %s19_s16 = int_to_ptr.vmem [resolvable:$true] %s18_s16 }
   0x4   :  { %s3398_s21 = smov 8   ;;  %s3399_s22 = smov [#allocation4]  }
   0x5   :  { %24 = dma.hbm_to_vmem [thread:$0]  %s17_s14, 256, %s19_s16, [#allocation3], %s3397_s20, %s3397_s20, %s3398_s21  }
   0x6   :  { %s31_s23 = sshll.u32 %s3399_s22, 4  ;;  %s32_s23 = int_to_ptr.vmem [resolvable:$true] %s31_s23 }
   0x7   :  { %37 = dma.hbm_to_vmem [thread:$0]  %s30_s19, 256, %s32_s23, [#allocation5], %s3397_s20, %s3397_s20, %s3398_s21  }
   0x8   :  { %3392 = dma.done.wait [#allocation3], 256  }
   0x9   :  { %3393 = vsyncadd [#allocation3], 4294967040 }
   0xa   :  { %3394 = dma.done.wait [#allocation5], 256  }
   0xb   :  { %3395 = vsyncadd [#allocation5], 4294967040  ;;  %v139_v0 = vlaneseq  ;;  %v92_v2 = vld [vmem:[%s5164_s0] sm:$0xff]  ;;  %v100_v4 = vld [vmem:[#allocation4] sm:$0xff]  ;;  %vm2698_vm0 = vcmask 130048  }
   0xc   :  { %v95_v3 = vld [vmem:[#allocation2] sm:$0xff]  ;;  %v93_v6 = vld [vmem:[%s5164_s0 + $0x8] sm:$0xff]  ;;  %v101_v10 = vld [vmem:[#allocation4 + $0x8] sm:$0xff] }
   0xd   :  { %v3426_v1 = vshrl.u32 %v139_v0, 7  ;;  %v97_v5 = vadd.f32 %v95_v3, %v92_v2  ;;  %v96_v7 = vld [vmem:[#allocation2 + $0x8] sm:$0xff] }
   0xe   :  { %v98_v9 = vadd.f32 %v96_v7, %v93_v6 }
   0xf   :  { %3222 = vset.pattern.permute.xlu2 %v3426_v1  ;;  %v102_v8 = vadd.f32 %v100_v4, %v97_v5  ;;  %v3437_v14 = vadd.s32 8, %v3426_v1 }
  0x10   :  { %v103_v12 = vadd.f32 %v101_v10, %v98_v9 }
  0x11   :  { %v104_v11 = vmul.f32 0.33333334, %v102_v8 }
  0x12   :  { %v105_v13 = vmul.f32 0.33333334, %v103_v12 }
  0x13   :  { %106 = vxpose.xlu1.b32.start [1/2] (short) %v104_v11, 128  ;;  %58 = vxpose.xlu0.b32.start [1/2] (short) %v104_v11, 128 }
  0x1b   :  { %107 = vxpose.xlu1.b32.end [2/2] (short) %v105_v13, 128  ;;  %59 = vxpose.xlu0.b32.end [2/2] (short) %v105_v13, 128 }
  0x6e   :  { %3225 = vset.pattern.permute.xlu1 %v3437_v14 }
  0x82   :  { %3224 = vset.pattern.permute.xlu0 %v3426_v1 }
  0xb7   :  { %v3440_v15 = vpop.trf.xlu0 }
  0xb8   :  { %v138_v16 = vperm.slane %v3440_v15, 0  ;;  %v164_v17 = vperm.slane %v3440_v15, 2  ;;  %v151_v18 = vperm.slane %v3440_v15, 1  ;;  %v177_v22 = vperm.slane %v3440_v15, 3 }
  0xb9   :  { %v190_v26 = vperm.slane %v3440_v15, 4  ;;  %v203_v30 = vperm.slane %v3440_v15, 5  ;;  %v216_v34 = vperm.slane %v3440_v15, 6  ;;  %v229_v38 = vperm.slane %v3440_v15, 7 }
  0xba   :  { %143 = vperm.xlu2 %3222, %v138_v16  }
  0xbf   :  { %v3448_v19 = vpop.trf.xlu0 }
  0xc0   :  { %v333_v20 = vperm.slane %v3448_v19, 7  ;;  %v242_v43 = vperm.slane %v3448_v19, 0  ;;  %v255_v47 = vperm.slane %v3448_v19, 1  ;;  %v268_v56 = vperm.slane %v3448_v19, 2 }
  0xc1   :  { %v281_v3 = vperm.slane %v3448_v19, 3 }
  0xc2   :  { %3223 = vset.pattern.permute.xlu2 %v3437_v14 }
  0xc7   :  { %v3455_v21 = vpop.trf.xlu0 }
  0xc8   :  { %v346_v23 = vperm.slane %v3455_v21, 0  ;;  %v359_v24 = vperm.slane %v3455_v21, 1  ;;  %v372_v25 = vperm.slane %v3455_v21, 2  ;;  %v385_v27 = vperm.slane %v3455_v21, 3 }
  0xc9   :  { %v411_v28 = vperm.slane %v3455_v21, 5  ;;  %v424_v29 = vperm.slane %v3455_v21, 6  ;;  %v437_v31 = vperm.slane %v3455_v21, 7  ;;  %v398_v46 = vperm.slane %v3455_v21, 4 }
  0xca   :  { %149 = vperm.xlu2 %3223, %v138_v16  }
  0xcf   :  { %v3489_v32 = vpop.trf.xlu0 }
  0xd0   :  { %v450_v33 = vperm.slane %v3489_v32, 0  ;;  %v5203_v35 = vperm.slane %v3489_v32, 2  ;;  %v489_v36 = vperm.slane %v3489_v32, 3  ;;  %v5201_v37 = vperm.slane %v3489_v32, 4 }
  0xd1   :  { %v5200_v39 = vperm.slane %v3489_v32, 5  ;;  %v5198_v40 = vperm.slane %v3489_v32, 7  ;;  %v463_v49 = vperm.slane %v3489_v32, 1  ;;  %v5199_v51 = vperm.slane %v3489_v32, 6 }
  0xd2   :  { %3226 = vset.pattern.permute.xlu2 %v3426_v1 }
  0xd7   :  { %v3518_v41 = vpop.trf.xlu0 }
  0xd8   :  { %v554_v42 = vperm.slane %v3518_v41, 0  ;;  %v5196_v44 = vperm.slane %v3518_v41, 1  ;;  %v5195_v45 = vperm.slane %v3518_v41, 2  ;;  %v5192_v48 = vperm.slane %v3518_v41, 4 }
  0xd9   :  { %v619_v50 = vperm.slane %v3518_v41, 5  ;;  %v5194_v52 = vperm.slane %v3518_v41, 3  ;;  %v5191_v53 = vperm.slane %v3518_v41, 6  ;;  %v5189_v57 = vperm.slane %v3518_v41, 7 }
  0xda   :  { %169 = vperm.xlu2 %3226, %v164_v17  }
  0xdf   :  { %v3557_v54 = vpop.trf.xlu0 }
  0xe0   :  { %v5188_v55 = vperm.slane %v3557_v54, 0  ;;  %v5181_v58 = vperm.slane %v3557_v54, 5  ;;  %v5187_v61 = vperm.slane %v3557_v54, 1  ;;  %v684_v0 = vperm.slane %v3557_v54, 2 }
  0xe1   :  { %v5183_v7 = vperm.slane %v3557_v54, 3  ;;  %v5182_v11 = vperm.slane %v3557_v54, 4 }
  0xe2   :  { %3227 = vset.pattern.permute.xlu2 %v3437_v14 }
  0xe5   :  { %162 = vperm.xlu1 %3225, %v151_v18  }
  0xe7   :  { %v3572_v59 = vpop.trf.xlu0 }
  0xe8   :  { %v5176_v60 = vperm.slane %v3572_v59, 2  ;;  %v5175_v62 = vperm.slane %v3572_v59, 7 }
  0xea   :  { %175 = vperm.xlu2 %3227, %v164_v17  }
  0xed   :  { %3252 = vset.pattern.permute.xlu1 %v3426_v1 }
  0xef   :  { %v3585_v63 = vpop.trf.xlu0 }
  0xf0   :  { %v5174_v2 = vperm.slane %v3585_v63, 4 }
  0xf2   :  { %3228 = vset.pattern.permute.xlu2 %v3426_v1 }
  0xf5   :  { %338 = vperm.xlu1 %3252, %v333_v20  }
  0xf7   :  { %v3595_v4 = vpop.trf.xlu0 }
  0xf8   :  { %5292 = vst [vmem:[#allocation8_spill] sm:$0xff] %v3595_v4  ;;  %v5173_v5 = vperm.slane %v3595_v4, 1  ;;  %v5172_v8 = vperm.slane %v3595_v4, 6 }
  0xf9   :  { %156 = vperm.xlu0 %3224, %v151_v18   ;;  %v294_v18 = vperm.slane %v3448_v19, 4 }
  0xfa   :  { %182 = vperm.xlu2 %3228, %v177_v22  }
  0xfd   :  { %351 = vperm.xlu1 %3252, %v346_v23  }
  0xff   :  { %v3612_v10 = vpop.trf.xlu0 }
 0x100   :  { %5293 = vst [vmem:[#allocation9_spill] sm:$0xff] %v3612_v10  ;;  %v5171_v12 = vperm.slane %v3612_v10, 3 }
 0x101   :  { %403 = vperm.xlu0 %3224, %v398_v46  }
 0x102   :  { %3229 = vset.pattern.permute.xlu2 %v3437_v14 }
 0x105   :  { %364 = vperm.xlu1 %3252, %v359_v24  }
 0x107   :  { %v3622_v15 = vpop.trf.xlu0 }
 0x108   :  { %5294 = vst [vmem:[#allocation10_spill] sm:$0xff] %v3622_v15  ;;  %v5169_v16 = vperm.slane %v3622_v15, 0 }
 0x109   :  { %468 = vperm.xlu0 %3224, %v463_v49  }
 0x10a   :  { %188 = vperm.xlu2 %3229, %v177_v22   ;;  %v5180_v22 = vperm.slane %v3557_v54, 6 }
 0x10d   :  { %3254 = vset.pattern.permute.xlu1 %v3437_v14 }
 0x111   :  { %533 = vperm.xlu0 %3224, %v5199_v51  }
 0x112   :  { %3230 = vset.pattern.permute.xlu2 %v3426_v1 }
 0x114   :  { %v3598_v6 = vpop.permute.xlu2 %143 }
 0x115   :  { %383 = vperm.xlu1 %3254, %v372_v25  }
 0x119   :  { %598 = vperm.xlu0 %3224, %v5194_v52  }
 0x11a   :  { %195 = vperm.xlu2 %3230, %v190_v26  }
 0x11d   :  { %396 = vperm.xlu1 %3254, %v385_v27  }
 0x121   :  { %663 = vperm.xlu0 %3224, %v5188_v55  }
 0x122   :  { %3231 = vset.pattern.permute.xlu2 %v3437_v14 }
 0x124   :  { %v3606_v9 = vpop.permute.xlu2 %149 }
 0x125   :  { %3256 = vset.pattern.permute.xlu1 %v3426_v1 }
 0x129   :  { %728 = vperm.xlu0 %3224, %v5181_v58  }
 0x12a   :  { %201 = vperm.xlu2 %3231, %v190_v26   ;;  %v5168_v26 = vperm.slane %v3622_v15, 5 }
 0x12d   :  { %416 = vperm.xlu1 %3256, %v411_v28  }
 0x131   :  { %793 = vperm.xlu0 %3224, %v5176_v60   ;;  %v814_v60 = vperm.slane %v3572_v59, 4 }
 0x132   :  { %3232 = vset.pattern.permute.xlu2 %v3426_v1 }
 0x134   :  { %v3616_v13 = vpop.permute.xlu2 %169 }
 0x135   :  { %429 = vperm.xlu1 %3256, %v424_v29  }
 0x139   :  { %858 = vperm.xlu0 %3224, %v5175_v62  }
 0x13a   :  { %208 = vperm.xlu2 %3232, %v203_v30  }
 0x13d   :  { %3258 = vset.pattern.permute.xlu1 %v3437_v14 }
 0x141   :  { %923 = vperm.xlu0 %3224, %v5174_v2   ;;  %v5178_v2 = vperm.slane %v3572_v59, 3 }
 0x142   :  { %3233 = vset.pattern.permute.xlu2 %v3437_v14 }
 0x144   :  { %v3626_v17 = vpop.permute.xlu2 %175 }
 0x145   :  { %448 = vperm.xlu1 %3258, %v437_v31  }
 0x149   :  { %988 = vperm.xlu0 %3224, %v5173_v5  }
 0x14a   :  { %214 = vperm.xlu2 %3233, %v203_v30  }
 0x14d   :  { %461 = vperm.xlu1 %3258, %v450_v33  }
 0x151   :  { %1053 = vperm.xlu0 %3224, %v5172_v8  }
 0x152   :  { %3234 = vset.pattern.permute.xlu2 %v3426_v1 }
 0x154   :  { %v3634_v30 = vpop.permute.xlu2 %182 }
 0x155   :  { %3260 = vset.pattern.permute.xlu1 %v3426_v1 }
 0x159   :  { %1118 = vperm.xlu0 %3224, %v5171_v12  }
 0x15a   :  { %221 = vperm.xlu2 %3234, %v216_v34  }
 0x15d   :  { %481 = vperm.xlu1 %3260, %v5203_v35  }
 0x161   :  { %1183 = vperm.xlu0 %3224, %v5169_v16  }
 0x162   :  { %3235 = vset.pattern.permute.xlu2 %v3437_v14 }
 0x165   :  { %494 = vperm.xlu1 %3260, %v489_v36  }
 0x169   :  { %1248 = vperm.xlu0 %3224, %v5168_v26   ;;  %v3654_v26 = vpop.trf.xlu1 }
 0x16a   :  { %227 = vperm.xlu2 %3235, %v216_v34   ;;  %v749_v34 = vperm.slane %v3557_v54, 7 }
 0x16d   :  { %3262 = vset.pattern.permute.xlu1 %v3437_v14 }
 0x171   :  { %v3665_v12 = vpop.trf.xlu1 }
 0x172   :  { %3236 = vset.pattern.permute.xlu2 %v3426_v1 }
 0x175   :  { %513 = vperm.xlu1 %3262, %v5201_v37  }
 0x17a   :  { %234 = vperm.xlu2 %3236, %v229_v38  }
 0x17d   :  { %526 = vperm.xlu1 %3262, %v5200_v39  }
 0x182   :  { %3237 = vset.pattern.permute.xlu2 %v3437_v14 }
 0x185   :  { %3264 = vset.pattern.permute.xlu1 %v3426_v1 }
 0x18a   :  { %240 = vperm.xlu2 %3237, %v229_v38   ;;  %v3641_v38 = vpop.trf.xlu0 }
 0x18d   :  { %546 = vperm.xlu1 %3264, %v5198_v40  }
 0x192   :  { %3238 = vset.pattern.permute.xlu2 %v3426_v1 }
 0x195   :  { %559 = vperm.xlu1 %3264, %v554_v42  }
 0x19a   :  { %247 = vperm.xlu2 %3238, %v242_v43  }
 0x19d   :  { %3266 = vset.pattern.permute.xlu1 %v3437_v14 }
 0x1a2   :  { %3239 = vset.pattern.permute.xlu2 %v3437_v14 }
 0x1a5   :  { %578 = vperm.xlu1 %3266, %v5196_v44  }
 0x1aa   :  { %253 = vperm.xlu2 %3239, %v242_v43   ;;  %v5170_v43 = vperm.slane %v3641_v38, 2 }
 0x1ac   :  { %1313 = vperm.xlu0 %3224, %v5170_v43   ;;  %v5177_v43 = vperm.slane %v3572_v59, 1 }
 0x1ad   :  { %591 = vperm.xlu1 %3266, %v5195_v45  }
 0x1b2   :  { %3240 = vset.pattern.permute.xlu2 %v3426_v1 }
 0x1b4   :  { %3311 = vset.pattern.permute.xlu0 %v3437_v14 }
 0x1b5   :  { %3268 = vset.pattern.permute.xlu1 %v3426_v1 }
 0x1ba   :  { %260 = vperm.xlu2 %3240, %v255_v47  }
 0x1bc   :  { %370 = vperm.xlu0 %3311, %v359_v24   ;;  %v3679_v24 = vpop.trf.xlu1 }
 0x1bd   :  { %611 = vperm.xlu1 %3268, %v5192_v48  }
 0x1c2   :  { %3241 = vset.pattern.permute.xlu2 %v3437_v14 }
 0x1c4   :  { %435 = vperm.xlu0 %3311, %v424_v29   ;;  %v3688_v29 = vpop.trf.xlu1 }
 0x1c5   :  { %624 = vperm.xlu1 %3268, %v619_v50  }
 0x1ca   :  { %266 = vperm.xlu2 %3241, %v255_v47   ;;  %v3645_v47 = vpop.permute.xlu2 %188 }
 0x1cc   :  { %500 = vperm.xlu0 %3311, %v489_v36  }
 0x1cd   :  { %3270 = vset.pattern.permute.xlu1 %v3437_v14 }
 0x1d2   :  { %3242 = vset.pattern.permute.xlu2 %v3426_v1 }
 0x1d4   :  { %565 = vperm.xlu0 %3311, %v554_v42   ;;  %v5185_v42 = vperm.slane %v3572_v59, 5 }
 0x1d5   :  { %643 = vperm.xlu1 %3270, %v5191_v53  }
 0x1da   :  { %273 = vperm.xlu2 %3242, %v268_v56  }
 0x1dc   :  { %630 = vperm.xlu0 %3311, %v619_v50   ;;  %v5184_v50 = vperm.slane %v3572_v59, 6 }
 0x1dd   :  { %656 = vperm.xlu1 %3270, %v5189_v57  }
 0x1e2   :  { %3243 = vset.pattern.permute.xlu2 %v3437_v14 }
 0x1e4   :  { %695 = vperm.xlu0 %3311, %v684_v0  }
 0x1e5   :  { %3272 = vset.pattern.permute.xlu1 %v3426_v1 }
 0x1ea   :  { %279 = vperm.xlu2 %3243, %v268_v56   ;;  %v3649_v56 = vpop.permute.xlu2 %195 }
 0x1ec   :  { %760 = vperm.xlu0 %3311, %v749_v34  }
 0x1ed   :  { %676 = vperm.xlu1 %3272, %v5187_v61   ;;  %v944_v61 = vperm.slane %v3585_v63, 6 }
 0x1f2   :  { %3244 = vset.pattern.permute.xlu2 %v3426_v1  ;;  %v3657_v16 = vpop.permute.xlu2 %201 }
 0x1f4   :  { %825 = vperm.xlu0 %3311, %v814_v60  }
 0x1f5   :  { %689 = vperm.xlu1 %3272, %v684_v0  }
 0x1fa   :  { %286 = vperm.xlu2 %3244, %v281_v3   ;;  %v3667_v8 = vpop.permute.xlu2 %208 }
 0x1fd   :  { %3274 = vset.pattern.permute.xlu1 %v3437_v14 }
 0x202   :  { %3245 = vset.pattern.permute.xlu2 %v3437_v14  ;;  %v3674_v5 = vpop.permute.xlu2 %214 }
 0x205   :  { %708 = vperm.xlu1 %3274, %v5183_v7  }
 0x20a   :  { %292 = vperm.xlu2 %3245, %v281_v3   ;;  %v5179_v3 = vperm.slane %v3572_v59, 0  ;;  %v3682_v62 = vpop.permute.xlu2 %221 }
 0x20d   :  { %721 = vperm.xlu1 %3274, %v5182_v11   ;;  %v879_v11 = vperm.slane %v3585_v63, 1 }
 0x20f   :  { %890 = vperm.xlu0 %3311, %v879_v11  }
 0x212   :  { %3246 = vset.pattern.permute.xlu2 %v3426_v1  ;;  %v3692_v36 = vpop.permute.xlu2 %227 }
 0x215   :  { %3276 = vset.pattern.permute.xlu1 %v3426_v1 }
 0x217   :  { %955 = vperm.xlu0 %3311, %v944_v61  }
 0x21a   :  { %299 = vperm.xlu2 %3246, %v294_v18  }
 0x21d   :  { %741 = vperm.xlu1 %3276, %v5180_v22  }
 0x222   :  { %3247 = vset.pattern.permute.xlu2 %v3437_v14 }
 0x225   :  { %754 = vperm.xlu1 %3276, %v749_v34  }
 0x22a   :  { %305 = vperm.xlu2 %3247, %v294_v18   ;;  %v307_v18 = vperm.slane %v3448_v19, 5 }
 0x22d   :  { %3278 = vset.pattern.permute.xlu1 %v3437_v14 }
 0x232   :  { %3248 = vset.pattern.permute.xlu2 %v3426_v1 }
 0x235   :  { %773 = vperm.xlu1 %3278, %v5179_v3  }
 0x23a   :  { %312 = vperm.xlu2 %3248, %v307_v18  }
 0x23d   :  { %786 = vperm.xlu1 %3278, %v5177_v43   ;;  %v3697_v43 = vpop.trf.xlu1 }
 0x242   :  { %3249 = vset.pattern.permute.xlu2 %v3437_v14 }
 0x245   :  { %3280 = vset.pattern.permute.xlu1 %v3426_v1  ;;  %v3706_v3 = vpop.trf.xlu1 }
 0x24a   :  { %318 = vperm.xlu2 %3249, %v307_v18   ;;  %v320_v18 = vperm.slane %v3448_v19, 6 }
 0x24d   :  { %806 = vperm.xlu1 %3280, %v5178_v2   ;;  %v3699_v2 = vpop.permute.xlu2 %234  ;;  %v3717_v0 = vpop.trf.xlu1 }
 0x24e   :  { %5296 = vst [vmem:[#allocation12_spill] sm:$0xff] %v3717_v0 }
 0x252   :  { %3250 = vset.pattern.permute.xlu2 %v3426_v1 }
 0x255   :  { %819 = vperm.xlu1 %3280, %v814_v60   ;;  %v3708_v22 = vpop.permute.xlu2 %240  ;;  %v3725_v34 = vpop.trf.xlu1 }
 0x256   :  { %5295 = vst [vmem:[#allocation11_spill] sm:$0xff] %v3708_v22 }
 0x257   :  { %5298 = vst [vmem:[#allocation14_spill] sm:$0xff] %v3725_v34  ;;  %v1820_v34 = vrot.slane %v3654_v26, 3 }
 0x25a   :  { %325 = vperm.xlu2 %3250, %v320_v18  }
 0x25d   :  { %3282 = vset.pattern.permute.xlu1 %v3437_v14  ;;  %v3713_v58 = vpop.permute.xlu2 %247  ;;  %v3734_v19 = vpop.trf.xlu1 }
 0x25e   :  { %5299 = vst [vmem:[#allocation15_spill] sm:$0xff] %v3734_v19 }
 0x262   :  { %3251 = vset.pattern.permute.xlu2 %v3437_v14 }
 0x265   :  { %838 = vperm.xlu1 %3282, %v5185_v42   ;;  %v3722_v7 = vpop.permute.xlu2 %253 }
 0x266   :  { %5297 = vst [vmem:[#allocation13_spill] sm:$0xff] %v3722_v7 }
 0x26a   :  { %331 = vperm.xlu2 %3251, %v320_v18   ;;  %v5186_v18 = vperm.slane %v3585_v63, 0 }
 0x26d   :  { %851 = vperm.xlu1 %3282, %v5184_v50   ;;  %v3730_v60 = vpop.permute.xlu2 %260  ;;  %v3741_v50 = vpop.trf.xlu1 }
 0x26e   :  { %5301 = vst [vmem:[#allocation17_spill] sm:$0xff] %v3741_v50  ;;  %v5316_v50 = vperm.slane %v3489_v32, 2 }
 0x272   :  { %344 = vperm.xlu2 %3251, %v333_v20  }
 0x275   :  { %3284 = vset.pattern.permute.xlu1 %v3426_v1  ;;  %v3737_v20 = vpop.permute.xlu2 %266 }
 0x276   :  { %5300 = vst [vmem:[#allocation16_spill] sm:$0xff] %v3737_v20 }
 0x27a   :  { %357 = vperm.xlu2 %3251, %v346_v23   ;;  %v5190_v23 = vperm.slane %v3585_v63, 2 }
 0x27d   :  { %871 = vperm.xlu1 %3284, %v5186_v18   ;;  %v3743_v42 = vpop.permute.xlu2 %273 }
 0x282   :  { %3253 = vset.pattern.permute.xlu2 %v3426_v1 }
 0x285   :  { %884 = vperm.xlu1 %3284, %v879_v11   ;;  %v3749_v18 = vpop.permute.xlu2 %279  ;;  %v3754_v11 = vpop.trf.xlu1 }
 0x286   :  { %5302 = vst [vmem:[#allocation18_spill] sm:$0xff] %v3749_v18 }
 0x287   :  { %5303 = vst [vmem:[#allocation19_spill] sm:$0xff] %v3754_v11 }
 0x28a   :  { %377 = vperm.xlu2 %3253, %v372_v25   ;;  %v5193_v25 = vperm.slane %v3585_v63, 3 }
 0x28d   :  { %3286 = vset.pattern.permute.xlu1 %v3437_v14  ;;  %v3758_v55 = vpop.permute.xlu2 %286 }
 0x292   :  { %390 = vperm.xlu2 %3253, %v385_v27   ;;  %v3762_v27 = vpop.trf.xlu1 }
 0x293   :  { %5304 = vst [vmem:[#allocation20_spill] sm:$0xff] %v3762_v27  ;;  %v5215_v27 = vperm.slane %v3595_v4, 2 }
 0x295   :  { %903 = vperm.xlu1 %3286, %v5190_v23   ;;  %v3766_v57 = vpop.permute.xlu2 %292  ;;  %v5197_v23 = vperm.slane %v3585_v63, 5 }
 0x296   :  { %5305 = vst [vmem:[#allocation21_spill] sm:$0xff] %v3766_v57  ;;  %v3847_v57 = vperm.slane %v1820_v34, 0 }
 0x298   :  { %v2192_v34 = vsub.f32 %v3634_v30, %v3847_v57 }
 0x29a   :  { %3255 = vset.pattern.permute.xlu2 %v3437_v14  ;;  %v3770_v53 = vpop.trf.xlu1  ;;  %v2448_v30 = vand.u32 2147483647, %v2192_v34 }
 0x29b   :  { %5306 = vst [vmem:[#allocation22_spill] sm:$0xff] %v3770_v53 }
 0x29d   :  { %916 = vperm.xlu1 %3286, %v5193_v25   ;;  %v3774_v48 = vpop.permute.xlu2 %299  ;;  %v3778_v25 = vpop.trf.xlu0 }
 0x2a2   :  { %409 = vperm.xlu2 %3255, %v398_v46   ;;  %v3781_v46 = vpop.trf.xlu1 }
 0x2a3   :  { %5307 = vst [vmem:[#allocation23_spill] sm:$0xff] %v3781_v46  ;;  %v5214_v46 = vperm.slane %v3654_v26, 0 }
 0x2a5   :  { %3288 = vset.pattern.permute.xlu1 %v3426_v1  ;;  %v3783_v52 = vpop.permute.xlu2 %305  ;;  %v3785_v45 = vpop.trf.xlu0  ;;  %v2186_v19 = vsub.f32 %v3598_v6, %v5214_v46 }
 0x2a6   :  { %5308 = vst [vmem:[#allocation24_spill] sm:$0xff] %v3783_v52 }
 0x2a7   :  { %5309 = vst [vmem:[#allocation25_spill] sm:$0xff] %v3785_v45  ;;  %v2442_v52 = vand.u32 2147483647, %v2186_v19 }
 0x2a9   :  { %v2699_v19 = vsel %vm2698_vm0, %v2442_v52, 0.0 }
 0x2aa   :  { %422 = vperm.xlu2 %3255, %v411_v28   ;;  %v3792_v44 = vpop.trf.xlu1 }
 0x2ab   :  { %5310 = vst [vmem:[#allocation26_spill] sm:$0xff] %v3792_v44 }
 0x2ad   :  { %936 = vperm.xlu1 %3288, %v5197_v23   ;;  %v3789_v28 = vpop.permute.xlu2 %312  ;;  %v5202_v23 = vperm.slane %v3585_v63, 7  ;;  %v3795_v40 = vpop.trf.xlu0 }
 0x2ae   :  { %5311 = vst [vmem:[#allocation27_spill] sm:$0xff] %v3795_v40 }
 0x2b2   :  { %3257 = vset.pattern.permute.xlu2 %v3426_v1  ;;  %v3804_v21 = vpop.trf.xlu1 }
 0x2b3   :  { %5313 = vst [vmem:[#allocation29_spill] sm:$0xff] %v3804_v21  ;;  %v1819_v21 = vrot.slane %v3654_v26, 2 }
 0x2b5   :  { %949 = vperm.xlu1 %3288, %v944_v61   ;;  %v3799_v51 = vpop.permute.xlu2 %318  ;;  %v1009_v61 = vperm.slane %v3595_v4, 3  ;;  %v3808_v39 = vpop.trf.xlu0  ;;  %v3828_v11 = vperm.slane %v1819_v21, 0 }
 0x2b6   :  { %5312 = vst [vmem:[#allocation28_spill] sm:$0xff] %v3799_v51  ;;  %v1823_v51 = vrot.slane %v3654_v26, 6 }
 0x2b7   :  { %1020 = vperm.xlu0 %3311, %v1009_v61   ;;  %5314 = vst [vmem:[#allocation30_spill] sm:$0xff] %v3808_v39  ;;  %v2190_v21 = vsub.f32 %v3616_v13, %v3828_v11 }
 0x2b8   :  { %v3855_v0 = vperm.slane %v1823_v51, 0  ;;  %v1825_v51 = vrot.slane %v3665_v12, 1 }
 0x2ba   :  { %442 = vperm.xlu2 %3257, %v437_v31   ;;  %v5208_v31 = vperm.slane %v3595_v4, 0  ;;  %v2198_v52 = vsub.f32 %v3682_v62, %v3855_v0  ;;  %v3880_v22 = vperm.slane %v1825_v51, 0  ;;  %v1828_v51 = vrot.slane %v3665_v12, 4 }
 0x2bc   :  { %5320 = vst [vmem:[#allocation35_spill] sm:$0xff] %v3880_v22  ;;  %v2454_v62 = vand.u32 2147483647, %v2198_v52 }
 0x2bd   :  { %3290 = vset.pattern.permute.xlu1 %v3437_v14  ;;  %v3810_v37 = vpop.permute.xlu2 %325  ;;  %v157_v44 = vpop.permute.xlu0 %156 }
 0x2c2   :  { %455 = vperm.xlu2 %3257, %v450_v33   ;;  %v3814_v33 = vpop.permute.xlu1 %162 }
 0x2c5   :  { %968 = vperm.xlu1 %3290, %v5202_v23   ;;  %v1818_v23 = vrot.slane %v3654_v26, 1  ;;  %v3819_v35 = vpop.permute.xlu2 %331 }
 0x2c6   :  { %5315 = vst [vmem:[#allocation31_spill] sm:$0xff] %v3819_v35 }
 0x2c7   :  { %v3824_v53 = vperm.slane %v1818_v23, 0  ;;  %v1821_v23 = vrot.slane %v3654_v26, 4 }
 0x2c9   :  { %v3849_v6 = vperm.slane %v1821_v23, 0 }
 0x2ca   :  { %3259 = vset.pattern.permute.xlu2 %v3437_v14 }
 0x2cb   :  { %v2194_v23 = vsub.f32 %v3649_v56, %v3849_v6  ;;  %v1826_v56 = vrot.slane %v3665_v12, 2 }
 0x2cd   :  { %981 = vperm.xlu1 %3290, %v5208_v31   ;;  %v2188_v31 = vsub.f32 %v157_v44, %v3824_v53  ;;  %v1822_v44 = vrot.slane %v3654_v26, 5  ;;  %v2450_v7 = vand.u32 2147483647, %v2194_v23 }
 0x2cf   :  { %v2444_v35 = vand.u32 2147483647, %v2188_v31  ;;  %v1824_v31 = vrot.slane %v3654_v26, 7  ;;  %v3853_v18 = vperm.slane %v1822_v44, 0  ;;  %v2706_v23 = vsel %vm2698_vm0, %v2450_v7, 0.0 }
 0x2d1   :  { %v2700_v46 = vsel %vm2698_vm0, %v2444_v35, 0.0  ;;  %v3865_v20 = vperm.slane %v1824_v31, 0  ;;  %v2196_v35 = vsub.f32 %v3667_v8, %v3853_v18 }
 0x2d2   :  { %474 = vperm.xlu2 %3259, %v463_v49   ;;  %v3830_v49 = vpop.permute.xlu1 %338 }
 0x2d3   :  { %5318 = vst [vmem:[#allocation33_spill] sm:$0xff] %v3865_v20  ;;  %v2200_v8 = vsub.f32 %v3699_v2, %v3865_v20  ;;  %v2704_v2 = vsel %vm2698_vm0, %v2448_v30, 0.0  ;;  %v2710_v30 = vsel %vm2698_vm0, %v2454_v62, 0.0 }
 0x2d5   :  { %3292 = vset.pattern.permute.xlu1 %v3426_v1 }
 0x2da   :  { %487 = vperm.xlu2 %3259, %v5316_v50   ;;  %v3845_v50 = vpop.permute.xlu2 %344  ;;  %v3857_v13 = vpop.permute.xlu1 %351 }
 0x2db   :  { %5317 = vst [vmem:[#allocation32_spill] sm:$0xff] %v3845_v50  ;;  %v2701_v50 = vadd.f32 %v2700_v46, %v2699_v19  ;;  %v5219_v46 = vperm.slane %v3612_v10, 0 }
 0x2dd   :  { %1001 = vperm.xlu1 %3292, %v5215_v27   ;;  %v2446_v27 = vand.u32 2147483647, %v2190_v21  ;;  %v5218_v21 = vperm.slane %v3665_v12, 0  ;;  %1085 = vperm.xlu0 %3311, %v5219_v46  }
 0x2df   :  { %v2702_v44 = vsel %vm2698_vm0, %v2446_v27, 0.0  ;;  %v1827_v27 = vrot.slane %v3665_v12, 3  ;;  %v2202_v34 = vsub.f32 %v3713_v58, %v5218_v21  ;;  %v2204_v58 = vsub.f32 %v3730_v60, %v3880_v22 }
 0x2e0   :  { %v2703_v31 = vadd.f32 %v2702_v44, %v2701_v50  ;;  %v5321_v50 = vperm.slane %v3489_v32, 4 }
 0x2e1   :  { %v3900_v21 = vperm.slane %v1827_v27, 0  ;;  %v2460_v22 = vand.u32 2147483647, %v2204_v58 }
 0x2e2   :  { %3261 = vset.pattern.permute.xlu2 %v3426_v1  ;;  %v3878_v19 = vpop.permute.xlu2 %357  ;;  %v2705_v44 = vadd.f32 %v2704_v2, %v2703_v31  ;;  %v3895_v20 = vpop.permute.xlu1 %364  ;;  %v5221_v2 = vperm.slane %v3612_v10, 5 }
 0x2e3   :  { %5319 = vst [vmem:[#allocation34_spill] sm:$0xff] %v3878_v19  ;;  %v2456_v19 = vand.u32 2147483647, %v2200_v8  ;;  %v3907_v8 = vperm.slane %v1828_v51, 0  ;;  %v5322_v51 = vperm.slane %v3489_v32, 5 }
 0x2e4   :  { %v2707_v7 = vadd.f32 %v2706_v23, %v2705_v44  ;;  %v2208_v23 = vsub.f32 %v3758_v55, %v3900_v21 }
 0x2e5   :  { %1014 = vperm.xlu1 %3292, %v1009_v61   ;;  %v2452_v61 = vand.u32 2147483647, %v2196_v35  ;;  %v3892_v35 = vperm.slane %v1826_v56, 0  ;;  %v2458_v56 = vand.u32 2147483647, %v2202_v34  ;;  %v2712_v27 = vsel %vm2698_vm0, %v2456_v19, 0.0  ;;  %1150 = vperm.xlu0 %3311, %v5221_v2  }
 0x2e6   :  { %v2464_v34 = vand.u32 2147483647, %v2208_v23  ;;  %v5222_v2 = vperm.slane %v3595_v4, 5 }
 0x2e7   :  { %v2708_v52 = vsel %vm2698_vm0, %v2452_v61, 0.0  ;;  %v2206_v31 = vsub.f32 %v3743_v42, %v3892_v35  ;;  %v1830_v61 = vrot.slane %v3665_v12, 6  ;;  %v2714_v44 = vsel %vm2698_vm0, %v2458_v56, 0.0 }
 0x2e8   :  { %v2709_v60 = vadd.f32 %v2708_v52, %v2707_v7  ;;  %v2210_v52 = vsub.f32 %v3774_v48, %v3907_v8  ;;  %v2716_v7 = vsel %vm2698_vm0, %v2460_v22, 0.0  ;;  %v2720_v23 = vsel %vm2698_vm0, %v2464_v34, 0.0 }
 0x2e9   :  { %v2462_v19 = vand.u32 2147483647, %v2206_v31  ;;  %v3926_v58 = vperm.slane %v1830_v61, 0 }
 0x2ea   :  { %507 = vperm.xlu2 %3261, %v5321_v50   ;;  %v1829_v50 = vrot.slane %v3665_v12, 5  ;;  %v3912_v46 = vpop.permute.xlu2 %377  ;;  %v2711_v42 = vadd.f32 %v2710_v30, %v2709_v60  ;;  %v5323_v60 = vperm.slane %v3595_v4, 4  ;;  %v3934_v56 = vpop.permute.xlu1 %383  ;;  %v2466_v48 = vand.u32 2147483647, %v2210_v52 }
 0x2eb   :  { %v2718_v31 = vsel %vm2698_vm0, %v2462_v19, 0.0  ;;  %v2214_v61 = vsub.f32 %v3810_v37, %v3926_v58  ;;  %v5223_v19 = vperm.slane %v3679_v24, 0  ;;  %v1832_v37 = vrot.slane %v3679_v24, 1 }
 0x2ec   :  { %v3916_v62 = vperm.slane %v1829_v50, 0  ;;  %v2713_v55 = vadd.f32 %v2712_v27, %v2711_v42  ;;  %v1831_v50 = vrot.slane %v3665_v12, 7  ;;  %v5225_v27 = vperm.slane %v3622_v15, 2 }
 0x2ed   :  { %3294 = vset.pattern.permute.xlu1 %v3437_v14 }
 0x2ee   :  { %v2212_v30 = vsub.f32 %v3789_v28, %v3916_v62  ;;  %v3940_v22 = vperm.slane %v1831_v50, 0  ;;  %1215 = vperm.xlu0 %3311, %v5225_v27   ;;  %v2470_v50 = vand.u32 2147483647, %v2214_v61  ;;  %v5224_v61 = vperm.slane %v3622_v15, 7 }
 0x2f0   :  { %v2468_v28 = vand.u32 2147483647, %v2212_v30  ;;  %v2216_v34 = vsub.f32 %v3830_v49, %v3940_v22 }
 0x2f2   :  { %520 = vperm.xlu2 %3261, %v5322_v51   ;;  %v2715_v51 = vadd.f32 %v2714_v44, %v2713_v55  ;;  %v391_v52 = vpop.permute.xlu2 %390  ;;  %v2722_v55 = vsel %vm2698_vm0, %v2466_v48, 0.0  ;;  %v2724_v30 = vsel %vm2698_vm0, %v2468_v28, 0.0  ;;  %v2726_v48 = vsel %vm2698_vm0, %v2470_v50, 0.0 }
 0x2f3   :  { %v2472_v28 = vand.u32 2147483647, %v2216_v34 }
 0x2f4   :  { %v2717_v42 = vadd.f32 %v2716_v7, %v2715_v51 }
 0x2f5   :  { %1033 = vperm.xlu1 %3294, %v5323_v60   ;;  %v2218_v60 = vsub.f32 %v3857_v13, %v5223_v19  ;;  %v2728_v34 = vsel %vm2698_vm0, %v2472_v28, 0.0 }
 0x2f6   :  { %v2719_v44 = vadd.f32 %v2718_v31, %v2717_v42  ;;  %v3958_v31 = vperm.slane %v1832_v37, 0  ;;  %v1833_v42 = vrot.slane %v3679_v24, 2  ;;  %1280 = vperm.xlu0 %3311, %v5224_v61   ;;  %v5325_v37 = vperm.slane %v3489_v32, 6 }
 0x2f7   :  { %v1836_v61 = vrot.slane %v3679_v24, 5 }
 0x2f8   :  { %v2721_v7 = vadd.f32 %v2720_v23, %v2719_v44  ;;  %v3963_v23 = vpop.permute.xlu1 %396  ;;  %v1834_v44 = vrot.slane %v3679_v24, 3  ;;  %v2220_v50 = vsub.f32 %v3895_v20, %v3958_v31  ;;  %v5226_v20 = vperm.slane %v3641_v38, 4 }
 0x2fa   :  { %3263 = vset.pattern.permute.xlu2 %v3437_v14  ;;  %v2723_v51 = vadd.f32 %v2722_v55, %v2721_v7  ;;  %v2474_v55 = vand.u32 2147483647, %v2218_v60  ;;  %v3974_v7 = vperm.slane %v1833_v42, 0  ;;  %v2476_v60 = vand.u32 2147483647, %v2220_v50 }
 0x2fc   :  { %v2725_v49 = vadd.f32 %v2724_v30, %v2723_v51  ;;  %v3968_v13 = vpop.permute.xlu2 %409  ;;  %v1835_v30 = vrot.slane %v3679_v24, 4  ;;  %v3978_v51 = vperm.slane %v1834_v44, 0 }
 0x2fd   :  { %1046 = vperm.xlu1 %3294, %v5222_v2   ;;  %5324 = vst [vmem:[#allocation36_spill] sm:$0xff] %v3968_v13  ;;  %v3998_v13 = vperm.slane %v1836_v61, 0 }
 0x2fe   :  { %v2727_v2 = vadd.f32 %v2726_v48, %v2725_v49  ;;  %v2222_v48 = vsub.f32 %v3912_v46, %v3974_v7  ;;  %v2224_v19 = vsub.f32 %v391_v52, %v3978_v51  ;;  %v3986_v42 = vperm.slane %v1835_v30, 0  ;;  %1345 = vperm.xlu0 %3311, %v5226_v20  }
 0x2ff   :  { %v2732_v52 = vsel %vm2698_vm0, %v2476_v60, 0.0  ;;  %5328 = vst [vmem:[#allocation38_spill] sm:$0xff] %v3998_v13  ;;  %v5329_v20 = vperm.slane %v3595_v4, 7 }
 0x300   :  { %v2729_v49 = vadd.f32 %v2728_v34, %v2727_v2  ;;  %v2478_v28 = vand.u32 2147483647, %v2222_v48  ;;  %v417_v46 = vpop.permute.xlu1 %416  ;;  %v5326_v2 = vperm.slane %v3489_v32, 7  ;;  %v2480_v50 = vand.u32 2147483647, %v2224_v19 }
 0x301   :  { %v1837_v48 = vrot.slane %v3679_v24, 6  ;;  %v1838_v32 = vrot.slane %v3679_v24, 7  ;;  %v5227_v19 = vperm.slane %v3778_v25, 1  ;;  %v2228_v61 = vsub.f32 %v417_v46, %v3998_v13 }
 0x302   :  { %539 = vperm.xlu2 %3263, %v5325_v37   ;;  %v2730_v37 = vsel %vm2698_vm0, %v2474_v55, 0.0  ;;  %v404_v55 = vpop.permute.xlu0 %403  ;;  %v2734_v44 = vsel %vm2698_vm0, %v2478_v28, 0.0 }
 0x303   :  { %v2731_v27 = vadd.f32 %v2730_v37, %v2729_v49  ;;  %v2226_v30 = vsub.f32 %v404_v55, %v3986_v42  ;;  %v2736_v37 = vsel %vm2698_vm0, %v2480_v50, 0.0  ;;  %v1839_v55 = vrot.slane %v3688_v29, 1 }
 0x304   :  { %v3996_v34 = vpop.permute.xlu2 %422 }
 0x305   :  { %3296 = vset.pattern.permute.xlu1 %v3426_v1  ;;  %5327 = vst [vmem:[#allocation37_spill] sm:$0xff] %v3996_v34  ;;  %v2733_v49 = vadd.f32 %v2732_v52, %v2731_v27  ;;  %v2482_v60 = vand.u32 2147483647, %v2226_v30  ;;  %v4009_v34 = vperm.slane %v1837_v48, 0  ;;  %v4014_v27 = vperm.slane %v1838_v32, 0 }
 0x306   :  { %1410 = vperm.xlu0 %3311, %v5227_v19   ;;  %v4017_v30 = vperm.slane %v1839_v55, 0  ;;  %v5331_v48 = vperm.slane %v3612_v10, 0 }
 0x308   :  { %v430_v52 = vpop.permute.xlu1 %429  ;;  %5330 = vst [vmem:[#allocation39_spill] sm:$0xff] %v4017_v30 }
 0x30a   :  { %552 = vperm.xlu2 %3263, %v5326_v2   ;;  %v2735_v2 = vadd.f32 %v2734_v44, %v2733_v49  ;;  %v2484_v44 = vand.u32 2147483647, %v2228_v61  ;;  %v2230_v49 = vsub.f32 %v430_v52, %v4009_v34  ;;  %v5332_v61 = vperm.slane %v3518_v41, 1 }
 0x30b   :  { %v5238_v52 = vperm.slane %v3688_v29, 0 }
 0x30c   :  { %v2737_v28 = vadd.f32 %v2736_v37, %v2735_v2  ;;  %v5237_v37 = vperm.slane %v3778_v25, 6  ;;  %v469_v2 = vpop.permute.xlu0 %468  ;;  %v2486_v4 = vand.u32 2147483647, %v2230_v49 }
 0x30d   :  { %1066 = vperm.xlu1 %3296, %v5329_v20   ;;  %v2738_v20 = vsel %vm2698_vm0, %v2482_v60, 0.0  ;;  %v2236_v32 = vsub.f32 %v469_v2, %v4017_v30  ;;  %v2740_v60 = vsel %vm2698_vm0, %v2484_v44, 0.0 }
 0x30e   :  { %v2739_v19 = vadd.f32 %v2738_v20, %v2737_v28  ;;  %1475 = vperm.xlu0 %3311, %v5237_v37   ;;  %v2742_v20 = vsel %vm2698_vm0, %v2486_v4, 0.0 }
 0x30f   :  { %v2492_v28 = vand.u32 2147483647, %v2236_v32  ;;  %v5233_v32 = vperm.slane %v3612_v10, 1 }
 0x310   :  { %v2741_v55 = vadd.f32 %v2740_v60, %v2739_v19  ;;  %v5235_v19 = vperm.slane %v3785_v45, 3 }
 0x311   :  { %v2748_v60 = vsel %vm2698_vm0, %v2492_v28, 0.0  ;;  %v5232_v28 = vperm.slane %v3612_v10, 2 }
 0x312   :  { %3265 = vset.pattern.permute.xlu2 %v3426_v1  ;;  %v2743_v49 = vadd.f32 %v2742_v20, %v2741_v55  ;;  %v4046_v55 = vpop.permute.xlu1 %448  ;;  %v5234_v20 = vperm.slane %v3795_v40, 0 }
 0x313   :  { %5334 = vst [vmem:[#allocation40_spill] sm:$0xff] %v4046_v55 }
 0x314   :  { %v443_v50 = vpop.permute.xlu2 %442 }
 0x315   :  { %v2232_v46 = vsub.f32 %v443_v50, %v4014_v27  ;;  %1079 = vperm.xlu1 %3296, %v5331_v48  }
 0x316   :  { %1540 = vperm.xlu0 %3311, %v5235_v19  }
 0x317   :  { %v2488_v13 = vand.u32 2147483647, %v2232_v46 }
 0x319   :  { %v2744_v48 = vsel %vm2698_vm0, %v2488_v13, 0.0  ;;  %v5333_v13 = vperm.slane %v3518_v41, 2 }
 0x31a   :  { %572 = vperm.xlu2 %3265, %v5332_v61   ;;  %v2745_v2 = vadd.f32 %v2744_v48, %v2743_v49  ;;  %v5231_v48 = vperm.slane %v3795_v40, 5 }
 0x31c   :  { %v456_v50 = vpop.permute.xlu2 %455 }
 0x31d   :  { %v2234_v44 = vsub.f32 %v456_v50, %v5238_v52  ;;  %3298 = vset.pattern.permute.xlu1 %v3437_v14 }
 0x31e   :  { %1605 = vperm.xlu0 %3311, %v5234_v20  }
 0x31f   :  { %v2490_v46 = vand.u32 2147483647, %v2234_v44  ;;  %v4056_v44 = vpop.permute.xlu1 %461 }
 0x320   :  { %5335 = vst [vmem:[#allocation41_spill] sm:$0xff] %v4056_v44 }
 0x321   :  { %v2746_v61 = vsel %vm2698_vm0, %v2490_v46, 0.0  ;;  %v5337_v46 = vperm.slane %v3518_v41, 3 }
 0x322   :  { %v2747_v4 = vadd.f32 %v2746_v61, %v2745_v2  ;;  %585 = vperm.xlu2 %3265, %v5333_v13   ;;  %v5236_v2 = vperm.slane %v3808_v39, 2  ;;  %v5239_v61 = vperm.slane %v3612_v10, 4  ;;  %v5338_v13 = vperm.slane %v3518_v41, 4 }
 0x324   :  { %v2749_v50 = vadd.f32 %v2748_v60, %v2747_v4  ;;  %v1840_v60 = vrot.slane %v3688_v29, 2 }
 0x325   :  { %1098 = vperm.xlu1 %3298, %v5233_v32   ;;  %v1842_v32 = vrot.slane %v3688_v29, 4 }
 0x326   :  { %1670 = vperm.xlu0 %3311, %v5231_v48  }
 0x327   :  { %v482_v4 = vpop.permute.xlu1 %481 }
 0x32a   :  { %3267 = vset.pattern.permute.xlu2 %v3437_v14 }
 0x32c   :  { %v4060_v49 = vpop.permute.xlu2 %474 }
 0x32d   :  { %1111 = vperm.xlu1 %3298, %v5232_v28   ;;  %5336 = vst [vmem:[#allocation42_spill] sm:$0xff] %v4060_v49  ;;  %v4074_v28 = vperm.slane %v1840_v60, 0  ;;  %v5343_v49 = vperm.slane %v3612_v10, 5 }
 0x32e   :  { %1735 = vperm.xlu0 %3311, %v5236_v2   ;;  %v4086_v2 = vperm.slane %v1842_v32, 0 }
 0x32f   :  { %5340 = vst [vmem:[#allocation44_spill] sm:$0xff] %v4074_v28  ;;  %v2238_v20 = vsub.f32 %v482_v4, %v4074_v28  ;;  %v495_v60 = vpop.permute.xlu1 %494  ;;  %v5244_v28 = vperm.slane %v3641_v38, 7 }
 0x330   :  { %5342 = vst [vmem:[#allocation46_spill] sm:$0xff] %v4086_v2 }
 0x331   :  { %v2494_v52 = vand.u32 2147483647, %v2238_v20  ;;  %v534_v20 = vpop.permute.xlu0 %533 }
 0x332   :  { %604 = vperm.xlu2 %3267, %v5337_v46   ;;  %v1841_v46 = vrot.slane %v3688_v29, 3 }
 0x333   :  { %v2750_v30 = vsel %vm2698_vm0, %v2494_v52, 0.0 }
 0x334   :  { %v4072_v48 = vpop.permute.xlu2 %487  ;;  %v4081_v19 = vperm.slane %v1841_v46, 0  ;;  %v1843_v46 = vrot.slane %v3688_v29, 5 }
 0x335   :  { %3300 = vset.pattern.permute.xlu1 %v3426_v1  ;;  %5339 = vst [vmem:[#allocation43_spill] sm:$0xff] %v4072_v48 }
 0x336   :  { %5341 = vst [vmem:[#allocation45_spill] sm:$0xff] %v4081_v19  ;;  %3338 = vset.pattern.permute.xlu0 %v3426_v1  ;;  %v2240_v48 = vsub.f32 %v495_v60, %v4081_v19  ;;  %v2751_v60 = vadd.f32 %v2750_v30, %v2749_v50  ;;  %v5247_v30 = vperm.slane %v3778_v25, 4 }
 0x338   :  { %v2496_v32 = vand.u32 2147483647, %v2240_v48 }
 0x33a   :  { %617 = vperm.xlu2 %3267, %v5338_v13   ;;  %v1844_v13 = vrot.slane %v3688_v29, 6  ;;  %v2752_v19 = vsel %vm2698_vm0, %v2496_v32, 0.0 }
 0x33b   :  { %v2753_v48 = vadd.f32 %v2752_v19, %v2751_v60  ;;  %v5245_v60 = vperm.slane %v3785_v45, 6 }
 0x33c   :  { %v4092_v4 = vperm.slane %v1844_v13, 0  ;;  %v4102_v13 = vperm.slane %v1843_v46, 0  ;;  %v5251_v46 = vperm.slane %v3612_v10, 6 }
 0x33d   :  { %1131 = vperm.xlu1 %3300, %v5239_v61  }
 0x33e   :  { %1378 = vperm.xlu0 %3338, %v5244_v28  }
 0x342   :  { %3269 = vset.pattern.permute.xlu2 %v3426_v1 }
 0x344   :  { %v508_v37 = vpop.permute.xlu2 %507 }
 0x345   :  { %v2242_v61 = vsub.f32 %v508_v37, %v4086_v2  ;;  %1144 = vperm.xlu1 %3300, %v5343_v49   ;;  %v5344_v37 = vperm.slane %v3518_v41, 6  ;;  %v2246_v49 = vsub.f32 %v534_v20, %v4092_v4  ;;  %v4116_v20 = vpop.permute.xlu1 %513 }
 0x346   :  { %1443 = vperm.xlu0 %3338, %v5247_v30  }
 0x347   :  { %v2498_v44 = vand.u32 2147483647, %v2242_v61  ;;  %v2502_v61 = vand.u32 2147483647, %v2246_v49 }
 0x349   :  { %v2754_v55 = vsel %vm2698_vm0, %v2498_v44, 0.0  ;;  %v5345_v44 = vperm.slane %v3518_v41, 7 }
 0x34a   :  { %637 = vperm.xlu2 %3269, %v5344_v37   ;;  %v2755_v50 = vadd.f32 %v2754_v55, %v2753_v48  ;;  %v5246_v55 = vperm.slane %v3785_v45, 1  ;;  %v5248_v48 = vperm.slane %v3795_v40, 3  ;;  %v5352_v40 = vperm.slane %v3622_v15, 2 }
 0x34b   :  { %v1847_v45 = vrot.slane %v3697_v43, 2 }
 0x34c   :  { %v521_v2 = vpop.permute.xlu2 %520 }
 0x34d   :  { %v2244_v52 = vsub.f32 %v521_v2, %v4102_v13  ;;  %3302 = vset.pattern.permute.xlu1 %v3437_v14  ;;  %v2758_v2 = vsel %vm2698_vm0, %v2502_v61, 0.0  ;;  %v4127_v41 = vpop.permute.xlu1 %526 }
 0x34e   :  { %1508 = vperm.xlu0 %3338, %v5246_v55   ;;  %v5256_v55 = vperm.slane %v3808_v39, 0 }
 0x34f   :  { %v2500_v28 = vand.u32 2147483647, %v2244_v52  ;;  %v5347_v52 = vperm.slane %v3557_v54, 0 }
 0x351   :  { %v2756_v37 = vsel %vm2698_vm0, %v2500_v28, 0.0  ;;  %v5250_v28 = vperm.slane %v3612_v10, 7 }
 0x352   :  { %v2757_v32 = vadd.f32 %v2756_v37, %v2755_v50  ;;  %650 = vperm.xlu2 %3269, %v5345_v44   ;;  %v1845_v50 = vrot.slane %v3688_v29, 7  ;;  %v5249_v37 = vperm.slane %v3622_v15, 1 }
 0x354   :  { %v2759_v19 = vadd.f32 %v2758_v2, %v2757_v32  ;;  %v5348_v32 = vperm.slane %v3557_v54, 1  ;;  %v4146_v2 = vperm.slane %v1845_v50, 0  ;;  %v1848_v50 = vrot.slane %v3697_v43, 3 }
 0x355   :  { %1163 = vperm.xlu1 %3302, %v5251_v46   ;;  %v547_v61 = vpop.permute.xlu1 %546 }
 0x356   :  { %1573 = vperm.xlu0 %3338, %v5245_v60   ;;  %5350 = vst [vmem:[#allocation49_spill] sm:$0xff] %v4146_v2  ;;  %v1846_v60 = vrot.slane %v3697_v43, 1  ;;  %v2248_v30 = vsub.f32 %v547_v61, %v4146_v2  ;;  %v4165_v61 = vperm.slane %v1848_v50, 0  ;;  %v4176_v50 = vperm.slane %v1847_v45, 0 }
 0x357   :  { %v5356_v45 = vperm.slane %v3557_v54, 4 }
 0x358   :  { %v2504_v46 = vand.u32 2147483647, %v2248_v30  ;;  %5353 = vst [vmem:[#allocation51_spill] sm:$0xff] %v4165_v61 }
 0x359   :  { %5355 = vst [vmem:[#allocation52_spill] sm:$0xff] %v4176_v50 }
 0x35a   :  { %3271 = vset.pattern.permute.xlu2 %v3437_v14  ;;  %v2760_v2 = vsel %vm2698_vm0, %v2504_v46, 0.0 }
 0x35b   :  { %v2761_v30 = vadd.f32 %v2760_v2, %v2759_v19 }
 0x35c   :  { %v4132_v49 = vpop.permute.xlu2 %539 }
 0x35d   :  { %1176 = vperm.xlu1 %3302, %v5250_v28   ;;  %5346 = vst [vmem:[#allocation47_spill] sm:$0xff] %v4132_v49 }
 0x35e   :  { %1638 = vperm.xlu0 %3338, %v5248_v48   ;;  %v560_v48 = vpop.permute.xlu1 %559 }
 0x362   :  { %669 = vperm.xlu2 %3271, %v5347_v52   ;;  %v5260_v52 = vperm.slane %v3697_v43, 0 }
 0x364   :  { %v4144_v44 = vpop.permute.xlu2 %552 }
 0x365   :  { %3304 = vset.pattern.permute.xlu1 %v3426_v1  ;;  %5349 = vst [vmem:[#allocation48_spill] sm:$0xff] %v4144_v44  ;;  %v5261_v44 = vperm.slane %v3808_v39, 5 }
 0x366   :  { %1703 = vperm.xlu0 %3338, %v5256_v55  }
 0x36a   :  { %682 = vperm.xlu2 %3271, %v5348_v32   ;;  %v2250_v32 = vsub.f32 %v560_v48, %v5260_v52 }
 0x36c   :  { %v2506_v55 = vand.u32 2147483647, %v2250_v32 }
 0x36d   :  { %1196 = vperm.xlu1 %3304, %v5249_v37   ;;  %v4160_v37 = vperm.slane %v1846_v60, 0  ;;  %v599_v60 = vpop.permute.xlu0 %598 }
 0x36e   :  { %1768 = vperm.xlu0 %3338, %v5261_v44   ;;  %v2762_v48 = vsel %vm2698_vm0, %v2506_v55, 0.0 }
 0x36f   :  { %5351 = vst [vmem:[#allocation50_spill] sm:$0xff] %v4160_v37 }
 0x372   :  { %3273 = vset.pattern.permute.xlu2 %v3426_v1 }
 0x374   :  { %v573_v28 = vpop.permute.xlu2 %572 }
 0x375   :  { %v2252_v10 = vsub.f32 %v573_v28, %v4160_v37  ;;  %1209 = vperm.xlu1 %3304, %v5352_v40   ;;  %v5354_v28 = vperm.slane %v3557_v54, 3  ;;  %v2256_v40 = vsub.f32 %v599_v60, %v4165_v61 }
 0x376   :  { %3343 = vset.pattern.permute.xlu0 %v3437_v14 }
 0x377   :  { %v2508_v49 = vand.u32 2147483647, %v2252_v10  ;;  %v2763_v10 = vadd.f32 %v2762_v48, %v2761_v30  ;;  %v2512_v44 = vand.u32 2147483647, %v2256_v40  ;;  %v4189_v30 = vpop.permute.xlu1 %578  ;;  %v5360_v48 = vperm.slane %v3557_v54, 5 }
 0x378   :  { %5357 = vst [vmem:[#allocation53_spill] sm:$0xff] %v4189_v30 }
 0x379   :  { %v2764_v52 = vsel %vm2698_vm0, %v2508_v49, 0.0  ;;  %v2768_v49 = vsel %vm2698_vm0, %v2512_v44, 0.0 }
 0x37a   :  { %702 = vperm.xlu2 %3273, %v5354_v28   ;;  %v2765_v19 = vadd.f32 %v2764_v52, %v2763_v10  ;;  %v5265_v28 = vperm.slane %v3622_v15, 3  ;;  %v5263_v52 = vperm.slane %v3808_v39, 7 }
 0x37c   :  { %v586_v32 = vpop.permute.xlu2 %585 }
 0x37d   :  { %v2254_v46 = vsub.f32 %v586_v32, %v4176_v50  ;;  %3306 = vset.pattern.permute.xlu1 %v3437_v14  ;;  %v1849_v32 = vrot.slane %v3697_v43, 4 }
 0x37e   :  { %1800 = vperm.xlu0 %3343, %v5263_v52  }
 0x37f   :  { %v2510_v37 = vand.u32 2147483647, %v2254_v46  ;;  %v4198_v40 = vpop.permute.xlu1 %591  ;;  %v5268_v46 = vperm.slane %v3622_v15, 6 }
 0x380   :  { %5358 = vst [vmem:[#allocation54_spill] sm:$0xff] %v4198_v40 }
 0x381   :  { %v2766_v2 = vsel %vm2698_vm0, %v2510_v37, 0.0  ;;  %v5264_v37 = vperm.slane %v3622_v15, 4 }
 0x382   :  { %v2767_v55 = vadd.f32 %v2766_v2, %v2765_v19  ;;  %715 = vperm.xlu2 %3273, %v5356_v45   ;;  %v5361_v19 = vperm.slane %v3557_v54, 6  ;;  %v1850_v45 = vrot.slane %v3697_v43, 5 }
 0x384   :  { %v2769_v60 = vadd.f32 %v2768_v49, %v2767_v55  ;;  %v4211_v55 = vperm.slane %v1849_v32, 0  ;;  %v1851_v49 = vrot.slane %v3697_v43, 6  ;;  %v4218_v52 = vperm.slane %v1850_v45, 0 }
 0x385   :  { %1228 = vperm.xlu1 %3306, %v5265_v28   ;;  %v5277_v32 = vperm.slane %v3706_v3, 0 }
 0x386   :  { %5363 = vst [vmem:[#allocation57_spill] sm:$0xff] %v4211_v55 }
 0x387   :  { %v612_v10 = vpop.permute.xlu1 %611  ;;  %5364 = vst [vmem:[#allocation58_spill] sm:$0xff] %v4218_v52 }
 0x38a   :  { %3275 = vset.pattern.permute.xlu2 %v3437_v14 }
 0x38c   :  { %v4200_v44 = vpop.permute.xlu2 %604 }
 0x38d   :  { %1241 = vperm.xlu1 %3306, %v5264_v37   ;;  %5359 = vst [vmem:[#allocation55_spill] sm:$0xff] %v4200_v44  ;;  %v4221_v37 = vperm.slane %v1851_v49, 0  ;;  %v664_v44 = vpop.permute.xlu0 %663 }
 0x38e   :  { %v2266_v45 = vsub.f32 %v664_v44, %v5277_v32  ;;  %v1855_v32 = vrot.slane %v3706_v3, 3 }
 0x38f   :  { %5365 = vst [vmem:[#allocation59_spill] sm:$0xff] %v4221_v37  ;;  %v625_v54 = vpop.permute.xlu1 %624 }
 0x390   :  { %v2260_v39 = vsub.f32 %v625_v54, %v4218_v52 }
 0x392   :  { %734 = vperm.xlu2 %3275, %v5360_v48   ;;  %v2258_v48 = vsub.f32 %v612_v10, %v4211_v55  ;;  %v1852_v10 = vrot.slane %v3697_v43, 7  ;;  %v2516_v55 = vand.u32 2147483647, %v2260_v39 }
 0x394   :  { %v4209_v2 = vpop.permute.xlu2 %617  ;;  %v2514_v28 = vand.u32 2147483647, %v2258_v48  ;;  %v5367_v48 = vperm.slane %v3572_v59, 0  ;;  %v4234_v54 = vperm.slane %v1852_v10, 0  ;;  %v5276_v10 = vperm.slane %v3641_v38, 0 }
 0x395   :  { %3308 = vset.pattern.permute.xlu1 %v3426_v1  ;;  %5362 = vst [vmem:[#allocation56_spill] sm:$0xff] %v4209_v2  ;;  %v729_v39 = vpop.permute.xlu0 %728 }
 0x396   :  { %v2770_v49 = vsel %vm2698_vm0, %v2514_v28, 0.0  ;;  %5368 = vst [vmem:[#allocation60_spill] sm:$0xff] %v4234_v54 }
 0x397   :  { %v2771_v40 = vadd.f32 %v2770_v49, %v2769_v60 }
 0x39a   :  { %747 = vperm.xlu2 %3275, %v5361_v19  }
 0x39d   :  { %1261 = vperm.xlu1 %3308, %v5268_v46   ;;  %v5366_v46 = vperm.slane %v3622_v15, 7 }
 0x3a2   :  { %3277 = vset.pattern.permute.xlu2 %v3426_v1 }
 0x3a4   :  { %v638_v19 = vpop.permute.xlu2 %637 }
 0x3a5   :  { %v2262_v2 = vsub.f32 %v638_v19, %v4221_v37  ;;  %1274 = vperm.xlu1 %3308, %v5366_v46   ;;  %v2522_v37 = vand.u32 2147483647, %v2266_v45  ;;  %v2772_v46 = vsel %vm2698_vm0, %v2516_v55, 0.0  ;;  %v5369_v45 = vperm.slane %v3572_v59, 1  ;;  %v4245_v55 = vpop.permute.xlu1 %643 }
 0x3a6   :  { %v2773_v44 = vadd.f32 %v2772_v46, %v2771_v40  ;;  %5370 = vst [vmem:[#allocation61_spill] sm:$0xff] %v4245_v55  ;;  %v4250_v40 = vpop.permute.xlu0 %793  ;;  %v1856_v55 = vrot.slane %v3706_v3, 4 }
 0x3a7   :  { %v2518_v61 = vand.u32 2147483647, %v2262_v2  ;;  %v2778_v60 = vsel %vm2698_vm0, %v2522_v37, 0.0 }
 0x3a9   :  { %v2774_v15 = vsel %vm2698_vm0, %v2518_v61, 0.0 }
 0x3aa   :  { %767 = vperm.xlu2 %3277, %v5367_v48   ;;  %v2775_v2 = vadd.f32 %v2774_v15, %v2773_v44  ;;  %v1853_v44 = vrot.slane %v3706_v3, 1 }
 0x3ac   :  { %v651_v19 = vpop.permute.xlu2 %650 }
 0x3ad   :  { %v2264_v52 = vsub.f32 %v651_v19, %v4234_v54  ;;  %3310 = vset.pattern.permute.xlu1 %v3437_v14  ;;  %v4255_v15 = vpop.permute.xlu1 %656  ;;  %v5373_v19 = vperm.slane %v3572_v59, 2 }
 0x3ae   :  { %5371 = vst [vmem:[#allocation62_spill] sm:$0xff] %v4255_v15  ;;  %v4261_v46 = vpop.permute.xlu0 %858 }
 0x3af   :  { %v2520_v28 = vand.u32 2147483647, %v2264_v52  ;;  %v5275_v52 = vperm.slane %v3641_v38, 1 }
 0x3b1   :  { %v2776_v49 = vsel %vm2698_vm0, %v2520_v28, 0.0 }
 0x3b2   :  { %v2777_v48 = vadd.f32 %v2776_v49, %v2775_v2  ;;  %780 = vperm.xlu2 %3277, %v5369_v45   ;;  %v5279_v2 = vperm.slane %v3641_v38, 3  ;;  %v4268_v49 = vperm.slane %v1853_v44, 0  ;;  %v1857_v44 = vrot.slane %v3706_v3, 5 }
 0x3b4   :  { %v2779_v61 = vadd.f32 %v2778_v60, %v2777_v48  ;;  %v5374_v60 = vperm.slane %v3572_v59, 3  ;;  %5375 = vst [vmem:[#allocation64_spill] sm:$0xff] %v4268_v49  ;;  %v1854_v48 = vrot.slane %v3706_v3, 2 }
 0x3b5   :  { %1293 = vperm.xlu1 %3310, %v5276_v10   ;;  %v677_v28 = vpop.permute.xlu1 %676 }
 0x3b6   :  { %v4278_v10 = vperm.slane %v1854_v48, 0 }
 0x3ba   :  { %3279 = vset.pattern.permute.xlu2 %v3437_v14 }
 0x3bc   :  { %v4257_v37 = vpop.permute.xlu2 %669 }
 0x3bd   :  { %1306 = vperm.xlu1 %3310, %v5275_v52   ;;  %5372 = vst [vmem:[#allocation63_spill] sm:$0xff] %v4257_v37  ;;  %v2268_v52 = vsub.f32 %v677_v28, %v4268_v49  ;;  %v690_v37 = vpop.permute.xlu1 %689  ;;  %v4289_v28 = vperm.slane %v1857_v44, 0 }
 0x3be   :  { %v2270_v15 = vsub.f32 %v690_v37, %v4278_v10 }
 0x3bf   :  { %5380 = vst [vmem:[#allocation68_spill] sm:$0xff] %v4289_v28  ;;  %v2276_v37 = vsub.f32 %v729_v39, %v4289_v28  ;;  %v5285_v39 = vperm.slane %v3641_v38, 5  ;;  %v5383_v28 = vperm.slane %v3572_v59, 6 }
 0x3c0   :  { %v2526_v49 = vand.u32 2147483647, %v2270_v15 }
 0x3c2   :  { %799 = vperm.xlu2 %3279, %v5373_v19   ;;  %v4275_v19 = vpop.permute.xlu0 %923 }
 0x3c3   :  { %5377 = vst [vmem:[#allocation66_spill] sm:$0xff] %v4275_v19  ;;  %v5379_v19 = vperm.slane %v3641_v38, 4 }
 0x3c4   :  { %v4271_v45 = vpop.permute.xlu2 %682 }
 0x3c5   :  { %3313 = vset.pattern.permute.xlu1 %v3426_v1  ;;  %5376 = vst [vmem:[#allocation65_spill] sm:$0xff] %v4271_v45  ;;  %v4284_v45 = vperm.slane %v1855_v32, 0  ;;  %v5382_v32 = vperm.slane %v3572_v59, 5 }
 0x3c7   :  { %5378 = vst [vmem:[#allocation67_spill] sm:$0xff] %v4284_v45 }
 0x3ca   :  { %812 = vperm.xlu2 %3279, %v5374_v60   ;;  %v2524_v60 = vand.u32 2147483647, %v2268_v52  ;;  %v4293_v50 = vpop.permute.xlu0 %988 }
 0x3cb   :  { %5381 = vst [vmem:[#allocation69_spill] sm:$0xff] %v4293_v50  ;;  %v2532_v50 = vand.u32 2147483647, %v2276_v37 }
 0x3cc   :  { %v2780_v48 = vsel %vm2698_vm0, %v2524_v60, 0.0 }
 0x3cd   :  { %1326 = vperm.xlu1 %3313, %v5279_v2   ;;  %v2781_v30 = vadd.f32 %v2780_v48, %v2779_v61  ;;  %v4304_v61 = vpop.permute.xlu1 %708 }
 0x3d2   :  { %3281 = vset.pattern.permute.xlu2 %v3426_v1 }
 0x3d4   :  { %v703_v54 = vpop.permute.xlu2 %702 }
 0x3d5   :  { %v2272_v2 = vsub.f32 %v703_v54, %v4284_v45  ;;  %1339 = vperm.xlu1 %3313, %v5379_v19   ;;  %v2782_v54 = vsel %vm2698_vm0, %v2526_v49, 0.0  ;;  %v4299_v45 = vperm.slane %v1856_v55, 0  ;;  %v4308_v49 = vpop.permute.xlu0 %1053  ;;  %v4318_v37 = vpop.permute.xlu1 %721 }
 0x3d6   :  { %v2783_v60 = vadd.f32 %v2782_v54, %v2781_v30  ;;  %v5284_v30 = vperm.slane %v3641_v38, 6 }
 0x3d7   :  { %v2528_v52 = vand.u32 2147483647, %v2272_v2 }
 0x3d9   :  { %v2784_v44 = vsel %vm2698_vm0, %v2528_v52, 0.0  ;;  %v2788_v52 = vsel %vm2698_vm0, %v2532_v50, 0.0  ;;  %v5384_v50 = vperm.slane %v3654_v26, 0  ;;  %v2195_v26 = vsub.f32 %v3657_v16, %v3849_v6  ;;  %v5388_v6 = vld [vmem:[#allocation33_spill] sm:$0xff] }
 0x3da   :  { %832 = vperm.xlu2 %3281, %v5382_v32   ;;  %v2785_v48 = vadd.f32 %v2784_v44, %v2783_v60  ;;  %v5385_v60 = vperm.slane %v3572_v59, 7 }
 0x3db   :  { %v2187_v44 = vsub.f32 %v3606_v9, %v5384_v50  ;;  %v5387_v50 = vperm.slane %v3585_v63, 0 }
 0x3dc   :  { %v716_v19 = vpop.permute.xlu2 %715 }
 0x3dd   :  { %v2274_v15 = vsub.f32 %v716_v19, %v4299_v45  ;;  %3315 = vset.pattern.permute.xlu1 %v3437_v14  ;;  %v4321_v54 = vpop.permute.xlu0 %1118 }
 0x3df   :  { %v2530_v2 = vand.u32 2147483647, %v2274_v15 }
 0x3e1   :  { %v2786_v32 = vsel %vm2698_vm0, %v2530_v2, 0.0 }
 0x3e2   :  { %v2787_v55 = vadd.f32 %v2786_v32, %v2785_v48  ;;  %845 = vperm.xlu2 %3281, %v5383_v28   ;;  %v2189_v28 = vsub.f32 %v3814_v33, %v3824_v53  ;;  %v2443_v48 = vand.u32 2147483647, %v2187_v44  ;;  %v2191_v32 = vsub.f32 %v3626_v17, %v3828_v11 }
 0x3e3   :  { %v2197_v17 = vsub.f32 %v3674_v5, %v3853_v18  ;;  %v1858_v11 = vrot.slane %v3706_v3, 6  ;;  %v2451_v44 = vand.u32 2147483647, %v2195_v26 }
 0x3e4   :  { %v4313_v19 = vadd.f32 %v2788_v52, %v2787_v55  ;;  %v2445_v2 = vand.u32 2147483647, %v2189_v28  ;;  %v742_v55 = vpop.permute.xlu1 %741  ;;  %v2193_v52 = vsub.f32 %v3645_v47, %v3847_v57  ;;  %v2954_v59 = vsel %vm2698_vm0, %v2443_v48, 0.0 }
 0x3e5   :  { %1358 = vperm.xlu1 %3315, %v5285_v39   ;;  %v4339_v53 = vpop.permute.xlu0 %1183  ;;  %v2447_v33 = vand.u32 2147483647, %v2191_v32  ;;  %v5286_v57 = vperm.slane %v3778_v25, 0  ;;  %v2453_v18 = vand.u32 2147483647, %v2197_v17  ;;  %v5394_v39 = vld [vmem:[#allocation16_spill] sm:$0xff] }
 0x3e6   :  { %5386 = vst [vmem:[#allocation70_spill] sm:$0xff] %v4339_v53  ;;  %v2955_v9 = vsel %vm2698_vm0, %v2445_v2, 0.0  ;;  %v2449_v28 = vand.u32 2147483647, %v2193_v52  ;;  %v5389_v2 = vld [vmem:[#allocation11_spill] sm:$0xff]  ;;  %v4359_v52 = vperm.slane %v1858_v11, 0 }
 0x3e7   :  { %v2956_v47 = vadd.f32 %v2955_v9, %v2954_v59  ;;  %v2957_v16 = vsel %vm2698_vm0, %v2447_v33, 0.0  ;;  %v2201_v48 = vsub.f32 %v5389_v2, %v5388_v6  ;;  %v1859_v9 = vrot.slane %v3706_v3, 7  ;;  %v5393_v11 = vld [vmem:[#allocation35_spill] sm:$0xff] }
 0x3e8   :  { %v2959_v5 = vsel %vm2698_vm0, %v2449_v28, 0.0  ;;  %v5390_v33 = vperm.slane %v3665_v12, 0  ;;  %v2963_v17 = vsel %vm2698_vm0, %v2453_v18, 0.0  ;;  %v2205_v53 = vsub.f32 %v5394_v39, %v5393_v11 }
 0x3e9   :  { %v2958_v26 = vadd.f32 %v2957_v16, %v2956_v47  ;;  %v4374_v47 = vperm.slane %v1859_v9, 0 }
 0x3ea   :  { %3283 = vset.pattern.permute.xlu2 %v3437_v14 }
 0x3eb   :  { %v2960_v2 = vadd.f32 %v2959_v5, %v2958_v26 }
 0x3ec   :  { %v4330_v15 = vpop.permute.xlu2 %734  ;;  %v755_v59 = vpop.permute.xlu1 %754 }
 0x3ed   :  { %1371 = vperm.xlu1 %3315, %v5284_v30   ;;  %v2457_v30 = vand.u32 2147483647, %v2201_v48  ;;  %v4368_v28 = vpop.permute.xlu0 %1248  ;;  %v5396_v48 = vld [vmem:[#allocation18_spill] sm:$0xff]  ;;  %v2280_v11 = vsub.f32 %v755_v59, %v4374_v47  ;;  %v5400_v59 = vld [vmem:[#allocation28_spill] sm:$0xff] }
 0x3ee   :  { %5392 = vst [vmem:[#allocation33_spill] sm:$0xff] %v4368_v28  ;;  %v2207_v26 = vsub.f32 %v5396_v48, %v3892_v35  ;;  %v2213_v28 = vsub.f32 %v5400_v59, %v3916_v62 }
 0x3ef   :  { %v2967_v39 = vsel %vm2698_vm0, %v2457_v30, 0.0 }
 0x3f0   :  { %v2463_v30 = vand.u32 2147483647, %v2207_v26 }
 0x3f2   :  { %864 = vperm.xlu2 %3283, %v5385_v60   ;;  %v2199_v60 = vsub.f32 %v3692_v36, %v3855_v0  ;;  %v2961_v36 = vsel %vm2698_vm0, %v2451_v44, 0.0  ;;  %v5395_v44 = vld [vmem:[#allocation12_spill] sm:$0xff]  ;;  %v2973_v62 = vsel %vm2698_vm0, %v2463_v30, 0.0 }
 0x3f3   :  { %v2962_v16 = vadd.f32 %v2961_v36, %v2960_v2  ;;  %v5287_v18 = vperm.slane %v5395_v44, 0  ;;  %v2461_v36 = vand.u32 2147483647, %v2205_v53  ;;  %v1860_v53 = vrot.slane %v5395_v44, 1 }
 0x3f4   :  { %v4356_v32 = vpop.permute.xlu2 %747  ;;  %v2455_v0 = vand.u32 2147483647, %v2199_v60  ;;  %v1861_v60 = vrot.slane %v5395_v44, 2 }
 0x3f5   :  { %3317 = vset.pattern.permute.xlu1 %v3426_v1 }
 0x3f6   :  { %v2965_v12 = vsel %vm2698_vm0, %v2455_v0, 0.0  ;;  %v4390_v48 = vperm.slane %v1861_v60, 0 }
 0x3f8   :  { %v2286_v26 = vsub.f32 %v4250_v40, %v4390_v48 }
 0x3fa   :  { %877 = vperm.xlu2 %3283, %v5387_v50   ;;  %v5391_v50 = vld [vmem:[#allocation13_spill] sm:$0xff] }
 0x3fb   :  { %v2203_v6 = vsub.f32 %v5391_v50, %v5390_v33  ;;  %v2964_v33 = vadd.f32 %v2963_v17, %v2962_v16  ;;  %v5399_v16 = vld [vmem:[#allocation24_spill] sm:$0xff] }
 0x3fd   :  { %1391 = vperm.xlu1 %3317, %v5286_v57   ;;  %v2278_v57 = vsub.f32 %v742_v55, %v4359_v52  ;;  %v2459_v5 = vand.u32 2147483647, %v2203_v6  ;;  %v5397_v55 = vld [vmem:[#allocation21_spill] sm:$0xff]  ;;  %v5398_v6 = vperm.slane %v3778_v25, 1  ;;  %v2966_v35 = vadd.f32 %v2965_v12, %v2964_v33 }
 0x3fe   :  { %v2209_v9 = vsub.f32 %v5397_v55, %v3900_v21  ;;  %v2211_v21 = vsub.f32 %v5399_v16, %v3907_v8  ;;  %v2536_v12 = vand.u32 2147483647, %v2280_v11  ;;  %v4404_v8 = vpop.permute.xlu0 %1313 }
 0x3ff   :  { %v2534_v2 = vand.u32 2147483647, %v2278_v57  ;;  %v2969_v17 = vsel %vm2698_vm0, %v2459_v5, 0.0  ;;  %v2968_v57 = vadd.f32 %v2967_v39, %v2966_v35 }
 0x400   :  { %v2465_v55 = vand.u32 2147483647, %v2209_v9  ;;  %v5401_v9 = vperm.slane %v3585_v63, 2  ;;  %v2467_v35 = vand.u32 2147483647, %v2211_v21 }
 0x401   :  { %v2790_v60 = vsel %vm2698_vm0, %v2534_v2, 0.0  ;;  %v2970_v5 = vadd.f32 %v2969_v17, %v2968_v57  ;;  %v4412_v2 = vperm.slane %v1860_v53, 0  ;;  %v2469_v17 = vand.u32 2147483647, %v2213_v28  ;;  %v5403_v57 = vld [vmem:[#allocation32_spill] sm:$0xff] }
 0x402   :  { %3285 = vset.pattern.permute.xlu2 %v3426_v1  ;;  %v2791_v39 = vadd.f32 %v2790_v60, %v4313_v19  ;;  %v2217_v59 = vsub.f32 %v5403_v57, %v3940_v22  ;;  %v2792_v19 = vsel %vm2698_vm0, %v2536_v12, 0.0  ;;  %v5404_v28 = vperm.slane %v3679_v24, 0 }
 0x403   :  { %v2979_v12 = vsel %vm2698_vm0, %v2469_v17, 0.0 }
 0x404   :  { %v768_v50 = vpop.permute.xlu2 %767  ;;  %v2793_v53 = vadd.f32 %v2792_v19, %v2791_v39 }
 0x405   :  { %v2282_v0 = vsub.f32 %v768_v50, %v5287_v18  ;;  %1404 = vperm.xlu1 %3317, %v5398_v6   ;;  %v4398_v50 = vpop.permute.xlu1 %773  ;;  %v2971_v6 = vsel %vm2698_vm0, %v2461_v36, 0.0  ;;  %v5402_v36 = vld [vmem:[#allocation31_spill] sm:$0xff]  ;;  %v1412_v18 = vperm.slane %v3778_v25, 2 }
 0x406   :  { %v2215_v16 = vsub.f32 %v5402_v36, %v3926_v58  ;;  %v2972_v11 = vadd.f32 %v2971_v6, %v2970_v5  ;;  %v2542_v58 = vand.u32 2147483647, %v2286_v26  ;;  %v2977_v6 = vsel %vm2698_vm0, %v2467_v35, 0.0  ;;  %v371_v19 = vpop.permute.xlu0 %370 }
 0x407   :  { %v2538_v33 = vand.u32 2147483647, %v2282_v0  ;;  %v2975_v0 = vsel %vm2698_vm0, %v2465_v55, 0.0  ;;  %v5405_v55 = vld [vmem:[#allocation34_spill] sm:$0xff]  ;;  %v5406_v35 = vperm.slane %v3585_v63, 3 }
 0x408   :  { %v2974_v21 = vadd.f32 %v2973_v62, %v2972_v11  ;;  %v2471_v5 = vand.u32 2147483647, %v2215_v16  ;;  %v2798_v24 = vsel %vm2698_vm0, %v2542_v58, 0.0  ;;  %v2223_v58 = vsub.f32 %v3934_v56, %v3974_v7  ;;  %v5408_v7 = vld [vmem:[#allocation38_spill] sm:$0xff] }
 0x409   :  { %v2794_v60 = vsel %vm2698_vm0, %v2538_v33, 0.0  ;;  %v2473_v33 = vand.u32 2147483647, %v2217_v59  ;;  %v2221_v59 = vsub.f32 %v371_v19, %v3958_v31 }
 0x40a   :  { %897 = vperm.xlu2 %3285, %v5401_v9   ;;  %v2219_v9 = vsub.f32 %v5405_v55, %v5404_v28  ;;  %v2976_v22 = vadd.f32 %v2975_v0, %v2974_v21  ;;  %v2795_v57 = vadd.f32 %v2794_v60, %v2793_v53  ;;  %v2981_v16 = vsel %vm2698_vm0, %v2471_v5, 0.0 }
 0x40b   :  { %v2983_v60 = vsel %vm2698_vm0, %v2473_v33, 0.0  ;;  %v1425_v5 = vperm.slane %v3778_v25, 3  ;;  %v2479_v31 = vand.u32 2147483647, %v2223_v58 }
 0x40c   :  { %v781_v40 = vpop.permute.xlu2 %780  ;;  %v2978_v62 = vadd.f32 %v2977_v6, %v2976_v22  ;;  %v2475_v11 = vand.u32 2147483647, %v2219_v9  ;;  %v2477_v6 = vand.u32 2147483647, %v2221_v59  ;;  %v2225_v9 = vsub.f32 %v3963_v23, %v3978_v51  ;;  %v5407_v22 = vld [vmem:[#allocation36_spill] sm:$0xff] }
 0x40d   :  { %v2284_v30 = vsub.f32 %v781_v40, %v4412_v2  ;;  %3319 = vset.pattern.permute.xlu1 %v3437_v14  ;;  %v4428_v26 = vpop.permute.xlu1 %786  ;;  %v5410_v23 = vperm.slane %v3585_v63, 4 }
 0x40e   :  { %v2980_v0 = vadd.f32 %v2979_v12, %v2978_v62  ;;  %v2985_v21 = vsel %vm2698_vm0, %v2475_v11, 0.0  ;;  %v5409_v12 = vld [vmem:[#allocation37_spill] sm:$0xff]  ;;  %v2481_v62 = vand.u32 2147483647, %v2225_v9  ;;  %v5413_v9 = vperm.slane %v3688_v29, 0  ;;  %v5417_v29 = vld [vmem:[#allocation44_spill] sm:$0xff] }
 0x40f   :  { %v2540_v36 = vand.u32 2147483647, %v2284_v30  ;;  %v2229_v33 = vsub.f32 %v5409_v12, %v5408_v7  ;;  %v5415_v12 = vld [vmem:[#allocation39_spill] sm:$0xff] }
 0x410   :  { %v2982_v30 = vadd.f32 %v2981_v16, %v2980_v0 }
 0x411   :  { %v2796_v40 = vsel %vm2698_vm0, %v2540_v36, 0.0  ;;  %v2987_v36 = vsel %vm2698_vm0, %v2477_v6, 0.0  ;;  %v2485_v51 = vand.u32 2147483647, %v2229_v33  ;;  %v1862_v6 = vrot.slane %v5395_v44, 3  ;;  %v5416_v33 = vld [vmem:[#allocation42_spill] sm:$0xff] }
 0x412   :  { %v2797_v39 = vadd.f32 %v2796_v40, %v2795_v57  ;;  %910 = vperm.xlu2 %3285, %v5406_v35   ;;  %v2984_v53 = vadd.f32 %v2983_v60, %v2982_v30  ;;  %v2227_v57 = vsub.f32 %v5407_v22, %v3986_v42  ;;  %v2989_v40 = vsel %vm2698_vm0, %v2479_v31, 0.0  ;;  %v436_v35 = vpop.permute.xlu0 %435  ;;  %v5411_v30 = vld [vmem:[#allocation40_spill] sm:$0xff] }
 0x413   :  { %v2991_v42 = vsel %vm2698_vm0, %v2481_v62, 0.0  ;;  %v2231_v11 = vsub.f32 %v436_v35, %v4009_v34  ;;  %v2995_v60 = vsel %vm2698_vm0, %v2485_v51, 0.0  ;;  %v5412_v34 = vperm.slane %v3585_v63, 5 }
 0x414   :  { %v4434_v17 = vadd.f32 %v2798_v24, %v2797_v39  ;;  %v2986_v28 = vadd.f32 %v2985_v21, %v2984_v53  ;;  %v2483_v39 = vand.u32 2147483647, %v2227_v57  ;;  %v2233_v21 = vsub.f32 %v5411_v30, %v4014_v27 }
 0x415   :  { %1423 = vperm.xlu1 %3319, %v1412_v18   ;;  %v807_v55 = vpop.permute.xlu1 %806  ;;  %v2487_v58 = vand.u32 2147483647, %v2231_v11  ;;  %v4476_v27 = vperm.slane %v1862_v6, 0  ;;  %v1863_v62 = vrot.slane %v5395_v44, 4  ;;  %v1864_v51 = vrot.slane %v5395_v44, 5 }
 0x416   :  { %v2988_v56 = vadd.f32 %v2987_v36, %v2986_v28  ;;  %v2993_v0 = vsel %vm2698_vm0, %v2483_v39, 0.0  ;;  %v5291_v28 = vperm.slane %v3778_v25, 5  ;;  %v5414_v36 = vld [vmem:[#allocation41_spill] sm:$0xff]  ;;  %v2489_v57 = vand.u32 2147483647, %v2233_v21 }
 0x417   :  { %v2235_v22 = vsub.f32 %v5414_v36, %v5413_v9  ;;  %v2997_v7 = vsel %vm2698_vm0, %v2487_v58, 0.0  ;;  %v4490_v30 = vperm.slane %v1863_v62, 0  ;;  %v1866_v58 = vrot.slane %v5395_v44, 7 }
 0x418   :  { %v2990_v24 = vadd.f32 %v2989_v40, %v2988_v56  ;;  %v2237_v40 = vsub.f32 %v5416_v33, %v5415_v12  ;;  %v2999_v11 = vsel %vm2698_vm0, %v2489_v57, 0.0  ;;  %v5420_v12 = vperm.slane %v3778_v25, 6 }
 0x419   :  { %v2491_v35 = vand.u32 2147483647, %v2235_v22 }
 0x41a   :  { %3287 = vset.pattern.permute.xlu2 %v3437_v14  ;;  %v2992_v19 = vadd.f32 %v2991_v42, %v2990_v24  ;;  %v5418_v24 = vld [vmem:[#allocation43_spill] sm:$0xff] }
 0x41c   :  { %v4455_v16 = vpop.permute.xlu2 %799  ;;  %v2994_v53 = vadd.f32 %v2993_v0, %v2992_v19  ;;  %v501_v0 = vpop.permute.xlu0 %500  ;;  %v2288_v19 = vsub.f32 %v807_v55, %v4476_v27 }
 0x41d   :  { %1436 = vperm.xlu1 %3319, %v1425_v5   ;;  %v820_v59 = vpop.permute.xlu1 %819 }
 0x41e   :  { %v2996_v31 = vadd.f32 %v2995_v60, %v2994_v53  ;;  %v2493_v60 = vand.u32 2147483647, %v2237_v40  ;;  %v3001_v53 = vsel %vm2698_vm0, %v2491_v35, 0.0  ;;  %v2544_v22 = vand.u32 2147483647, %v2288_v19  ;;  %v5421_v35 = vld [vmem:[#allocation46_spill] sm:$0xff] }
 0x41f   :  { %v2290_v55 = vsub.f32 %v820_v59, %v4490_v30  ;;  %v4503_v40 = vperm.slane %v1866_v58, 0 }
 0x420   :  { %v2998_v39 = vadd.f32 %v2997_v7, %v2996_v31  ;;  %v4495_v31 = vperm.slane %v1864_v51, 0  ;;  %v3003_v57 = vsel %vm2698_vm0, %v2493_v60, 0.0  ;;  %v2800_v51 = vsel %vm2698_vm0, %v2544_v22, 0.0  ;;  %v5423_v22 = vld [vmem:[#allocation47_spill] sm:$0xff] }
 0x421   :  { %v2546_v59 = vand.u32 2147483647, %v2290_v55  ;;  %v2801_v60 = vadd.f32 %v2800_v51, %v4434_v17  ;;  %v2247_v17 = vsub.f32 %v5423_v22, %v4092_v4 }
 0x422   :  { %929 = vperm.xlu2 %3287, %v5410_v23   ;;  %v2239_v23 = vsub.f32 %v5418_v24, %v5417_v29  ;;  %v3000_v21 = vadd.f32 %v2999_v11, %v2998_v39  ;;  %v1865_v39 = vrot.slane %v5395_v44, 6  ;;  %v2243_v29 = vsub.f32 %v4116_v20, %v5421_v35 }
 0x424   :  { %v4473_v56 = vpop.permute.xlu2 %812  ;;  %v2495_v6 = vand.u32 2147483647, %v2239_v23  ;;  %v3002_v33 = vadd.f32 %v3001_v53, %v3000_v21  ;;  %v5422_v21 = vperm.slane %v3585_v63, 7  ;;  %v2296_v53 = vsub.f32 %v4261_v46, %v4503_v40  ;;  %v566_v51 = vpop.permute.xlu0 %565 }
 0x425   :  { %3321 = vset.pattern.permute.xlu1 %v3426_v1  ;;  %v4486_v42 = vpop.permute.xlu1 %838  ;;  %v4517_v58 = vperm.slane %v1865_v39, 0  ;;  %v2499_v20 = vand.u32 2147483647, %v2243_v29  ;;  %v2503_v29 = vand.u32 2147483647, %v2247_v17 }
 0x426   :  { %v3005_v62 = vsel %vm2698_vm0, %v2495_v6, 0.0  ;;  %v3004_v23 = vadd.f32 %v3003_v57, %v3002_v33  ;;  %v2245_v6 = vsub.f32 %v4127_v41, %v4102_v13  ;;  %v5425_v33 = vld [vmem:[#allocation48_spill] sm:$0xff] }
 0x428   :  { %v2501_v35 = vand.u32 2147483647, %v2245_v6 }
 0x42a   :  { %942 = vperm.xlu2 %3287, %v5412_v34   ;;  %v5419_v34 = vld [vmem:[#allocation45_spill] sm:$0xff]  ;;  %v3011_v6 = vsel %vm2698_vm0, %v2501_v35, 0.0 }
 0x42b   :  { %v2241_v9 = vsub.f32 %v501_v0, %v5419_v34  ;;  %v3006_v0 = vadd.f32 %v3005_v62, %v3004_v23  ;;  %v3009_v62 = vsel %vm2698_vm0, %v2499_v20, 0.0 }
 0x42d   :  { %1456 = vperm.xlu1 %3321, %v5291_v28   ;;  %v2497_v24 = vand.u32 2147483647, %v2241_v9  ;;  %v4510_v19 = vpop.permute.xlu1 %851 }
 0x42f   :  { %v3007_v34 = vsel %vm2698_vm0, %v2497_v24, 0.0  ;;  %v5290_v24 = vperm.slane %v3778_v25, 7 }
 0x430   :  { %v3008_v46 = vadd.f32 %v3007_v34, %v3006_v0 }
 0x432   :  { %3289 = vset.pattern.permute.xlu2 %v3426_v1  ;;  %v3010_v23 = vadd.f32 %v3009_v62, %v3008_v46  ;;  %v5429_v46 = vld [vmem:[#allocation50_spill] sm:$0xff]  ;;  %v5432_v62 = vld [vmem:[#allocation52_spill] sm:$0xff] }
 0x434   :  { %v833_v36 = vpop.permute.xlu2 %832  ;;  %v3012_v22 = vadd.f32 %v3011_v6, %v3010_v23 }
 0x435   :  { %v2292_v7 = vsub.f32 %v833_v36, %v4495_v31  ;;  %1469 = vperm.xlu1 %3321, %v5420_v12   ;;  %v2802_v36 = vsel %vm2698_vm0, %v2546_v59, 0.0  ;;  %v5424_v12 = vld [vmem:[#allocation49_spill] sm:$0xff]  ;;  %v872_v20 = vpop.permute.xlu1 %871 }
 0x436   :  { %v2803_v55 = vadd.f32 %v2802_v36, %v2801_v60  ;;  %v2249_v13 = vsub.f32 %v5425_v33, %v5424_v12  ;;  %v3013_v36 = vsel %vm2698_vm0, %v2503_v29, 0.0  ;;  %v5434_v29 = vld [vmem:[#allocation51_spill] sm:$0xff] }
 0x437   :  { %v2548_v11 = vand.u32 2147483647, %v2292_v7  ;;  %v2552_v7 = vand.u32 2147483647, %v2296_v53 }
 0x438   :  { %v2505_v34 = vand.u32 2147483647, %v2249_v13 }
 0x439   :  { %v2804_v63 = vsel %vm2698_vm0, %v2548_v11, 0.0  ;;  %v5426_v11 = vld [vmem:[#allocation8_spill] sm:$0xff]  ;;  %v2808_v60 = vsel %vm2698_vm0, %v2552_v7, 0.0  ;;  %v5431_v7 = vld [vmem:[#allocation25_spill] sm:$0xff] }
 0x43a   :  { %962 = vperm.xlu2 %3289, %v5422_v21   ;;  %v2805_v39 = vadd.f32 %v2804_v63, %v2803_v55  ;;  %v5427_v0 = vperm.slane %v5426_v11, 0  ;;  %v5428_v21 = vperm.slane %v3697_v43, 0  ;;  %v3015_v63 = vsel %vm2698_vm0, %v2505_v34, 0.0  ;;  %v5430_v55 = vld [vmem:[#allocation53_spill] sm:$0xff] }
 0x43b   :  { %v2253_v43 = vsub.f32 %v5430_v55, %v5429_v46  ;;  %v5289_v12 = vperm.slane %v5431_v7, 0  ;;  %v5439_v55 = vld [vmem:[#allocation58_spill] sm:$0xff] }
 0x43c   :  { %v846_v9 = vpop.permute.xlu2 %845  ;;  %v2251_v53 = vsub.f32 %v566_v51, %v5428_v21 }
 0x43d   :  { %v2294_v57 = vsub.f32 %v846_v9, %v4517_v58  ;;  %3323 = vset.pattern.permute.xlu1 %v3437_v14  ;;  %v885_v51 = vpop.permute.xlu1 %884 }
 0x43e   :  { %v2507_v17 = vand.u32 2147483647, %v2251_v53 }
 0x43f   :  { %v2550_v41 = vand.u32 2147483647, %v2294_v57  ;;  %v3014_v57 = vadd.f32 %v3013_v36, %v3012_v22 }
 0x440   :  { %v3017_v13 = vsel %vm2698_vm0, %v2507_v17, 0.0  ;;  %v5438_v17 = vperm.slane %v5426_v11, 1 }
 0x441   :  { %v2806_v4 = vsel %vm2698_vm0, %v2550_v41, 0.0  ;;  %v3016_v33 = vadd.f32 %v3015_v63, %v3014_v57  ;;  %v2509_v41 = vand.u32 2147483647, %v2253_v43  ;;  %v631_v57 = vpop.permute.xlu0 %630 }
 0x442   :  { %v2807_v59 = vadd.f32 %v2806_v4, %v2805_v39  ;;  %975 = vperm.xlu2 %3289, %v5427_v0   ;;  %v5433_v39 = vld [vmem:[#allocation54_spill] sm:$0xff]  ;;  %v5435_v4 = vld [vmem:[#allocation55_spill] sm:$0xff]  ;;  %v5436_v0 = vld [vmem:[#allocation57_spill] sm:$0xff]  ;;  %v2261_v43 = vsub.f32 %v631_v57, %v5439_v55  ;;  %v5446_v55 = vperm.slane %v3706_v3, 0 }
 0x443   :  { %v2255_v35 = vsub.f32 %v5433_v39, %v5432_v62  ;;  %v2257_v23 = vsub.f32 %v5435_v4, %v5434_v29  ;;  %v3019_v53 = vsel %vm2698_vm0, %v2509_v41, 0.0  ;;  %v5441_v29 = vld [vmem:[#allocation61_spill] sm:$0xff] }
 0x444   :  { %v4538_v9 = vadd.f32 %v2808_v60, %v2807_v59  ;;  %v3018_v59 = vadd.f32 %v3017_v13, %v3016_v33  ;;  %v5437_v60 = vld [vmem:[#allocation56_spill] sm:$0xff] }
 0x445   :  { %1488 = vperm.xlu1 %3323, %v5290_v24   ;;  %v2259_v21 = vsub.f32 %v5437_v60, %v5436_v0  ;;  %v2511_v34 = vand.u32 2147483647, %v2255_v35  ;;  %v2513_v6 = vand.u32 2147483647, %v2257_v23  ;;  %v4568_v62 = vpop.permute.xlu1 %903  ;;  %v5440_v35 = vld [vmem:[#allocation59_spill] sm:$0xff]  ;;  %v5442_v60 = vperm.slane %v5426_v11, 2 }
 0x446   :  { %v3020_v36 = vadd.f32 %v3019_v53, %v3018_v59  ;;  %v2263_v4 = vsub.f32 %v5441_v29, %v5440_v35  ;;  %v2517_v23 = vand.u32 2147483647, %v2261_v43  ;;  %v5288_v59 = vperm.slane %v5431_v7, 2  ;;  %v5444_v53 = vld [vmem:[#allocation62_spill] sm:$0xff]  ;;  %v5447_v43 = vld [vmem:[#allocation63_spill] sm:$0xff]  ;;  %v5449_v35 = vld [vmem:[#allocation65_spill] sm:$0xff] }
 0x447   :  { %v2515_v63 = vand.u32 2147483647, %v2259_v21  ;;  %v3021_v46 = vsel %vm2698_vm0, %v2511_v34, 0.0  ;;  %v3023_v33 = vsel %vm2698_vm0, %v2513_v6, 0.0  ;;  %v5443_v21 = vld [vmem:[#allocation60_spill] sm:$0xff]  ;;  %v5445_v6 = vld [vmem:[#allocation14_spill] sm:$0xff] }
 0x448   :  { %v3022_v13 = vadd.f32 %v3021_v46, %v3020_v36  ;;  %v2265_v34 = vsub.f32 %v5444_v53, %v5443_v21  ;;  %v1867_v36 = vrot.slane %v5445_v6, 1  ;;  %v1986_v57 = vperm.slane %v5445_v6, 0 }
 0x449   :  { %v3025_v41 = vsel %vm2698_vm0, %v2515_v63, 0.0  ;;  %v2519_v63 = vand.u32 2147483647, %v2263_v4  ;;  %v3027_v46 = vsel %vm2698_vm0, %v2517_v23, 0.0 }
 0x44a   :  { %3291 = vset.pattern.permute.xlu2 %v3437_v14  ;;  %v3024_v39 = vadd.f32 %v3023_v33, %v3022_v13  ;;  %v2267_v33 = vsub.f32 %v5447_v43, %v5446_v55  ;;  %v4590_v21 = vperm.slane %v1867_v36, 0  ;;  %v2298_v23 = vsub.f32 %v872_v20, %v1986_v57 }
 0x44b   :  { %v3029_v4 = vsel %vm2698_vm0, %v2519_v63, 0.0 }
 0x44c   :  { %v4559_v22 = vpop.permute.xlu2 %864  ;;  %v3026_v0 = vadd.f32 %v3025_v41, %v3024_v39  ;;  %v1868_v41 = vrot.slane %v5445_v6, 2  ;;  %v5448_v39 = vld [vmem:[#allocation64_spill] sm:$0xff]  ;;  %v2523_v3 = vand.u32 2147483647, %v2267_v33  ;;  %v2300_v36 = vsub.f32 %v885_v51, %v4590_v21  ;;  %v5451_v51 = vld [vmem:[#allocation67_spill] sm:$0xff] }
 0x44d   :  { %1501 = vperm.xlu1 %3323, %v5289_v12   ;;  %v2269_v29 = vsub.f32 %v5449_v35, %v5448_v39  ;;  %v4595_v53 = vpop.permute.xlu1 %916  ;;  %v696_v39 = vpop.permute.xlu0 %695  ;;  %v2554_v35 = vand.u32 2147483647, %v2298_v23  ;;  %v2273_v12 = vsub.f32 %v4304_v61, %v5451_v51  ;;  %v2275_v61 = vsub.f32 %v4318_v37, %v4299_v45 }
 0x44e   :  { %v3028_v13 = vadd.f32 %v3027_v46, %v3026_v0  ;;  %v1870_v0 = vrot.slane %v5445_v6, 4  ;;  %v4599_v46 = vperm.slane %v1868_v41, 0  ;;  %v2271_v20 = vsub.f32 %v696_v39, %v4278_v10 }
 0x44f   :  { %v2525_v43 = vand.u32 2147483647, %v2269_v29  ;;  %v3033_v33 = vsel %vm2698_vm0, %v2523_v3, 0.0  ;;  %v1869_v29 = vrot.slane %v5445_v6, 3  ;;  %v2556_v23 = vand.u32 2147483647, %v2300_v36 }
 0x450   :  { %v3030_v55 = vadd.f32 %v3029_v4, %v3028_v13  ;;  %v5450_v4 = vperm.slane %v5431_v7, 3  ;;  %v4608_v41 = vperm.slane %v1870_v0, 0  ;;  %v2810_v10 = vsel %vm2698_vm0, %v2554_v35, 0.0  ;;  %v5453_v0 = vld [vmem:[#allocation66_spill] sm:$0xff] }
 0x451   :  { %v2527_v3 = vand.u32 2147483647, %v2271_v20  ;;  %v2811_v28 = vadd.f32 %v2810_v10, %v4538_v9  ;;  %v5454_v9 = vld [vmem:[#allocation68_spill] sm:$0xff]  ;;  %v2279_v45 = vsub.f32 %v4356_v32, %v4359_v52  ;;  %v2531_v10 = vand.u32 2147483647, %v2275_v61 }
 0x452   :  { %994 = vperm.xlu2 %3291, %v5438_v17   ;;  %v2277_v20 = vsub.f32 %v4330_v15, %v5454_v9 }
 0x453   :  { %v3041_v52 = vsel %vm2698_vm0, %v2531_v10, 0.0 }
 0x454   :  { %v4578_v17 = vpop.permute.xlu2 %877 }
 0x455   :  { %3325 = vset.pattern.permute.xlu1 %v3426_v1  ;;  %v4625_v36 = vpop.permute.xlu1 %936 }
 0x45a   :  { %1007 = vperm.xlu2 %3291, %v5442_v60   ;;  %v2521_v60 = vand.u32 2147483647, %v2265_v34 }
 0x45c   :  { %v3031_v34 = vsel %vm2698_vm0, %v2521_v60, 0.0  ;;  %v3035_v60 = vsel %vm2698_vm0, %v2525_v43, 0.0  ;;  %v2529_v43 = vand.u32 2147483647, %v2273_v12 }
 0x45d   :  { %1521 = vperm.xlu1 %3325, %v5288_v59   ;;  %v3032_v59 = vadd.f32 %v3031_v34, %v3030_v55  ;;  %v5452_v55 = vperm.slane %v5426_v11, 4  ;;  %v2306_v34 = vsub.f32 %v5453_v0, %v4608_v41 }
 0x45e   :  { %v3039_v51 = vsel %vm2698_vm0, %v2529_v43, 0.0 }
 0x45f   :  { %v3034_v24 = vadd.f32 %v3033_v33, %v3032_v59  ;;  %v2812_v59 = vsel %vm2698_vm0, %v2556_v23, 0.0 }
 0x462   :  { %3293 = vset.pattern.permute.xlu2 %v3426_v1 }
 0x464   :  { %v898_v63 = vpop.permute.xlu2 %897 }
 0x465   :  { %v2302_v13 = vsub.f32 %v898_v63, %v4599_v46  ;;  %1534 = vperm.xlu1 %3325, %v5450_v4   ;;  %v3036_v63 = vadd.f32 %v3035_v60, %v3034_v24  ;;  %v4620_v4 = vperm.slane %v1869_v29, 0  ;;  %v3037_v24 = vsel %vm2698_vm0, %v2527_v3, 0.0 }
 0x466   :  { %v2813_v29 = vadd.f32 %v2812_v59, %v2811_v28  ;;  %v2562_v60 = vand.u32 2147483647, %v2306_v34  ;;  %v2533_v3 = vand.u32 2147483647, %v2277_v20  ;;  %v761_v34 = vpop.permute.xlu0 %760  ;;  %v4648_v59 = vpop.permute.xlu1 %949 }
 0x467   :  { %v2558_v39 = vand.u32 2147483647, %v2302_v13  ;;  %v3038_v12 = vadd.f32 %v3037_v24, %v3036_v63  ;;  %v2535_v63 = vand.u32 2147483647, %v2279_v45  ;;  %v2281_v43 = vsub.f32 %v761_v34, %v4374_v47 }
 0x468   :  { %v2818_v28 = vsel %vm2698_vm0, %v2562_v60, 0.0  ;;  %v3043_v61 = vsel %vm2698_vm0, %v2533_v3, 0.0  ;;  %v2285_v45 = vsub.f32 %v4428_v26, %v4412_v2  ;;  %v5457_v26 = vperm.slane %v5426_v11, 6 }
 0x469   :  { %v2814_v33 = vsel %vm2698_vm0, %v2558_v39, 0.0  ;;  %v1542_v39 = vperm.slane %v5431_v7, 4  ;;  %v3045_v9 = vsel %vm2698_vm0, %v2535_v63, 0.0  ;;  %v2293_v34 = vsub.f32 %v4486_v42, %v4495_v31 }
 0x46a   :  { %1027 = vperm.xlu2 %3293, %v5452_v55   ;;  %v2815_v23 = vadd.f32 %v2814_v33, %v2813_v29  ;;  %v3040_v55 = vadd.f32 %v3039_v51, %v3038_v12  ;;  %v5456_v33 = vperm.slane %v5395_v44, 0  ;;  %v2537_v12 = vand.u32 2147483647, %v2281_v43 }
 0x46b   :  { %v1555_v29 = vperm.slane %v5431_v7, 5  ;;  %v2287_v51 = vsub.f32 %v4455_v16, %v4390_v48  ;;  %v2541_v3 = vand.u32 2147483647, %v2285_v45 }
 0x46c   :  { %v911_v35 = vpop.permute.xlu2 %910  ;;  %v3042_v24 = vadd.f32 %v3041_v52, %v3040_v55  ;;  %v1871_v52 = vrot.slane %v5445_v6, 5 }
 0x46d   :  { %v2304_v13 = vsub.f32 %v911_v35, %v4620_v4  ;;  %3327 = vset.pattern.permute.xlu1 %v3437_v14  ;;  %v5455_v35 = vperm.slane %v5426_v11, 5 }
 0x46e   :  { %v3044_v20 = vadd.f32 %v3043_v61, %v3042_v24  ;;  %v826_v16 = vpop.permute.xlu0 %825  ;;  %v1581_v61 = vperm.slane %v5431_v7, 7  ;;  %v4690_v42 = vperm.slane %v1871_v52, 0 }
 0x46f   :  { %v2560_v37 = vand.u32 2147483647, %v2304_v13  ;;  %v2283_v13 = vsub.f32 %v4398_v50, %v5456_v33  ;;  %v2289_v50 = vsub.f32 %v4473_v56, %v4476_v27  ;;  %v1872_v33 = vrot.slane %v5445_v6, 6 }
 0x470   :  { %v3046_v60 = vadd.f32 %v3045_v9, %v3044_v20  ;;  %v2295_v20 = vsub.f32 %v4510_v19, %v4517_v58  ;;  %v2299_v19 = vsub.f32 %v4578_v17, %v1986_v57 }
 0x471   :  { %v2816_v15 = vsel %vm2698_vm0, %v2560_v37, 0.0  ;;  %v2539_v47 = vand.u32 2147483647, %v2283_v13  ;;  %v3047_v37 = vsel %vm2698_vm0, %v2537_v12, 0.0  ;;  %v2545_v48 = vand.u32 2147483647, %v2289_v50 }
 0x472   :  { %v2817_v0 = vadd.f32 %v2816_v15, %v2815_v23  ;;  %1040 = vperm.xlu2 %3293, %v5455_v35   ;;  %v3048_v44 = vadd.f32 %v3047_v37, %v3046_v60  ;;  %v4665_v23 = vpop.permute.xlu1 %968  ;;  %v2543_v15 = vand.u32 2147483647, %v2287_v51  ;;  %v2291_v35 = vsub.f32 %v826_v16, %v4490_v30 }
 0x473   :  { %v3049_v10 = vsel %vm2698_vm0, %v2539_v47, 0.0  ;;  %v5458_v30 = vperm.slane %v5426_v11, 7  ;;  %v2549_v12 = vand.u32 2147483647, %v2293_v34  ;;  %v2297_v60 = vsub.f32 %v4559_v22, %v4503_v40  ;;  %v5459_v22 = vld [vmem:[#allocation15_spill] sm:$0xff] }
 0x474   :  { %v4641_v32 = vadd.f32 %v2818_v28, %v2817_v0  ;;  %v3050_v55 = vadd.f32 %v3049_v10, %v3048_v44  ;;  %v3051_v0 = vsel %vm2698_vm0, %v2541_v3, 0.0  ;;  %v3053_v56 = vsel %vm2698_vm0, %v2543_v15, 0.0 }
 0x475   :  { %1553 = vperm.xlu1 %3327, %v1542_v39   ;;  %v3055_v28 = vsel %vm2698_vm0, %v2545_v48, 0.0  ;;  %v2547_v43 = vand.u32 2147483647, %v2291_v35  ;;  %v1873_v47 = vrot.slane %v5445_v6, 7  ;;  %v2551_v58 = vand.u32 2147483647, %v2295_v20 }
 0x476   :  { %v3052_v27 = vadd.f32 %v3051_v0, %v3050_v55  ;;  %v4701_v45 = vperm.slane %v1872_v33, 0  ;;  %v3059_v37 = vsel %vm2698_vm0, %v2549_v12, 0.0  ;;  %v2308_v51 = vsub.f32 %v4625_v36, %v4690_v42  ;;  %v891_v10 = vpop.permute.xlu0 %890  ;;  %v5460_v35 = vld [vmem:[#allocation27_spill] sm:$0xff] }
 0x477   :  { %v3057_v31 = vsel %vm2698_vm0, %v2547_v43, 0.0  ;;  %v2553_v44 = vand.u32 2147483647, %v2297_v60  ;;  %v1874_v50 = vrot.slane %v5459_v22, 1  ;;  %v4708_v3 = vperm.slane %v1873_v47, 0 }
 0x478   :  { %v3054_v63 = vadd.f32 %v3053_v56, %v3052_v27  ;;  %v2555_v6 = vand.u32 2147483647, %v2299_v19  ;;  %v3061_v17 = vsel %vm2698_vm0, %v2551_v58, 0.0  ;;  %v2310_v57 = vsub.f32 %v4648_v59, %v4701_v45 }
 0x479   :  { %v2301_v15 = vsub.f32 %v891_v10, %v4590_v21  ;;  %v2564_v36 = vand.u32 2147483647, %v2308_v51  ;;  %v1875_v48 = vrot.slane %v5459_v22, 2  ;;  %v3063_v16 = vsel %vm2698_vm0, %v2553_v44, 0.0 }
 0x47a   :  { %3295 = vset.pattern.permute.xlu2 %v3437_v14  ;;  %v4681_v24 = vpop.permute.xlu1 %981  ;;  %v3056_v9 = vadd.f32 %v3055_v28, %v3054_v63  ;;  %v5461_v56 = vperm.slane %v5460_v35, 0  ;;  %v4719_v28 = vperm.slane %v1874_v50, 0  ;;  %v1876_v63 = vrot.slane %v5459_v22, 3 }
 0x47b   :  { %v3065_v59 = vsel %vm2698_vm0, %v2555_v6, 0.0  ;;  %v2303_v21 = vsub.f32 %v4568_v62, %v4599_v46  ;;  %v2566_v34 = vand.u32 2147483647, %v2310_v57  ;;  %v2557_v52 = vand.u32 2147483647, %v2301_v15 }
 0x47c   :  { %v4668_v2 = vpop.permute.xlu2 %929  ;;  %v3058_v11 = vadd.f32 %v3057_v31, %v3056_v9  ;;  %v2820_v9 = vsel %vm2698_vm0, %v2564_v36, 0.0  ;;  %v5462_v31 = vld [vmem:[#allocation9_spill] sm:$0xff]  ;;  %v1994_v19 = vperm.slane %v5459_v22, 0  ;;  %v4734_v62 = vperm.slane %v1876_v63, 0 }
 0x47d   :  { %1566 = vperm.xlu1 %3327, %v1555_v29   ;;  %v2821_v12 = vadd.f32 %v2820_v9, %v4641_v32  ;;  %v5463_v60 = vperm.slane %v5462_v31, 1  ;;  %v2559_v46 = vand.u32 2147483647, %v2303_v21  ;;  %v2305_v58 = vsub.f32 %v4595_v53, %v4620_v4 }
 0x47e   :  { %v3060_v40 = vadd.f32 %v3059_v37, %v3058_v11  ;;  %v5464_v11 = vld [vmem:[#allocation69_spill] sm:$0xff]  ;;  %v2822_v37 = vsel %vm2698_vm0, %v2566_v34, 0.0  ;;  %v3067_v51 = vsel %vm2698_vm0, %v2557_v52, 0.0  ;;  %v5465_v63 = vperm.slane %v5462_v31, 2 }
 0x47f   :  { %v2316_v47 = vsub.f32 %v5464_v11, %v4719_v28  ;;  %v2823_v57 = vadd.f32 %v2822_v37, %v2821_v12  ;;  %v2561_v36 = vand.u32 2147483647, %v2305_v58 }
 0x480   :  { %v3062_v27 = vadd.f32 %v3061_v17, %v3060_v40  ;;  %v2307_v40 = vsub.f32 %v4668_v2, %v4608_v41 }
 0x481   :  { %v2572_v15 = vand.u32 2147483647, %v2316_v47  ;;  %v3071_v52 = vsel %vm2698_vm0, %v2561_v36, 0.0  ;;  %v2313_v47 = vsub.f32 %v4665_v23, %v4708_v3  ;;  %v5466_v36 = vperm.slane %v5462_v31, 3 }
 0x482   :  { %1059 = vperm.xlu2 %3295, %v5457_v26   ;;  %v1002_v55 = vpop.permute.xlu1 %1001  ;;  %v3064_v43 = vadd.f32 %v3063_v16, %v3062_v27  ;;  %v2563_v2 = vand.u32 2147483647, %v2307_v40 }
 0x484   :  { %v4688_v13 = vpop.permute.xlu2 %942  ;;  %v3066_v33 = vadd.f32 %v3065_v59, %v3064_v43  ;;  %v2828_v59 = vsel %vm2698_vm0, %v2572_v15, 0.0 }
 0x485   :  { %3329 = vset.pattern.permute.xlu1 %v3426_v1  ;;  %v2309_v4 = vsub.f32 %v4688_v13, %v4690_v42  ;;  %v956_v42 = vpop.permute.xlu0 %955 }
 0x486   :  { %v3068_v17 = vadd.f32 %v3067_v51, %v3066_v33  ;;  %v2311_v43 = vsub.f32 %v956_v42, %v4701_v45  ;;  %v1620_v45 = vperm.slane %v5460_v35, 2 }
 0x487   :  { %v2565_v13 = vand.u32 2147483647, %v2309_v4 }
 0x488   :  { %v2567_v37 = vand.u32 2147483647, %v2311_v43  ;;  %v5467_v43 = vperm.slane %v5462_v31, 4 }
 0x489   :  { %v3075_v11 = vsel %vm2698_vm0, %v2565_v13, 0.0 }
 0x48a   :  { %1072 = vperm.xlu2 %3295, %v5458_v30   ;;  %v4726_v30 = vperm.slane %v1875_v48, 0  ;;  %v1015_v6 = vpop.permute.xlu1 %1014 }
 0x48b   :  { %v2320_v53 = vsub.f32 %v1015_v6, %v4734_v62  ;;  %v1877_v6 = vrot.slane %v5459_v22, 4 }
 0x48c   :  { %v2318_v32 = vsub.f32 %v1002_v55, %v4726_v30  ;;  %v3069_v55 = vsel %vm2698_vm0, %v2559_v46, 0.0 }
 0x48d   :  { %1586 = vperm.xlu1 %3329, %v1581_v61   ;;  %v2576_v21 = vand.u32 2147483647, %v2320_v53  ;;  %v1998_v53 = vperm.slane %v1877_v6, 0 }
 0x48e   :  { %v2574_v41 = vand.u32 2147483647, %v2318_v32 }
 0x490   :  { %v2830_v9 = vsel %vm2698_vm0, %v2574_v41, 0.0 }
 0x492   :  { %3297 = vset.pattern.permute.xlu2 %v3426_v1  ;;  %v1034_v32 = vpop.permute.xlu1 %1033 }
 0x493   :  { %v2323_v41 = vsub.f32 %v1034_v32, %v1998_v53  ;;  %v5468_v32 = vperm.slane %v5460_v35, 5 }
 0x494   :  { %v963_v26 = vpop.permute.xlu2 %962 }
 0x495   :  { %v2312_v0 = vsub.f32 %v963_v26, %v4708_v3  ;;  %1599 = vperm.xlu1 %3329, %v5461_v56   ;;  %v3070_v56 = vadd.f32 %v3069_v55, %v3068_v17  ;;  %v1878_v3 = vrot.slane %v5459_v22, 5  ;;  %v2579_v42 = vand.u32 2147483647, %v2323_v41 }
 0x497   :  { %v2568_v20 = vand.u32 2147483647, %v2312_v0  ;;  %v1607_v0 = vperm.slane %v5460_v35, 1  ;;  %v3072_v33 = vadd.f32 %v3071_v52, %v3070_v56 }
 0x499   :  { %v2824_v50 = vsel %vm2698_vm0, %v2568_v20, 0.0  ;;  %v3073_v20 = vsel %vm2698_vm0, %v2563_v2, 0.0 }
 0x49a   :  { %1092 = vperm.xlu2 %3297, %v5463_v60   ;;  %v2825_v48 = vadd.f32 %v2824_v50, %v2823_v57  ;;  %v2832_v60 = vsel %vm2698_vm0, %v2576_v21, 0.0  ;;  %v3074_v46 = vadd.f32 %v3073_v20, %v3072_v33  ;;  %v3077_v50 = vsel %vm2698_vm0, %v2567_v37, 0.0  ;;  %v1047_v56 = vpop.permute.xlu1 %1046 }
 0x49b   :  { %v3089_v33 = vsel %vm2698_vm0, %v2579_v42, 0.0 }
 0x49c   :  { %v976_v44 = vpop.permute.xlu2 %975  ;;  %v3076_v51 = vadd.f32 %v3075_v11, %v3074_v46 }
 0x49d   :  { %v2314_v10 = vsub.f32 %v976_v44, %v1994_v19  ;;  %3331 = vset.pattern.permute.xlu1 %v3437_v14  ;;  %v2569_v44 = vand.u32 2147483647, %v2313_v47  ;;  %v1879_v47 = vrot.slane %v5459_v22, 6 }
 0x49e   :  { %v3078_v23 = vadd.f32 %v3077_v50, %v3076_v51  ;;  %v1880_v51 = vrot.slane %v5459_v22, 7 }
 0x49f   :  { %v2570_v26 = vand.u32 2147483647, %v2314_v10  ;;  %v2315_v10 = vsub.f32 %v4681_v24, %v1994_v19  ;;  %v3079_v57 = vsel %vm2698_vm0, %v2569_v44, 0.0  ;;  %v1999_v19 = vperm.slane %v1878_v3, 0 }
 0x4a0   :  { %v3080_v55 = vadd.f32 %v3079_v57, %v3078_v23  ;;  %v5469_v23 = vperm.slane %v5462_v31, 6  ;;  %v5470_v57 = vld [vmem:[#allocation17_spill] sm:$0xff] }
 0x4a1   :  { %v2826_v16 = vsel %vm2698_vm0, %v2570_v26, 0.0  ;;  %v2571_v15 = vand.u32 2147483647, %v2315_v10  ;;  %v1021_v26 = vpop.permute.xlu0 %1020  ;;  %v2001_v10 = vperm.slane %v1880_v51, 0  ;;  %v1881_v42 = vrot.slane %v5470_v57, 1 }
 0x4a2   :  { %v2827_v27 = vadd.f32 %v2826_v16, %v2825_v48  ;;  %1105 = vperm.xlu2 %3297, %v5465_v63   ;;  %v2321_v24 = vsub.f32 %v1021_v26, %v4734_v62  ;;  %v1067_v46 = vpop.permute.xlu1 %1066 }
 0x4a3   :  { %v3081_v48 = vsel %vm2698_vm0, %v2571_v15, 0.0  ;;  %v2002_v15 = vperm.slane %v5470_v57, 0  ;;  %v2328_v26 = vsub.f32 %v1067_v46, %v2001_v10 }
 0x4a4   :  { %v2829_v34 = vadd.f32 %v2828_v59, %v2827_v27  ;;  %v3082_v27 = vadd.f32 %v3081_v48, %v3080_v55  ;;  %v2577_v63 = vand.u32 2147483647, %v2321_v24  ;;  %v2325_v59 = vsub.f32 %v1047_v56, %v1999_v19 }
 0x4a5   :  { %1618 = vperm.xlu1 %3331, %v1607_v0  }
 0x4a6   :  { %v2831_v12 = vadd.f32 %v2830_v9, %v2829_v34  ;;  %v1646_v34 = vperm.slane %v5460_v35, 4  ;;  %v3087_v9 = vsel %vm2698_vm0, %v2577_v63, 0.0 }
 0x4a8   :  { %v2833_v58 = vadd.f32 %v2832_v60, %v2831_v12 }
 0x4aa   :  { %3299 = vset.pattern.permute.xlu2 %v3437_v14 }
 0x4ac   :  { %v995_v40 = vpop.permute.xlu2 %994 }
 0x4ad   :  { %v2317_v17 = vsub.f32 %v995_v40, %v4719_v28  ;;  %1631 = vperm.xlu1 %3331, %v1620_v45   ;;  %v2000_v40 = vperm.slane %v1879_v47, 0 }
 0x4af   :  { %v2573_v4 = vand.u32 2147483647, %v2317_v17  ;;  %v2326_v3 = vsub.f32 %v4308_v49, %v2000_v40 }
 0x4b1   :  { %v3083_v2 = vsel %vm2698_vm0, %v2573_v4, 0.0  ;;  %v2582_v55 = vand.u32 2147483647, %v2326_v3  ;;  %v5474_v3 = vld [vmem:[#allocation30_spill] sm:$0xff] }
 0x4b2   :  { %1124 = vperm.xlu2 %3299, %v5466_v36   ;;  %v3084_v13 = vadd.f32 %v3083_v2, %v3082_v27  ;;  %v5471_v2 = vperm.slane %v5462_v31, 7 }
 0x4b3   :  { %v2838_v49 = vsel %vm2698_vm0, %v2582_v55, 0.0 }
 0x4b4   :  { %v1008_v28 = vpop.permute.xlu2 %1007 }
 0x4b5   :  { %v2319_v16 = vsub.f32 %v1008_v28, %v4726_v30  ;;  %3333 = vset.pattern.permute.xlu1 %v3426_v1  ;;  %v2581_v30 = vand.u32 2147483647, %v2325_v59  ;;  %v2584_v28 = vand.u32 2147483647, %v2328_v26 }
 0x4b7   :  { %v2575_v21 = vand.u32 2147483647, %v2319_v16  ;;  %v3091_v60 = vsel %vm2698_vm0, %v2581_v30, 0.0 }
 0x4b9   :  { %v3085_v62 = vsel %vm2698_vm0, %v2575_v21, 0.0  ;;  %v1685_v21 = vperm.slane %v5460_v35, 7 }
 0x4ba   :  { %v3086_v52 = vadd.f32 %v3085_v62, %v3084_v13  ;;  %1137 = vperm.xlu2 %3299, %v5467_v43  }
 0x4bc   :  { %v3088_v20 = vadd.f32 %v3087_v9, %v3086_v52  ;;  %v1882_v52 = vrot.slane %v5470_v57, 2  ;;  %v2003_v9 = vperm.slane %v1881_v42, 0 }
 0x4bd   :  { %1651 = vperm.xlu1 %3333, %v1646_v34  }
 0x4be   :  { %v3090_v12 = vadd.f32 %v3089_v33, %v3088_v20  ;;  %v1086_v20 = vpop.permute.xlu0 %1085  ;;  %v2004_v46 = vperm.slane %v1882_v52, 0 }
 0x4bf   :  { %v2331_v47 = vsub.f32 %v1086_v20, %v2002_v15 }
 0x4c0   :  { %v3092_v11 = vadd.f32 %v3091_v60, %v3090_v12  ;;  %v5472_v12 = vld [vmem:[#allocation10_spill] sm:$0xff] }
 0x4c1   :  { %v5473_v60 = vperm.slane %v5472_v12, 0  ;;  %v5475_v26 = vperm.slane %v5472_v12, 1  ;;  %v5477_v42 = vperm.slane %v5472_v12, 3 }
 0x4c2   :  { %3301 = vset.pattern.permute.xlu2 %v3426_v1 }
 0x4c4   :  { %v1028_v37 = vpop.permute.xlu2 %1027 }
 0x4c5   :  { %v2322_v44 = vsub.f32 %v1028_v37, %v1998_v53  ;;  %1664 = vperm.xlu1 %3333, %v5468_v32   ;;  %v1080_v53 = vpop.permute.xlu1 %1079 }
 0x4c6   :  { %v2330_v36 = vsub.f32 %v1080_v53, %v2002_v15 }
 0x4c7   :  { %v2578_v50 = vand.u32 2147483647, %v2322_v44 }
 0x4c8   :  { %v2586_v16 = vand.u32 2147483647, %v2330_v36 }
 0x4c9   :  { %v2834_v6 = vsel %vm2698_vm0, %v2578_v50, 0.0 }
 0x4ca   :  { %v2835_v17 = vadd.f32 %v2834_v6, %v2833_v58  ;;  %1157 = vperm.xlu2 %3301, %v5469_v23   ;;  %v1672_v58 = vperm.slane %v5460_v35, 6  ;;  %v2842_v63 = vsel %vm2698_vm0, %v2586_v16, 0.0  ;;  %v5476_v16 = vperm.slane %v5474_v3, 2 }
 0x4cc   :  { %v1041_v4 = vpop.permute.xlu2 %1040 }
 0x4cd   :  { %v2324_v22 = vsub.f32 %v1041_v4, %v1999_v19  ;;  %3335 = vset.pattern.permute.xlu1 %v3437_v14  ;;  %v2840_v19 = vsel %vm2698_vm0, %v2584_v28, 0.0  ;;  %v1099_v13 = vpop.permute.xlu1 %1098  ;;  %v1711_v4 = vperm.slane %v5474_v3, 1  ;;  %v1883_v28 = vrot.slane %v5470_v57, 3 }
 0x4ce   :  { %v2333_v51 = vsub.f32 %v1099_v13, %v2003_v9 }
 0x4cf   :  { %v2580_v24 = vand.u32 2147483647, %v2324_v22 }
 0x4d1   :  { %v2836_v48 = vsel %vm2698_vm0, %v2580_v24, 0.0 }
 0x4d2   :  { %v2837_v41 = vadd.f32 %v2836_v48, %v2835_v17  ;;  %1170 = vperm.xlu2 %3301, %v5471_v2   ;;  %v2589_v17 = vand.u32 2147483647, %v2333_v51  ;;  %v1884_v2 = vrot.slane %v5470_v57, 4 }
 0x4d4   :  { %v2839_v56 = vadd.f32 %v2838_v49, %v2837_v41 }
 0x4d5   :  { %1683 = vperm.xlu1 %3335, %v1672_v58   ;;  %v1112_v32 = vpop.permute.xlu1 %1111 }
 0x4d6   :  { %v2841_v27 = vadd.f32 %v2840_v19, %v2839_v56  ;;  %v2335_v50 = vsub.f32 %v1112_v32, %v2004_v46  ;;  %v2005_v56 = vperm.slane %v1883_v28, 0  ;;  %v1885_v19 = vrot.slane %v5470_v57, 5 }
 0x4d7   :  { %v5478_v32 = vperm.slane %v5472_v12, 4 }
 0x4d8   :  { %v2843_v59 = vadd.f32 %v2842_v63, %v2841_v27  ;;  %v2591_v22 = vand.u32 2147483647, %v2335_v50  ;;  %v2006_v63 = vperm.slane %v1884_v2, 0  ;;  %v2007_v52 = vperm.slane %v1885_v19, 0 }
 0x4d9   :  { %v5479_v2 = vperm.slane %v5472_v12, 5 }
 0x4da   :  { %3303 = vset.pattern.permute.xlu2 %v3437_v14  ;;  %v3101_v36 = vsel %vm2698_vm0, %v2591_v22, 0.0  ;;  %v1886_v22 = vrot.slane %v5470_v57, 6 }
 0x4dc   :  { %v1060_v31 = vpop.permute.xlu2 %1059 }
 0x4dd   :  { %v2327_v62 = vsub.f32 %v1060_v31, %v2000_v40  ;;  %1696 = vperm.xlu1 %3335, %v1685_v21   ;;  %v2587_v40 = vand.u32 2147483647, %v2331_v47  ;;  %v1132_v48 = vpop.permute.xlu1 %1131 }
 0x4df   :  { %v2583_v43 = vand.u32 2147483647, %v2327_v62  ;;  %v3097_v15 = vsel %vm2698_vm0, %v2587_v40, 0.0  ;;  %v2336_v62 = vsub.f32 %v4321_v54, %v2005_v56 }
 0x4e1   :  { %v3093_v30 = vsel %vm2698_vm0, %v2583_v43, 0.0 }
 0x4e2   :  { %v3094_v33 = vadd.f32 %v3093_v30, %v3092_v11  ;;  %1189 = vperm.xlu2 %3303, %v5473_v60   ;;  %v2338_v30 = vsub.f32 %v1132_v48, %v2006_v63  ;;  %v1151_v48 = vpop.permute.xlu0 %1150 }
 0x4e4   :  { %v1073_v37 = vpop.permute.xlu2 %1072 }
 0x4e5   :  { %v2329_v44 = vsub.f32 %v1073_v37, %v2001_v10  ;;  %3337 = vset.pattern.permute.xlu1 %v3426_v1  ;;  %v3099_v10 = vsel %vm2698_vm0, %v2589_v17, 0.0  ;;  %v1145_v20 = vpop.permute.xlu1 %1144  ;;  %v2594_v37 = vand.u32 2147483647, %v2338_v30  ;;  %v1776_v30 = vperm.slane %v5474_v3, 6 }
 0x4e6   :  { %v2340_v60 = vsub.f32 %v1145_v20, %v2007_v52 }
 0x4e7   :  { %v2585_v6 = vand.u32 2147483647, %v2329_v44 }
 0x4e8   :  { %v2596_v40 = vand.u32 2147483647, %v2340_v60 }
 0x4e9   :  { %v3095_v23 = vsel %vm2698_vm0, %v2585_v6, 0.0 }
 0x4ea   :  { %v3096_v11 = vadd.f32 %v3095_v23, %v3094_v33  ;;  %1202 = vperm.xlu2 %3303, %v5475_v26   ;;  %v2592_v33 = vand.u32 2147483647, %v2336_v62  ;;  %v2852_v17 = vsel %vm2698_vm0, %v2596_v40, 0.0  ;;  %v5482_v40 = vperm.slane %v5474_v3, 7 }
 0x4ec   :  { %v3098_v53 = vadd.f32 %v3097_v15, %v3096_v11  ;;  %v2848_v54 = vsel %vm2698_vm0, %v2592_v33, 0.0  ;;  %v1750_v11 = vperm.slane %v5474_v3, 4 }
 0x4ed   :  { %1716 = vperm.xlu1 %3337, %v1711_v4   ;;  %v1164_v26 = vpop.permute.xlu1 %1163 }
 0x4ee   :  { %v3100_v55 = vadd.f32 %v3099_v10, %v3098_v53  ;;  %v1887_v10 = vrot.slane %v5470_v57, 7 }
 0x4f0   :  { %v3102_v24 = vadd.f32 %v3101_v36, %v3100_v55  ;;  %v2008_v36 = vperm.slane %v1886_v22, 0  ;;  %v5483_v22 = vperm.slane %v3641_v38, 0 }
 0x4f2   :  { %3305 = vset.pattern.permute.xlu2 %v3426_v1 }
 0x4f4   :  { %v1093_v41 = vpop.permute.xlu2 %1092 }
 0x4f5   :  { %v2332_v49 = vsub.f32 %v1093_v41, %v2003_v9  ;;  %1729 = vperm.xlu1 %3337, %v5476_v16   ;;  %v2009_v16 = vperm.slane %v1887_v10, 0 }
 0x4f7   :  { %v2588_v27 = vand.u32 2147483647, %v2332_v49  ;;  %v2341_v49 = vsub.f32 %v1151_v48, %v2007_v52 }
 0x4f9   :  { %v2844_v13 = vsel %vm2698_vm0, %v2588_v27, 0.0  ;;  %v2343_v27 = vsub.f32 %v1164_v26, %v2008_v36 }
 0x4fa   :  { %v2845_v31 = vadd.f32 %v2844_v13, %v2843_v59  ;;  %1222 = vperm.xlu2 %3305, %v5477_v42   ;;  %v1737_v59 = vperm.slane %v5474_v3, 3 }
 0x4fb   :  { %v2599_v62 = vand.u32 2147483647, %v2343_v27 }
 0x4fc   :  { %v1106_v43 = vpop.permute.xlu2 %1105 }
 0x4fd   :  { %v2334_v9 = vsub.f32 %v1106_v43, %v2004_v46  ;;  %3340 = vset.pattern.permute.xlu1 %v3437_v14  ;;  %v2850_v46 = vsel %vm2698_vm0, %v2594_v37, 0.0 }
 0x4ff   :  { %v2590_v47 = vand.u32 2147483647, %v2334_v9  ;;  %v5480_v9 = vperm.slane %v5472_v12, 6 }
 0x501   :  { %v2846_v51 = vsel %vm2698_vm0, %v2590_v47, 0.0 }
 0x502   :  { %v2847_v44 = vadd.f32 %v2846_v51, %v2845_v31  ;;  %1235 = vperm.xlu2 %3305, %v5478_v32   ;;  %v2597_v31 = vand.u32 2147483647, %v2341_v49  ;;  %v5481_v32 = vld [vmem:[#allocation19_spill] sm:$0xff] }
 0x503   :  { %v1888_v12 = vrot.slane %v5481_v32, 1 }
 0x504   :  { %v2849_v50 = vadd.f32 %v2848_v54, %v2847_v44  ;;  %v3107_v52 = vsel %vm2698_vm0, %v2597_v31, 0.0  ;;  %v5485_v31 = vperm.slane %v3641_v38, 1 }
 0x505   :  { %1748 = vperm.xlu1 %3340, %v1737_v59  }
 0x506   :  { %v2851_v6 = vadd.f32 %v2850_v46, %v2849_v50  ;;  %v2010_v50 = vperm.slane %v5481_v32, 0  ;;  %v1889_v46 = vrot.slane %v5481_v32, 2 }
 0x508   :  { %v2853_v23 = vadd.f32 %v2852_v17, %v2851_v6  ;;  %v2011_v17 = vperm.slane %v1888_v12, 0  ;;  %v5486_v12 = vperm.slane %v3641_v38, 2 }
 0x50a   :  { %3307 = vset.pattern.permute.xlu2 %v3437_v14 }
 0x50c   :  { %v1125_v15 = vpop.permute.xlu2 %1124 }
 0x50d   :  { %v2337_v53 = vsub.f32 %v1125_v15, %v2005_v56  ;;  %1761 = vperm.xlu1 %3340, %v1750_v11   ;;  %v1177_v56 = vpop.permute.xlu1 %1176 }
 0x50e   :  { %v2345_v42 = vsub.f32 %v1177_v56, %v2009_v16 }
 0x50f   :  { %v2593_v55 = vand.u32 2147483647, %v2337_v53  ;;  %v5484_v53 = vld [vmem:[#allocation70_spill] sm:$0xff] }
 0x510   :  { %v2601_v20 = vand.u32 2147483647, %v2345_v42  ;;  %v2346_v10 = vsub.f32 %v5484_v53, %v2010_v50 }
 0x511   :  { %v3103_v28 = vsel %vm2698_vm0, %v2593_v55, 0.0  ;;  %v2012_v55 = vperm.slane %v1889_v46, 0 }
 0x512   :  { %v3104_v41 = vadd.f32 %v3103_v28, %v3102_v24  ;;  %1254 = vperm.xlu2 %3307, %v5479_v2   ;;  %v3111_v47 = vsel %vm2698_vm0, %v2601_v20, 0.0  ;;  %v2602_v2 = vand.u32 2147483647, %v2346_v10 }
 0x514   :  { %v1138_v19 = vpop.permute.xlu2 %1137 }
 0x515   :  { %v2339_v13 = vsub.f32 %v1138_v19, %v2006_v63  ;;  %3342 = vset.pattern.permute.xlu1 %v3426_v1  ;;  %v3109_v63 = vsel %vm2698_vm0, %v2599_v62, 0.0  ;;  %v1197_v51 = vpop.permute.xlu1 %1196 }
 0x517   :  { %v2595_v57 = vand.u32 2147483647, %v2339_v13 }
 0x519   :  { %v3105_v43 = vsel %vm2698_vm0, %v2595_v57, 0.0 }
 0x51a   :  { %v3106_v24 = vadd.f32 %v3105_v43, %v3104_v41  ;;  %1267 = vperm.xlu2 %3307, %v5480_v9  }
 0x51c   :  { %v3108_v33 = vadd.f32 %v3107_v52, %v3106_v24 }
 0x51d   :  { %1781 = vperm.xlu1 %3342, %v1776_v30   ;;  %v1210_v41 = vpop.permute.xlu1 %1209 }
 0x51e   :  { %v3110_v60 = vadd.f32 %v3109_v63, %v3108_v33  ;;  %v2350_v49 = vsub.f32 %v1210_v41, %v2012_v55  ;;  %v1890_v33 = vrot.slane %v5481_v32, 3  ;;  %v5487_v41 = vperm.slane %v3641_v38, 3 }
 0x520   :  { %v3112_v37 = vadd.f32 %v3111_v47, %v3110_v60  ;;  %v2606_v42 = vand.u32 2147483647, %v2350_v49  ;;  %v1891_v60 = vrot.slane %v5481_v32, 4 }
 0x522   :  { %3309 = vset.pattern.permute.xlu2 %v3426_v1 }
 0x524   :  { %v1158_v44 = vpop.permute.xlu2 %1157 }
 0x525   :  { %v2342_v54 = vsub.f32 %v1158_v44, %v2008_v36  ;;  %1794 = vperm.xlu1 %3342, %v5482_v40   ;;  %v2348_v36 = vsub.f32 %v1197_v51, %v2011_v17  ;;  %v1229_v9 = vpop.permute.xlu1 %1228  ;;  %v1216_v51 = vpop.permute.xlu0 %1215  ;;  %v2013_v40 = vperm.slane %v1890_v33, 0 }
 0x527   :  { %v2598_v6 = vand.u32 2147483647, %v2342_v54  ;;  %v2604_v27 = vand.u32 2147483647, %v2348_v36  ;;  %v2351_v54 = vsub.f32 %v1216_v51, %v2012_v55 }
 0x529   :  { %v2854_v26 = vsel %vm2698_vm0, %v2598_v6, 0.0  ;;  %v2860_v62 = vsel %vm2698_vm0, %v2604_v27, 0.0 }
 0x52a   :  { %v2855_v15 = vadd.f32 %v2854_v26, %v2853_v23  ;;  %1287 = vperm.xlu2 %3309, %v5483_v22   ;;  %v2858_v23 = vsel %vm2698_vm0, %v2602_v2, 0.0  ;;  %v2353_v26 = vsub.f32 %v1229_v9, %v2013_v40 }
 0x52c   :  { %v1171_v28 = vpop.permute.xlu2 %1170 }
 0x52d   :  { %v2344_v48 = vsub.f32 %v1171_v28, %v2009_v16  ;;  %v2862_v16 = vsel %vm2698_vm0, %v2606_v42, 0.0  ;;  %v1242_v46 = vpop.permute.xlu1 %1241  ;;  %v2609_v28 = vand.u32 2147483647, %v2353_v26 }
 0x52f   :  { %v2600_v19 = vand.u32 2147483647, %v2344_v48  ;;  %v3119_v49 = vsel %vm2698_vm0, %v2609_v28, 0.0 }
 0x531   :  { %v2856_v13 = vsel %vm2698_vm0, %v2600_v19, 0.0 }
 0x532   :  { %v2857_v56 = vadd.f32 %v2856_v13, %v2855_v15  ;;  %1300 = vperm.xlu2 %3309, %v5485_v31   ;;  %v2014_v15 = vperm.slane %v1891_v60, 0 }
 0x534   :  { %v2859_v57 = vadd.f32 %v2858_v23, %v2857_v56  ;;  %v2355_v53 = vsub.f32 %v1242_v46, %v2014_v15  ;;  %v1892_v56 = vrot.slane %v5481_v32, 5 }
 0x535   :  { %v1262_v13 = vpop.permute.xlu1 %1261 }
 0x536   :  { %v2861_v43 = vadd.f32 %v2860_v62, %v2859_v57  ;;  %v2611_v2 = vand.u32 2147483647, %v2355_v53  ;;  %v2015_v42 = vperm.slane %v1892_v56, 0  ;;  %v1893_v57 = vrot.slane %v5481_v32, 6 }
 0x537   :  { %v5492_v56 = vperm.slane %v3641_v38, 7 }
 0x538   :  { %v2863_v24 = vadd.f32 %v2862_v16, %v2861_v43  ;;  %v3121_v27 = vsel %vm2698_vm0, %v2611_v2, 0.0  ;;  %v1894_v43 = vrot.slane %v5481_v32, 7 }
 0x53a   :  { %3312 = vset.pattern.permute.xlu2 %v3437_v14  ;;  %v2017_v51 = vperm.slane %v1894_v43, 0 }
 0x53c   :  { %v1190_v52 = vpop.permute.xlu2 %1189 }
 0x53d   :  { %v2347_v20 = vsub.f32 %v1190_v52, %v2010_v50  ;;  %v2607_v50 = vand.u32 2147483647, %v2351_v54  ;;  %v5488_v52 = vperm.slane %v3641_v38, 5  ;;  %v1275_v60 = vpop.permute.xlu1 %1274 }
 0x53f   :  { %v2603_v63 = vand.u32 2147483647, %v2347_v20  ;;  %v5489_v20 = vld [vmem:[#allocation33_spill] sm:$0xff] }
 0x540   :  { %v2356_v33 = vsub.f32 %v5489_v20, %v2015_v42 }
 0x541   :  { %v3113_v47 = vsel %vm2698_vm0, %v2603_v63, 0.0  ;;  %v2016_v63 = vperm.slane %v1893_v57, 0 }
 0x542   :  { %v3114_v44 = vadd.f32 %v3113_v47, %v3112_v37  ;;  %1319 = vperm.xlu2 %3312, %v5486_v12   ;;  %v3117_v37 = vsel %vm2698_vm0, %v2607_v50, 0.0  ;;  %v2612_v54 = vand.u32 2147483647, %v2356_v33 }
 0x544   :  { %v1203_v6 = vpop.permute.xlu2 %1202 }
 0x545   :  { %v2349_v22 = vsub.f32 %v1203_v6, %v2011_v17 }
 0x547   :  { %v2605_v10 = vand.u32 2147483647, %v2349_v22  ;;  %v2868_v22 = vsel %vm2698_vm0, %v2612_v54, 0.0 }
 0x549   :  { %v3115_v36 = vsel %vm2698_vm0, %v2605_v10, 0.0 }
 0x54a   :  { %v3116_v48 = vadd.f32 %v3115_v36, %v3114_v44  ;;  %1332 = vperm.xlu2 %3312, %v5487_v41   ;;  %v2358_v44 = vsub.f32 %v1262_v13, %v2016_v63  ;;  %v1294_v41 = vpop.permute.xlu1 %1293 }
 0x54c   :  { %v3118_v55 = vadd.f32 %v3117_v37, %v3116_v48  ;;  %v2614_v6 = vand.u32 2147483647, %v2358_v44  ;;  %v1281_v48 = vpop.permute.xlu0 %1280 }
 0x54e   :  { %v3120_v19 = vadd.f32 %v3119_v49, %v3118_v55  ;;  %v2870_v10 = vsel %vm2698_vm0, %v2614_v6, 0.0  ;;  %v5491_v49 = vld [vmem:[#allocation20_spill] sm:$0xff] }
 0x54f   :  { %v2018_v57 = vperm.slane %v5491_v49, 0 }
 0x550   :  { %v3122_v17 = vadd.f32 %v3121_v27, %v3120_v19  ;;  %v1895_v19 = vrot.slane %v5491_v49, 1 }
 0x552   :  { %3314 = vset.pattern.permute.xlu2 %v3426_v1 }
 0x554   :  { %v1223_v31 = vpop.permute.xlu2 %1222 }
 0x555   :  { %v2352_v23 = vsub.f32 %v1223_v31, %v2013_v40  ;;  %v2360_v40 = vsub.f32 %v1275_v60, %v2017_v51  ;;  %v2361_v31 = vsub.f32 %v1281_v48, %v2017_v51 }
 0x557   :  { %v2608_v62 = vand.u32 2147483647, %v2352_v23  ;;  %v2616_v50 = vand.u32 2147483647, %v2360_v40  ;;  %v4915_v23 = vpop.permute.xlu0 %1345 }
 0x559   :  { %v2864_v16 = vsel %vm2698_vm0, %v2608_v62, 0.0  ;;  %v2872_v36 = vsel %vm2698_vm0, %v2616_v50, 0.0  ;;  %v1307_v62 = vpop.permute.xlu1 %1306 }
 0x55a   :  { %v2865_v9 = vadd.f32 %v2864_v16, %v2863_v24  ;;  %1352 = vperm.xlu2 %3314, %v5488_v52   ;;  %v5490_v24 = vperm.slane %v3641_v38, 6  ;;  %v2363_v16 = vsub.f32 %v1294_v41, %v2018_v57  ;;  %v5493_v38 = vperm.slane %v3778_v25, 0 }
 0x55c   :  { %v1236_v47 = vpop.permute.xlu2 %1235  ;;  %v2619_v60 = vand.u32 2147483647, %v2363_v16 }
 0x55d   :  { %v2354_v12 = vsub.f32 %v1236_v47, %v2014_v15 }
 0x55e   :  { %v3129_v54 = vsel %vm2698_vm0, %v2619_v60, 0.0 }
 0x55f   :  { %v2610_v46 = vand.u32 2147483647, %v2354_v12  ;;  %v4923_v40 = vpop.permute.xlu0 %1410 }
 0x561   :  { %v2866_v32 = vsel %vm2698_vm0, %v2610_v46, 0.0 }
 0x562   :  { %v2867_v26 = vadd.f32 %v2866_v32, %v2865_v9  ;;  %1365 = vperm.xlu2 %3314, %v5490_v24   ;;  %v2019_v9 = vperm.slane %v1895_v19, 0  ;;  %v1327_v32 = vpop.permute.xlu1 %1326 }
 0x564   :  { %v2869_v53 = vadd.f32 %v2868_v22, %v2867_v26  ;;  %v2365_v20 = vsub.f32 %v1307_v62, %v2019_v9  ;;  %v1896_v26 = vrot.slane %v5491_v49, 2 }
 0x566   :  { %v2871_v28 = vadd.f32 %v2870_v10, %v2869_v53  ;;  %v2621_v44 = vand.u32 2147483647, %v2365_v20  ;;  %v2020_v50 = vperm.slane %v1896_v26, 0  ;;  %v1897_v53 = vrot.slane %v5491_v49, 3 }
 0x568   :  { %v2873_v15 = vadd.f32 %v2872_v36, %v2871_v28  ;;  %v4929_v28 = vpop.permute.xlu0 %1475  ;;  %v1898_v36 = vrot.slane %v5491_v49, 4 }
 0x56a   :  { %3316 = vset.pattern.permute.xlu2 %v3437_v14 }
 0x56c   :  { %v1255_v37 = vpop.permute.xlu2 %1254 }
 0x56d   :  { %v2357_v2 = vsub.f32 %v1255_v37, %v2015_v42  ;;  %v2617_v42 = vand.u32 2147483647, %v2361_v31  ;;  %v2366_v37 = vsub.f32 %v4404_v8, %v2020_v50 }
 0x56f   :  { %v2613_v55 = vand.u32 2147483647, %v2357_v2  ;;  %v3127_v51 = vsel %vm2698_vm0, %v2617_v42, 0.0  ;;  %v2021_v2 = vperm.slane %v1897_v53, 0  ;;  %v2622_v31 = vand.u32 2147483647, %v2366_v37 }
 0x571   :  { %v3123_v27 = vsel %vm2698_vm0, %v2613_v55, 0.0  ;;  %v1340_v55 = vpop.permute.xlu1 %1339 }
 0x572   :  { %v3124_v13 = vadd.f32 %v3123_v27, %v3122_v17  ;;  %1384 = vperm.xlu2 %3316, %v5492_v56   ;;  %v2022_v27 = vperm.slane %v1898_v36, 0 }
 0x574   :  { %v1268_v43 = vpop.permute.xlu2 %1267 }
 0x575   :  { %v2359_v52 = vsub.f32 %v1268_v43, %v2016_v63  ;;  %v3131_v63 = vsel %vm2698_vm0, %v2621_v44, 0.0  ;;  %v1899_v44 = vrot.slane %v5491_v49, 5 }
 0x577   :  { %v2615_v33 = vand.u32 2147483647, %v2359_v52  ;;  %v4937_v52 = vpop.permute.xlu0 %1540  ;;  %v2023_v26 = vperm.slane %v1899_v44, 0  ;;  %v5497_v44 = vperm.slane %v3778_v25, 7 }
 0x579   :  { %v3125_v47 = vsel %vm2698_vm0, %v2615_v33, 0.0 }
 0x57a   :  { %v3126_v17 = vadd.f32 %v3125_v47, %v3124_v13  ;;  %1397 = vperm.xlu2 %3316, %v5493_v38   ;;  %v2368_v13 = vsub.f32 %v1327_v32, %v2021_v2  ;;  %v1359_v47 = vpop.permute.xlu1 %1358  ;;  %v2371_v32 = vsub.f32 %v4915_v23, %v2022_v27 }
 0x57b   :  { %v2373_v53 = vsub.f32 %v1359_v47, %v2023_v26 }
 0x57c   :  { %v3128_v12 = vadd.f32 %v3127_v51, %v3126_v17  ;;  %v2624_v43 = vand.u32 2147483647, %v2368_v13  ;;  %v5495_v13 = vperm.slane %v3778_v25, 5 }
 0x57e   :  { %v3130_v46 = vadd.f32 %v3129_v54, %v3128_v12  ;;  %v2880_v20 = vsel %vm2698_vm0, %v2624_v43, 0.0  ;;  %v1900_v12 = vrot.slane %v5491_v49, 6 }
 0x57f   :  { %v4945_v17 = vpop.permute.xlu0 %1605 }
 0x580   :  { %v3132_v6 = vadd.f32 %v3131_v63, %v3130_v46  ;;  %v5494_v63 = vperm.slane %v3778_v25, 4 }
 0x582   :  { %3318 = vset.pattern.permute.xlu2 %v3426_v1 }
 0x584   :  { %v1288_v24 = vpop.permute.xlu2 %1287 }
 0x585   :  { %v2362_v22 = vsub.f32 %v1288_v24, %v2018_v57  ;;  %v2370_v57 = vsub.f32 %v1340_v55, %v2022_v27  ;;  %v1372_v24 = vpop.permute.xlu1 %1371  ;;  %v2629_v55 = vand.u32 2147483647, %v2373_v53 }
 0x587   :  { %v2618_v10 = vand.u32 2147483647, %v2362_v22  ;;  %v2626_v8 = vand.u32 2147483647, %v2370_v57 }
 0x589   :  { %v2874_v48 = vsel %vm2698_vm0, %v2618_v10, 0.0  ;;  %v2024_v10 = vperm.slane %v1900_v12, 0 }
 0x58a   :  { %v2875_v41 = vadd.f32 %v2874_v48, %v2873_v15  ;;  %1417 = vperm.xlu2 %3318, %v1412_v18   ;;  %v2878_v18 = vsel %vm2698_vm0, %v2622_v31, 0.0  ;;  %v2627_v48 = vand.u32 2147483647, %v2371_v32  ;;  %v3139_v31 = vsel %vm2698_vm0, %v2629_v55, 0.0 }
 0x58c   :  { %v1301_v19 = vpop.permute.xlu2 %1300  ;;  %v3137_v23 = vsel %vm2698_vm0, %v2627_v48, 0.0 }
 0x58d   :  { %v2364_v56 = vsub.f32 %v1301_v19, %v2019_v9  ;;  %v2882_v9 = vsel %vm2698_vm0, %v2626_v8, 0.0 }
 0x58f   :  { %v2620_v62 = vand.u32 2147483647, %v2364_v56 }
 0x591   :  { %v2876_v16 = vsel %vm2698_vm0, %v2620_v62, 0.0 }
 0x592   :  { %v2877_v15 = vadd.f32 %v2876_v16, %v2875_v41  ;;  %1430 = vperm.xlu2 %3318, %v1425_v5   ;;  %v2375_v41 = vsub.f32 %v1372_v24, %v2024_v10  ;;  %v1392_v16 = vpop.permute.xlu1 %1391 }
 0x594   :  { %v2879_v42 = vadd.f32 %v2878_v18, %v2877_v15  ;;  %v2631_v27 = vand.u32 2147483647, %v2375_v41  ;;  %v1901_v15 = vrot.slane %v5491_v49, 7 }
 0x596   :  { %v2881_v33 = vadd.f32 %v2880_v20, %v2879_v42  ;;  %v2025_v42 = vperm.slane %v1901_v15, 0  ;;  %v5499_v15 = vperm.slane %v5431_v7, 1 }
 0x598   :  { %v2883_v60 = vadd.f32 %v2882_v9, %v2881_v33  ;;  %v5496_v33 = vld [vmem:[#allocation22_spill] sm:$0xff] }
 0x599   :  { %v1902_v9 = vrot.slane %v5496_v33, 1  ;;  %v2026_v12 = vperm.slane %v5496_v33, 0 }
 0x59a   :  { %3320 = vset.pattern.permute.xlu2 %v3437_v14 }
 0x59b   :  { %v2378_v49 = vsub.f32 %v1392_v16, %v2026_v12 }
 0x59c   :  { %v1320_v38 = vpop.permute.xlu2 %1319 }
 0x59d   :  { %v2367_v51 = vsub.f32 %v1320_v38, %v2020_v50  ;;  %v4953_v50 = vpop.permute.xlu0 %1670  ;;  %v2634_v53 = vand.u32 2147483647, %v2378_v49 }
 0x59f   :  { %v2623_v5 = vand.u32 2147483647, %v2367_v51  ;;  %v2890_v55 = vsel %vm2698_vm0, %v2634_v53, 0.0 }
 0x5a1   :  { %v3133_v54 = vsel %vm2698_vm0, %v2623_v5, 0.0 }
 0x5a2   :  { %v3134_v46 = vadd.f32 %v3133_v54, %v3132_v6  ;;  %1449 = vperm.xlu2 %3320, %v5494_v63   ;;  %v1405_v54 = vpop.permute.xlu1 %1404  ;;  %v2027_v63 = vperm.slane %v1902_v9, 0 }
 0x5a4   :  { %v1333_v22 = vpop.permute.xlu2 %1332  ;;  %v2380_v24 = vsub.f32 %v1405_v54, %v2027_v63 }
 0x5a5   :  { %v2369_v36 = vsub.f32 %v1333_v22, %v2021_v2  ;;  %v3141_v2 = vsel %vm2698_vm0, %v2631_v27, 0.0  ;;  %v4961_v62 = vpop.permute.xlu0 %1735 }
 0x5a6   :  { %v2636_v41 = vand.u32 2147483647, %v2380_v24 }
 0x5a7   :  { %v2625_v37 = vand.u32 2147483647, %v2369_v36 }
 0x5a9   :  { %v3135_v19 = vsel %vm2698_vm0, %v2625_v37, 0.0 }
 0x5aa   :  { %v3136_v6 = vadd.f32 %v3135_v19, %v3134_v46  ;;  %1462 = vperm.xlu2 %3320, %v5495_v13   ;;  %v1424_v13 = vpop.permute.xlu1 %1423 }
 0x5ac   :  { %v3138_v56 = vadd.f32 %v3137_v23, %v3136_v6  ;;  %v2892_v6 = vsel %vm2698_vm0, %v2636_v41, 0.0  ;;  %v1906_v41 = vrot.slane %v5496_v33, 5 }
 0x5ad   :  { %v1379_v38 = vpop.permute.xlu0 %1378 }
 0x5ae   :  { %v3140_v57 = vadd.f32 %v3139_v31, %v3138_v56  ;;  %v2376_v5 = vsub.f32 %v1379_v38, %v2025_v42  ;;  %v1903_v56 = vrot.slane %v5496_v33, 2 }
 0x5b0   :  { %v3142_v43 = vadd.f32 %v3141_v2, %v3140_v57  ;;  %v1904_v57 = vrot.slane %v5496_v33, 3 }
 0x5b2   :  { %3322 = vset.pattern.permute.xlu2 %v3426_v1  ;;  %v2029_v38 = vperm.slane %v1904_v57, 0 }
 0x5b4   :  { %v1353_v18 = vpop.permute.xlu2 %1352 }
 0x5b5   :  { %v2372_v8 = vsub.f32 %v1353_v18, %v2023_v26  ;;  %v2632_v26 = vand.u32 2147483647, %v2376_v5  ;;  %v2381_v18 = vsub.f32 %v4923_v40, %v2027_v63 }
 0x5b7   :  { %v2628_v20 = vand.u32 2147483647, %v2372_v8  ;;  %v2888_v25 = vsel %vm2698_vm0, %v2632_v26, 0.0  ;;  %v2028_v8 = vperm.slane %v1903_v56, 0 }
 0x5b9   :  { %v2884_v47 = vsel %vm2698_vm0, %v2628_v20, 0.0  ;;  %v1437_v20 = vpop.permute.xlu1 %1436 }
 0x5ba   :  { %v2885_v51 = vadd.f32 %v2884_v47, %v2883_v60  ;;  %1482 = vperm.xlu2 %3322, %v5497_v44   ;;  %v5498_v60 = vperm.slane %v5431_v7, 0  ;;  %v2383_v47 = vsub.f32 %v1424_v13, %v2028_v8  ;;  %v2385_v44 = vsub.f32 %v1437_v20, %v2029_v38 }
 0x5bc   :  { %v1366_v46 = vpop.permute.xlu2 %1365  ;;  %v2639_v54 = vand.u32 2147483647, %v2383_v47  ;;  %v2641_v26 = vand.u32 2147483647, %v2385_v44 }
 0x5bd   :  { %v2374_v32 = vsub.f32 %v1366_v46, %v2024_v10 }
 0x5be   :  { %v3149_v63 = vsel %vm2698_vm0, %v2639_v54, 0.0 }
 0x5bf   :  { %v2630_v22 = vand.u32 2147483647, %v2374_v32 }
 0x5c1   :  { %v2886_v36 = vsel %vm2698_vm0, %v2630_v22, 0.0  ;;  %v3151_v22 = vsel %vm2698_vm0, %v2641_v26, 0.0  ;;  %v1457_v53 = vpop.permute.xlu1 %1456 }
 0x5c2   :  { %v2887_v48 = vadd.f32 %v2886_v36, %v2885_v51  ;;  %1495 = vperm.xlu2 %3322, %v5498_v60   ;;  %v1905_v36 = vrot.slane %v5496_v33, 4 }
 0x5c4   :  { %v2889_v37 = vadd.f32 %v2888_v25, %v2887_v48  ;;  %v2030_v25 = vperm.slane %v1905_v36, 0 }
 0x5c6   :  { %v2891_v19 = vadd.f32 %v2890_v55, %v2889_v37  ;;  %v1907_v55 = vrot.slane %v5496_v33, 6 }
 0x5c8   :  { %v2893_v10 = vadd.f32 %v2892_v6, %v2891_v19  ;;  %v1444_v6 = vpop.permute.xlu0 %1443  ;;  %v2032_v57 = vperm.slane %v1907_v55, 0 }
 0x5c9   :  { %v1470_v56 = vpop.permute.xlu1 %1469 }
 0x5ca   :  { %3324 = vset.pattern.permute.xlu2 %v3437_v14 }
 0x5cc   :  { %v1385_v23 = vpop.permute.xlu2 %1384 }
 0x5cd   :  { %v2377_v27 = vsub.f32 %v1385_v23, %v2025_v42  ;;  %v2637_v42 = vand.u32 2147483647, %v2381_v18  ;;  %v2386_v23 = vsub.f32 %v1444_v6, %v2030_v25  ;;  %v2390_v18 = vsub.f32 %v1470_v56, %v2032_v57 }
 0x5cf   :  { %v2633_v31 = vand.u32 2147483647, %v2377_v27  ;;  %v3147_v32 = vsel %vm2698_vm0, %v2637_v42, 0.0  ;;  %v2031_v27 = vperm.slane %v1906_v41, 0 }
 0x5d1   :  { %v3143_v2 = vsel %vm2698_vm0, %v2633_v31, 0.0  ;;  %v1489_v54 = vpop.permute.xlu1 %1488 }
 0x5d2   :  { %v3144_v16 = vadd.f32 %v3143_v2, %v3142_v43  ;;  %1514 = vperm.xlu2 %3324, %v5499_v15   ;;  %v5500_v43 = vperm.slane %v5431_v7, 2  ;;  %v2388_v2 = vsub.f32 %v1457_v53, %v2031_v27  ;;  %v2642_v15 = vand.u32 2147483647, %v2386_v23 }
 0x5d4   :  { %v1398_v9 = vpop.permute.xlu2 %1397  ;;  %v2644_v20 = vand.u32 2147483647, %v2388_v2 }
 0x5d5   :  { %v2379_v51 = vsub.f32 %v1398_v9, %v2026_v12 }
 0x5d6   :  { %v2900_v42 = vsel %vm2698_vm0, %v2644_v20, 0.0 }
 0x5d7   :  { %v2635_v5 = vand.u32 2147483647, %v2379_v51 }
 0x5d9   :  { %v3145_v46 = vsel %vm2698_vm0, %v2635_v5, 0.0 }
 0x5da   :  { %v3146_v49 = vadd.f32 %v3145_v46, %v3144_v16  ;;  %1527 = vperm.xlu2 %3324, %v5500_v43   ;;  %v1908_v43 = vrot.slane %v5496_v33, 7 }
 0x5dc   :  { %v3148_v40 = vadd.f32 %v3147_v32, %v3146_v49 }
 0x5de   :  { %v3150_v24 = vadd.f32 %v3149_v63, %v3148_v40  ;;  %v5501_v40 = vperm.slane %v5431_v7, 6  ;;  %v2391_v63 = vsub.f32 %v4929_v28, %v2032_v57 }
 0x5e0   :  { %v3152_v12 = vadd.f32 %v3151_v22, %v3150_v24  ;;  %v2033_v24 = vperm.slane %v1908_v43, 0  ;;  %v1502_v22 = vpop.permute.xlu1 %1501 }
 0x5e2   :  { %3326 = vset.pattern.permute.xlu2 %v3426_v1  ;;  %v2393_v36 = vsub.f32 %v1489_v54, %v2033_v24 }
 0x5e4   :  { %v1418_v48 = vpop.permute.xlu2 %1417  ;;  %v2649_v33 = vand.u32 2147483647, %v2393_v36 }
 0x5e5   :  { %v2382_v60 = vsub.f32 %v1418_v48, %v2028_v8  ;;  %v5502_v48 = vld [vmem:[#allocation23_spill] sm:$0xff] }
 0x5e6   :  { %v3159_v23 = vsel %vm2698_vm0, %v2649_v33, 0.0  ;;  %v1909_v2 = vrot.slane %v5502_v48, 1  ;;  %v1910_v7 = vrot.slane %v5502_v48, 2 }
 0x5e7   :  { %v2638_v37 = vand.u32 2147483647, %v2382_v60  ;;  %v2034_v60 = vperm.slane %v5502_v48, 0 }
 0x5e8   :  { %v1522_v57 = vpop.permute.xlu1 %1521 }
 0x5e9   :  { %v2894_v19 = vsel %vm2698_vm0, %v2638_v37, 0.0  ;;  %v2647_v37 = vand.u32 2147483647, %v2391_v63 }
 0x5ea   :  { %v2895_v13 = vadd.f32 %v2894_v19, %v2893_v10  ;;  %1547 = vperm.xlu2 %3326, %v1542_v39   ;;  %v2898_v10 = vsel %vm2698_vm0, %v2642_v15, 0.0  ;;  %v2646_v39 = vand.u32 2147483647, %v2390_v18  ;;  %v2035_v18 = vperm.slane %v1909_v2, 0 }
 0x5ec   :  { %v1431_v31 = vpop.permute.xlu2 %1430  ;;  %v2902_v5 = vsel %vm2698_vm0, %v2646_v39, 0.0  ;;  %v2036_v39 = vperm.slane %v1910_v7, 0 }
 0x5ed   :  { %v2384_v16 = vsub.f32 %v1431_v31, %v2029_v38 }
 0x5ef   :  { %v2640_v8 = vand.u32 2147483647, %v2384_v16 }
 0x5f1   :  { %v2896_v9 = vsel %vm2698_vm0, %v2640_v8, 0.0  ;;  %v1911_v8 = vrot.slane %v5502_v48, 3 }
 0x5f2   :  { %v2897_v47 = vadd.f32 %v2896_v9, %v2895_v13  ;;  %1560 = vperm.xlu2 %3326, %v1555_v29   ;;  %v1509_v9 = vpop.permute.xlu0 %1508 }
 0x5f4   :  { %v2899_v51 = vadd.f32 %v2898_v10, %v2897_v47  ;;  %v2396_v10 = vsub.f32 %v1509_v9, %v2035_v18 }
 0x5f6   :  { %v2901_v44 = vadd.f32 %v2900_v42, %v2899_v51  ;;  %v1535_v51 = vpop.permute.xlu1 %1534 }
 0x5f8   :  { %v2903_v38 = vadd.f32 %v2902_v5, %v2901_v44  ;;  %v2037_v44 = vperm.slane %v1911_v8, 0  ;;  %v2398_v5 = vsub.f32 %v1522_v57, %v2036_v39 }
 0x5fa   :  { %3328 = vset.pattern.permute.xlu2 %v3437_v14 }
 0x5fc   :  { %v1450_v46 = vpop.permute.xlu2 %1449 }
 0x5fd   :  { %v2387_v49 = vsub.f32 %v1450_v46, %v2030_v25  ;;  %v2395_v25 = vsub.f32 %v1502_v22, %v2034_v60  ;;  %v2652_v46 = vand.u32 2147483647, %v2396_v10 }
 0x5fe   :  { %v1554_v36 = vpop.permute.xlu1 %1553 }
 0x5ff   :  { %v2643_v32 = vand.u32 2147483647, %v2387_v49  ;;  %v2651_v28 = vand.u32 2147483647, %v2395_v25  ;;  %v2400_v49 = vsub.f32 %v1535_v51, %v2037_v44 }
 0x601   :  { %v3153_v29 = vsel %vm2698_vm0, %v2643_v32, 0.0  ;;  %v3161_v31 = vsel %vm2698_vm0, %v2651_v28, 0.0  ;;  %v2654_v32 = vand.u32 2147483647, %v2398_v5 }
 0x602   :  { %v3154_v26 = vadd.f32 %v3153_v29, %v3152_v12  ;;  %1579 = vperm.xlu2 %3328, %v5501_v40   ;;  %v3157_v12 = vsel %vm2698_vm0, %v2647_v37, 0.0  ;;  %v1912_v37 = vrot.slane %v5502_v48, 4 }
 0x603   :  { %v2910_v63 = vsel %vm2698_vm0, %v2654_v32, 0.0 }
 0x604   :  { %v1463_v53 = vpop.permute.xlu2 %1462 }
 0x605   :  { %v2389_v41 = vsub.f32 %v1463_v53, %v2031_v27 }
 0x606   :  { %v1567_v28 = vpop.permute.xlu1 %1566 }
 0x607   :  { %v2645_v55 = vand.u32 2147483647, %v2389_v41 }
 0x609   :  { %v3155_v19 = vsel %vm2698_vm0, %v2645_v55, 0.0 }
 0x60a   :  { %v3156_v6 = vadd.f32 %v3155_v19, %v3154_v26  ;;  %1592 = vperm.xlu2 %3328, %v1581_v61   ;;  %v5503_v19 = vperm.slane %v5460_v35, 3 }
 0x60c   :  { %v3158_v13 = vadd.f32 %v3157_v12, %v3156_v6  ;;  %v2401_v6 = vsub.f32 %v4937_v52, %v2037_v44  ;;  %v2038_v12 = vperm.slane %v1912_v37, 0 }
 0x60e   :  { %v3160_v56 = vadd.f32 %v3159_v23, %v3158_v13  ;;  %v2403_v23 = vsub.f32 %v1554_v36, %v2038_v12  ;;  %v2657_v57 = vand.u32 2147483647, %v2401_v6  ;;  %v1587_v10 = vpop.permute.xlu1 %1586 }
 0x610   :  { %v3162_v27 = vadd.f32 %v3161_v31, %v3160_v56 }
 0x612   :  { %3330 = vset.pattern.permute.xlu2 %v3426_v1 }
 0x614   :  { %v1483_v16 = vpop.permute.xlu2 %1482 }
 0x615   :  { %v2392_v15 = vsub.f32 %v1483_v16, %v2033_v24 }
 0x617   :  { %v2648_v61 = vand.u32 2147483647, %v2392_v15  ;;  %v2659_v15 = vand.u32 2147483647, %v2403_v23 }
 0x619   :  { %v2904_v20 = vsel %vm2698_vm0, %v2648_v61, 0.0  ;;  %v3169_v8 = vsel %vm2698_vm0, %v2659_v15, 0.0 }
 0x61a   :  { %v2905_v47 = vadd.f32 %v2904_v20, %v2903_v38  ;;  %1612 = vperm.xlu2 %3330, %v1607_v0   ;;  %v2908_v38 = vsel %vm2698_vm0, %v2652_v46, 0.0  ;;  %v2656_v0 = vand.u32 2147483647, %v2400_v49  ;;  %v1574_v46 = vpop.permute.xlu0 %1573 }
 0x61c   :  { %v1496_v42 = vpop.permute.xlu2 %1495  ;;  %v2912_v22 = vsel %vm2698_vm0, %v2656_v0, 0.0 }
 0x61d   :  { %v2394_v54 = vsub.f32 %v1496_v42, %v2034_v60 }
 0x61f   :  { %v2650_v43 = vand.u32 2147483647, %v2394_v54 }
 0x621   :  { %v2906_v29 = vsel %vm2698_vm0, %v2650_v43, 0.0 }
 0x622   :  { %v2907_v26 = vadd.f32 %v2906_v29, %v2905_v47  ;;  %1625 = vperm.xlu2 %3330, %v1620_v45   ;;  %v1913_v45 = vrot.slane %v5502_v48, 5  ;;  %v1600_v29 = vpop.permute.xlu1 %1599 }
 0x624   :  { %v2909_v40 = vadd.f32 %v2908_v38, %v2907_v26  ;;  %v2039_v56 = vperm.slane %v1913_v45, 0  ;;  %v5504_v38 = vld [vmem:[#allocation26_spill] sm:$0xff] }
 0x625   :  { %v2042_v0 = vperm.slane %v5504_v38, 0 }
 0x626   :  { %v2911_v24 = vadd.f32 %v2910_v63, %v2909_v40  ;;  %v2405_v2 = vsub.f32 %v1567_v28, %v2039_v56  ;;  %v1916_v28 = vrot.slane %v5504_v38, 1 }
 0x628   :  { %v2913_v53 = vadd.f32 %v2912_v22, %v2911_v24  ;;  %v2661_v61 = vand.u32 2147483647, %v2405_v2  ;;  %v2410_v22 = vsub.f32 %v1600_v29, %v2042_v0  ;;  %v1919_v29 = vrot.slane %v5504_v38, 4 }
 0x62a   :  { %3332 = vset.pattern.permute.xlu2 %v3437_v14  ;;  %v3171_v9 = vsel %vm2698_vm0, %v2661_v61, 0.0 }
 0x62c   :  { %v1515_v60 = vpop.permute.xlu2 %1514 }
 0x62d   :  { %v2397_v41 = vsub.f32 %v1515_v60, %v2035_v18 }
 0x62f   :  { %v2653_v25 = vand.u32 2147483647, %v2397_v41 }
 0x631   :  { %v3163_v55 = vsel %vm2698_vm0, %v2653_v25, 0.0 }
 0x632   :  { %v3164_v33 = vadd.f32 %v3163_v55, %v3162_v27  ;;  %1644 = vperm.xlu2 %3332, %v5503_v19   ;;  %v3167_v27 = vsel %vm2698_vm0, %v2657_v57, 0.0  ;;  %v1619_v19 = vpop.permute.xlu1 %1618  ;;  %v2043_v57 = vperm.slane %v1916_v28, 0  ;;  %v1922_v28 = vrot.slane %v5504_v38, 7 }
 0x634   :  { %v1528_v13 = vpop.permute.xlu2 %1527  ;;  %v2413_v15 = vsub.f32 %v1619_v19, %v2043_v57 }
 0x635   :  { %v2399_v31 = vsub.f32 %v1528_v13, %v2036_v39  ;;  %v1914_v39 = vrot.slane %v5502_v48, 6 }
 0x637   :  { %v2655_v16 = vand.u32 2147483647, %v2399_v31  ;;  %v2040_v44 = vperm.slane %v1914_v39, 0  ;;  %v2411_v31 = vsub.f32 %v4945_v17, %v2042_v0  ;;  %v2046_v0 = vperm.slane %v1919_v29, 0 }
 0x639   :  { %v3165_v18 = vsel %vm2698_vm0, %v2655_v16, 0.0  ;;  %v2406_v43 = vsub.f32 %v1574_v46, %v2040_v44  ;;  %v1920_v46 = vrot.slane %v5504_v38, 5 }
 0x63a   :  { %v3166_v7 = vadd.f32 %v3165_v18, %v3164_v33  ;;  %1657 = vperm.xlu2 %3332, %v1646_v34   ;;  %v1915_v34 = vrot.slane %v5502_v48, 7  ;;  %v1632_v2 = vpop.permute.xlu1 %1631 }
 0x63b   :  { %v2662_v24 = vand.u32 2147483647, %v2406_v43 }
 0x63c   :  { %v3168_v52 = vadd.f32 %v3167_v27, %v3166_v7  ;;  %v2041_v32 = vperm.slane %v1915_v34, 0  ;;  %v2667_v27 = vand.u32 2147483647, %v2411_v31 }
 0x63e   :  { %v3170_v20 = vadd.f32 %v3169_v8, %v3168_v52  ;;  %v2408_v40 = vsub.f32 %v1587_v10, %v2041_v32  ;;  %v2669_v8 = vand.u32 2147483647, %v2413_v15  ;;  %v3177_v17 = vsel %vm2698_vm0, %v2667_v27, 0.0 }
 0x640   :  { %v3172_v47 = vadd.f32 %v3171_v9, %v3170_v20  ;;  %v2664_v48 = vand.u32 2147483647, %v2408_v40  ;;  %v3179_v39 = vsel %vm2698_vm0, %v2669_v8, 0.0 }
 0x642   :  { %3334 = vset.pattern.permute.xlu2 %v3426_v1  ;;  %v2920_v25 = vsel %vm2698_vm0, %v2664_v48, 0.0 }
 0x644   :  { %v1548_v51 = vpop.permute.xlu2 %1547 }
 0x645   :  { %v2402_v42 = vsub.f32 %v1548_v51, %v2038_v12 }
 0x647   :  { %v2658_v5 = vand.u32 2147483647, %v2402_v42 }
 0x649   :  { %v2914_v54 = vsel %vm2698_vm0, %v2658_v5, 0.0  ;;  %v1918_v5 = vrot.slane %v5504_v38, 3 }
 0x64a   :  { %v2915_v49 = vadd.f32 %v2914_v54, %v2913_v53  ;;  %1677 = vperm.xlu2 %3334, %v1672_v58   ;;  %v2918_v58 = vsel %vm2698_vm0, %v2662_v24, 0.0  ;;  %v2666_v53 = vand.u32 2147483647, %v2410_v22  ;;  %v5078_v54 = vpop.permute.xlu1 %1651 }
 0x64c   :  { %v1561_v26 = vpop.permute.xlu2 %1560  ;;  %v2922_v55 = vsel %vm2698_vm0, %v2666_v53, 0.0 }
 0x64d   :  { %v2404_v63 = vsub.f32 %v1561_v26, %v2039_v56  ;;  %v5505_v56 = vperm.slane %v5474_v3, 0  ;;  %v5506_v26 = vperm.slane %v5474_v3, 5 }
 0x64f   :  { %v2660_v36 = vand.u32 2147483647, %v2404_v63 }
 0x651   :  { %v2916_v60 = vsel %vm2698_vm0, %v2660_v36, 0.0 }
 0x652   :  { %v2917_v41 = vadd.f32 %v2916_v60, %v2915_v49  ;;  %1690 = vperm.xlu2 %3334, %v1685_v21   ;;  %v1917_v21 = vrot.slane %v5504_v38, 2  ;;  %v2045_v49 = vperm.slane %v1918_v5, 0  ;;  %v5089_v40 = vpop.permute.xlu1 %1664 }
 0x654   :  { %v2919_v37 = vadd.f32 %v2918_v58, %v2917_v41  ;;  %v5063_v18 = vperm.slane %v1917_v21, 0 }
 0x656   :  { %v2921_v45 = vadd.f32 %v2920_v25, %v2919_v37  ;;  %v2415_v61 = vsub.f32 %v1632_v2, %v5063_v18  ;;  %v2049_v2 = vperm.slane %v1922_v28, 0 }
 0x658   :  { %v5054_v33 = vadd.f32 %v2922_v55, %v2921_v45  ;;  %v1921_v55 = vrot.slane %v5504_v38, 6 }
 0x65a   :  { %3336 = vset.pattern.permute.xlu2 %v3437_v14  ;;  %v1684_v53 = vpop.permute.xlu1 %1683 }
 0x65c   :  { %v1580_v6 = vpop.permute.xlu2 %1579 }
 0x65d   :  { %v2407_v12 = vsub.f32 %v1580_v6, %v2040_v44 }
 0x65f   :  { %v2663_v35 = vand.u32 2147483647, %v2407_v12  ;;  %v2048_v12 = vperm.slane %v1921_v55, 0 }
 0x661   :  { %v3173_v13 = vsel %vm2698_vm0, %v2663_v35, 0.0  ;;  %v2423_v3 = vsub.f32 %v1684_v53, %v2048_v12 }
 0x662   :  { %v3174_v23 = vadd.f32 %v3173_v13, %v3172_v47  ;;  %1709 = vperm.xlu2 %3336, %v5505_v56   ;;  %v2671_v47 = vand.u32 2147483647, %v2415_v61  ;;  %v1697_v37 = vpop.permute.xlu1 %1696  ;;  %v5507_v13 = vld [vmem:[#allocation29_spill] sm:$0xff]  ;;  %v1639_v56 = vpop.permute.xlu0 %1638 }
 0x663   :  { %v2050_v31 = vperm.slane %v5507_v13, 0  ;;  %v2416_v15 = vsub.f32 %v1639_v56, %v2045_v49  ;;  %v2679_v27 = vand.u32 2147483647, %v2423_v3 }
 0x664   :  { %v1593_v16 = vpop.permute.xlu2 %1592  ;;  %v3181_v42 = vsel %vm2698_vm0, %v2671_v47, 0.0 }
 0x665   :  { %v2409_v7 = vsub.f32 %v1593_v16, %v2041_v32 }
 0x667   :  { %v2665_v52 = vand.u32 2147483647, %v2409_v7 }
 0x669   :  { %v3175_v20 = vsel %vm2698_vm0, %v2665_v52, 0.0 }
 0x66a   :  { %v3176_v9 = vadd.f32 %v3175_v20, %v3174_v23  ;;  %1722 = vperm.xlu2 %3336, %v1711_v4   ;;  %v5096_v45 = vpop.permute.xlu1 %1716  ;;  %v1924_v23 = vrot.slane %v5507_v13, 2  ;;  %v2672_v20 = vand.u32 2147483647, %v2416_v15 }
 0x66c   :  { %v3178_v10 = vadd.f32 %v3177_v17, %v3176_v9  ;;  %v5106_v52 = vperm.slane %v1924_v23, 0  ;;  %v2418_v9 = vsub.f32 %v5078_v54, %v2046_v0  ;;  %v2928_v5 = vsel %vm2698_vm0, %v2672_v20, 0.0 }
 0x66d   :  { %v1927_v23 = vrot.slane %v5507_v13, 5 }
 0x66e   :  { %v3180_v51 = vadd.f32 %v3179_v39, %v3178_v10  ;;  %v3189_v10 = vsel %vm2698_vm0, %v2679_v27, 0.0 }
 0x670   :  { %v3182_v44 = vadd.f32 %v3181_v42, %v3180_v51 }
 0x672   :  { %3339 = vset.pattern.permute.xlu2 %v3426_v1  ;;  %v5082_v1 = vperm.slane %v1920_v46, 0  ;;  %v5101_v21 = vpop.permute.xlu1 %1729  ;;  %v2674_v46 = vand.u32 2147483647, %v2418_v9 }
 0x673   :  { %v2430_v15 = vsub.f32 %v5101_v21, %v5106_v52 }
 0x674   :  { %v1613_v34 = vpop.permute.xlu2 %1612  ;;  %v2420_v54 = vsub.f32 %v5089_v40, %v5082_v1 }
 0x675   :  { %v2412_v6 = vsub.f32 %v1613_v34, %v2043_v57  ;;  %v2425_v57 = vsub.f32 %v1697_v37, %v2049_v2  ;;  %v2431_v34 = vsub.f32 %v4961_v62, %v5106_v52 }
 0x677   :  { %v2681_v39 = vand.u32 2147483647, %v2425_v57  ;;  %v2055_v57 = vperm.slane %v1927_v23, 0 }
 0x67a   :  { %1742 = vperm.xlu2 %3339, %v1737_v59   ;;  %v5111_v17 = vpop.permute.xlu1 %1748 }
 0x67c   :  { %v1626_v4 = vpop.permute.xlu2 %1625 }
 0x67d   :  { %v2414_v35 = vsub.f32 %v1626_v4, %v5063_v18  ;;  %v1923_v18 = vrot.slane %v5507_v13, 1 }
 0x67f   :  { %v2670_v16 = vand.u32 2147483647, %v2414_v35  ;;  %v2051_v4 = vperm.slane %v1923_v18, 0 }
 0x681   :  { %v2926_v8 = vsel %vm2698_vm0, %v2670_v16, 0.0  ;;  %v2428_v35 = vsub.f32 %v5096_v45, %v2051_v4  ;;  %v1929_v45 = vrot.slane %v5507_v13, 7 }
 0x682   :  { %1755 = vperm.xlu2 %3339, %v1750_v11   ;;  %v2421_v11 = vsub.f32 %v4953_v50, %v5082_v1  ;;  %v5124_v1 = vpop.permute.xlu1 %1761 }
 0x683   :  { %v2684_v16 = vand.u32 2147483647, %v2428_v35 }
 0x684   :  { %v2677_v22 = vand.u32 2147483647, %v2421_v11  ;;  %v2687_v11 = vand.u32 2147483647, %v2431_v34 }
 0x685   :  { %v2940_v18 = vsel %vm2698_vm0, %v2684_v16, 0.0 }
 0x686   :  { %v3187_v58 = vsel %vm2698_vm0, %v2677_v22, 0.0 }
 0x68a   :  { %3341 = vset.pattern.permute.xlu2 %v3437_v14  ;;  %v1782_v3 = vpop.permute.xlu1 %1781 }
 0x68c   :  { %v1645_v43 = vpop.permute.xlu2 %1644 }
 0x68d   :  { %v2417_v32 = vsub.f32 %v1645_v43, %v2045_v49  ;;  %v3191_v43 = vsel %vm2698_vm0, %v2681_v39, 0.0 }
 0x68f   :  { %v2673_v59 = vand.u32 2147483647, %v2417_v32 }
 0x691   :  { %v3183_v63 = vsel %vm2698_vm0, %v2673_v59, 0.0 }
 0x692   :  { %1774 = vperm.xlu2 %3341, %v5506_v26   ;;  %v3184_v48 = vadd.f32 %v3183_v63, %v3182_v44  ;;  %v2930_v63 = vsel %vm2698_vm0, %v2674_v46, 0.0  ;;  %v1795_v21 = vpop.permute.xlu1 %1794 }
 0x694   :  { %v1658_v14 = vpop.permute.xlu2 %1657 }
 0x695   :  { %v2419_v24 = vsub.f32 %v1658_v14, %v2046_v0 }
 0x697   :  { %v2675_v36 = vand.u32 2147483647, %v2419_v24  ;;  %v2676_v24 = vand.u32 2147483647, %v2420_v54 }
 0x699   :  { %v3185_v60 = vsel %vm2698_vm0, %v2675_v36, 0.0  ;;  %v2932_v37 = vsel %vm2698_vm0, %v2676_v24, 0.0 }
 0x69a   :  { %v3186_v41 = vadd.f32 %v3185_v60, %v3184_v48  ;;  %1787 = vperm.xlu2 %3341, %v1776_v30   ;;  %v2668_v30 = vand.u32 2147483647, %v2412_v6  ;;  %v3197_v60 = vsel %vm2698_vm0, %v2687_v11, 0.0 }
 0x69c   :  { %v3188_v50 = vadd.f32 %v3187_v58, %v3186_v41  ;;  %v2924_v61 = vsel %vm2698_vm0, %v2668_v30, 0.0  ;;  %v1704_v58 = vpop.permute.xlu0 %1703 }
 0x69d   :  { %v2925_v47 = vadd.f32 %v2924_v61, %v5054_v33  ;;  %v1926_v61 = vrot.slane %v5507_v13, 4 }
 0x69e   :  { %v3190_v44 = vadd.f32 %v3189_v10, %v3188_v50  ;;  %v2426_v50 = vsub.f32 %v1704_v58, %v2050_v31 }
 0x69f   :  { %v2927_v42 = vadd.f32 %v2926_v8, %v2925_v47  ;;  %v2686_v8 = vand.u32 2147483647, %v2430_v15  ;;  %v2054_v39 = vperm.slane %v1926_v61, 0 }
 0x6a0   :  { %v3192_v26 = vadd.f32 %v3191_v43, %v3190_v44  ;;  %v2682_v28 = vand.u32 2147483647, %v2426_v50 }
 0x6a1   :  { %v2929_v59 = vadd.f32 %v2928_v5, %v2927_v42  ;;  %v2057_v42 = vperm.slane %v1929_v45, 0  ;;  %v2942_v44 = vsel %vm2698_vm0, %v2686_v8, 0.0 }
 0x6a3   :  { %v2931_v40 = vadd.f32 %v2930_v63, %v2929_v59  ;;  %v2440_v54 = vsub.f32 %v1795_v21, %v2057_v42 }
 0x6a4   :  { %v1678_v25 = vpop.permute.xlu2 %1677  ;;  %v1769_v9 = vpop.permute.xlu0 %1768 }
 0x6a5   :  { %v2422_v33 = vsub.f32 %v1678_v25, %v2048_v12  ;;  %v2933_v55 = vadd.f32 %v2932_v37, %v2931_v40  ;;  %v2436_v10 = vsub.f32 %v1769_v9, %v2055_v57  ;;  %v2435_v40 = vsub.f32 %v5124_v1, %v2054_v39 }
 0x6a7   :  { %v2678_v22 = vand.u32 2147483647, %v2422_v33  ;;  %v2691_v58 = vand.u32 2147483647, %v2435_v40 }
 0x6a9   :  { %v2934_v25 = vsel %vm2698_vm0, %v2678_v22, 0.0 }
 0x6aa   :  { %v2935_v12 = vadd.f32 %v2934_v25, %v2933_v55 }
 0x6ac   :  { %v1691_v19 = vpop.permute.xlu2 %1690 }
 0x6ad   :  { %v2424_v0 = vsub.f32 %v1691_v19, %v2049_v2  ;;  %v1925_v19 = vrot.slane %v5507_v13, 3 }
 0x6af   :  { %v2680_v41 = vand.u32 2147483647, %v2424_v0  ;;  %v2053_v56 = vperm.slane %v1925_v19, 0 }
 0x6b1   :  { %v2936_v6 = vsel %vm2698_vm0, %v2680_v41, 0.0  ;;  %v2433_v24 = vsub.f32 %v5111_v17, %v2053_v56  ;;  %v3201_v17 = vsel %vm2698_vm0, %v2691_v58, 0.0 }
 0x6b2   :  { %v2937_v30 = vadd.f32 %v2936_v6, %v2935_v12 }
 0x6bc   :  { %v1710_v7 = vpop.permute.xlu2 %1709 }
 0x6bd   :  { %v2427_v38 = vsub.f32 %v1710_v7, %v2050_v31  ;;  %v2938_v31 = vsel %vm2698_vm0, %v2682_v28, 0.0 }
 0x6be   :  { %v2939_v27 = vadd.f32 %v2938_v31, %v2937_v30 }
 0x6bf   :  { %v2683_v51 = vand.u32 2147483647, %v2427_v38  ;;  %v1928_v38 = vrot.slane %v5507_v13, 6  ;;  %v2692_v13 = vand.u32 2147483647, %v2436_v10 }
 0x6c0   :  { %v2941_v47 = vadd.f32 %v2940_v18, %v2939_v27 }
 0x6c1   :  { %v3193_v32 = vsel %vm2698_vm0, %v2683_v51, 0.0  ;;  %v2056_v51 = vperm.slane %v1928_v38, 0  ;;  %v2948_v59 = vsel %vm2698_vm0, %v2692_v13, 0.0 }
 0x6c2   :  { %v3194_v62 = vadd.f32 %v3193_v32, %v3192_v26  ;;  %v2943_v46 = vadd.f32 %v2942_v44, %v2941_v47  ;;  %v2696_v26 = vand.u32 2147483647, %v2440_v54 }
 0x6c3   :  { %v2438_v34 = vsub.f32 %v1782_v3, %v2056_v51 }
 0x6c4   :  { %v1723_v49 = vpop.permute.xlu2 %1722 }
 0x6c5   :  { %v2429_v29 = vsub.f32 %v1723_v49, %v2051_v4  ;;  %v2694_v33 = vand.u32 2147483647, %v2438_v34 }
 0x6c7   :  { %v2685_v14 = vand.u32 2147483647, %v2429_v29  ;;  %v2950_v0 = vsel %vm2698_vm0, %v2694_v33, 0.0 }
 0x6c9   :  { %v3195_v36 = vsel %vm2698_vm0, %v2685_v14, 0.0 }
 0x6ca   :  { %v3196_v48 = vadd.f32 %v3195_v36, %v3194_v62  ;;  %v2952_v62 = vsel %vm2698_vm0, %v2696_v26, 0.0  ;;  %v2689_v36 = vand.u32 2147483647, %v2433_v24 }
 0x6cc   :  { %v5127_v53 = vadd.f32 %v3197_v60, %v3196_v48  ;;  %v1801_v60 = vpop.permute.xlu0 %1800  ;;  %v3199_v41 = vsel %vm2698_vm0, %v2689_v36, 0.0 }
 0x6cd   :  { %v2441_v25 = vsub.f32 %v1801_v60, %v2057_v42 }
 0x6ce   :  { %v3200_v37 = vadd.f32 %v3199_v41, %v5127_v53 }
 0x6cf   :  { %v2697_v28 = vand.u32 2147483647, %v2441_v25 }
 0x6d0   :  { %v3202_v12 = vadd.f32 %v3201_v17, %v3200_v37 }
 0x6d1   :  { %v3207_v23 = vsel %vm2698_vm0, %v2697_v28, 0.0 }
 0x6d4   :  { %v1743_v2 = vpop.permute.xlu2 %1742 }
 0x6d5   :  { %v2432_v7 = vsub.f32 %v1743_v2, %v2053_v56 }
 0x6d7   :  { %v2688_v20 = vand.u32 2147483647, %v2432_v7 }
 0x6d9   :  { %v2944_v4 = vsel %vm2698_vm0, %v2688_v20, 0.0 }
 0x6da   :  { %v2945_v43 = vadd.f32 %v2944_v4, %v2943_v46 }
 0x6dc   :  { %v1756_v52 = vpop.permute.xlu2 %1755 }
 0x6dd   :  { %v2434_v5 = vsub.f32 %v1756_v52, %v2054_v39 }
 0x6df   :  { %v2690_v49 = vand.u32 2147483647, %v2434_v5 }
 0x6e1   :  { %v2946_v32 = vsel %vm2698_vm0, %v2690_v49, 0.0 }
 0x6e2   :  { %v2947_v29 = vadd.f32 %v2946_v32, %v2945_v43 }
 0x6e4   :  { %v2949_v11 = vadd.f32 %v2948_v59, %v2947_v29 }
 0x6e6   :  { %v2951_v14 = vadd.f32 %v2950_v0, %v2949_v11 }
 0x6e8   :  { %v2953_v63 = vadd.f32 %v2952_v62, %v2951_v14 }
 0x6ea   :  { %3209 = vst.msk [vmem:[%s5167_s3] sm:$0xff] %vm2698_vm0, %v2953_v63 }
 0x6ec   :  { %v1775_v22 = vpop.permute.xlu2 %1774 }
 0x6ed   :  { %v2437_v48 = vsub.f32 %v1775_v22, %v2055_v57 }
 0x6ef   :  { %v2693_v50 = vand.u32 2147483647, %v2437_v48 }
 0x6f1   :  { %v3203_v19 = vsel %vm2698_vm0, %v2693_v50, 0.0 }
 0x6f2   :  { %v3204_v3 = vadd.f32 %v3203_v19, %v3202_v12 }
 0x6f4   :  { %v1788_v55 = vpop.permute.xlu2 %1787 }
 0x6f5   :  { %v2439_v6 = vsub.f32 %v1788_v55, %v2056_v51 }
 0x6f7   :  { %v2695_v35 = vand.u32 2147483647, %v2439_v6 }
 0x6f9   :  { %v3205_v1 = vsel %vm2698_vm0, %v2695_v35, 0.0 }
 0x6fa   :  { %v3206_v30 = vadd.f32 %v3205_v1, %v3204_v3 }
 0x6fc   :  { %v3208_v56 = vadd.f32 %v3207_v23, %v3206_v30 }
 0x6fe   :  { %3210 = vst.msk [vmem:[%s5167_s3 + $0x8] sm:$0xff] %vm2698_vm0, %v3208_v56 }
 0x6ff   :  { %3215 = vsyncpa [#allocation3], 1 }
 0x700   :  { %3216 = vsyncpa [#allocation5], 1 }

</bundles_post_ra>
